<compile_context>
chip_gen: v5e
topology: v5e:2x2
jax: 0.10.0
libtpu: 0.0.40
codegen_flags: <defaults>
</compile_context>

<pallas_src>
import jax
import jax.numpy as jnp
import numpy as np
from jax.experimental import pallas as pl
from jax.experimental.pallas import tpu as pltpu

C = 3   # in/out channels fixed by the module
K = 3   # kernel size


def _resblock_kernel(params_ref, xin_ref, mask_ref, out_ref, mid_ref):
    # params_ref: (168,) f32 SMEM   [w1(81) | b1(3) | w2(81) | b2(3)]
    # xin_ref:    (1, C, Hs+2, Ws+2) f32 VMEM  packed input slab (per-image halo
    #             zeros + 1px outer ring of zeros)
    # mask_ref:   (Hs, Ws) f32 VMEM  1.0 at real pixels, 0.0 at per-image halos
    # out_ref:    (1, C, Hs, Ws) f32 VMEM  packed output slab
    # mid_ref:    (C, Hs+2, Ws+2) f32 VMEM scratch (relu(conv1) with outer ring)
    Hs = out_ref.shape[2]
    Ws = out_ref.shape[3]

    # The outer ring of the scratch is never written; it is only ever read for
    # outputs at per-image halo positions (discarded by the wrapper), but zero
    # it once so we never consume uninitialized VMEM. Interior is fully
    # overwritten every step, so no per-step clearing is needed.
    @pl.when(pl.program_id(0) == 0)
    def _init_scratch():
        mid_ref[...] = jnp.zeros_like(mid_ref)

    # ---- hoist every scalar parameter read (SMEM) above the tap loops ----
    n_w = C * C * K * K
    w1_off, b1_off = 0, n_w
    w2_off, b2_off = n_w + C, n_w + C + n_w
    w1 = [params_ref[w1_off + i] for i in range(n_w)]
    b1 = [params_ref[b1_off + i] for i in range(C)]
    w2 = [params_ref[w2_off + i] for i in range(n_w)]
    b2 = [params_ref[b2_off + i] for i in range(C)]

    mask = mask_ref[...]

    # ---- conv1 + bias + relu over the full slab ---------------------------
    # (per-image halo positions are forced back to exact zero by the mask so
    #  conv2's implicit pad=1 stays correct)
    acc = [jnp.full((Hs, Ws), b1[co], jnp.float32) for co in range(C)]
    for ci in range(C):
        for kh in range(K):
            for kw in range(K):
                win = xin_ref[0, ci, kh:kh + Hs, kw:kw + Ws]
                for co in range(C):
                    w = w1[(co * C + ci) * (K * K) + kh * K + kw]
                    acc[co] = acc[co] + w * win
    for co in range(C):
        mid_ref[co, 1:1 + Hs, 1:1 + Ws] = jnp.maximum(acc[co], 0.0) * mask

    # ---- conv2 + bias + relu + residual -----------------------------------
    # residual = interior of the packed input slab (x itself at real pixels)
    acc = [jnp.full((Hs, Ws), b2[co], jnp.float32) for co in range(C)]
    for ci in range(C):
        for kh in range(K):
            for kw in range(K):
                win = mid_ref[ci, kh:kh + Hs, kw:kw + Ws]
                for co in range(C):
                    w = w2[(co * C + ci) * (K * K) + kh * K + kw]
                    acc[co] = acc[co] + w * win
    for co in range(C):
        out_ref[0, co, :, :] = (jnp.maximum(acc[co], 0.0)
                                + xin_ref[0, co, 1:1 + Hs, 1:1 + Ws])


def _cdiv(a, b):
    return -(-a // b)


@jax.jit
def simple_residual_block(x, w1, b1, w2, b2):
    """x: (N, C, H, W) float32; w*: (C, C, 3, 3); b*: (C,). Returns (N, C, H, W)."""
    N, c, H, W = x.shape
    assert c == C
    Hp, Wp = H + 2, W + 2

    # ---- choose a lane/sublane-dense packing of images --------------------
    lane_pack = max(1, min(N, 128 // Wp))        # images side-by-side along lanes
    n_rows = _cdiv(N, lane_pack)                 # rows of images
    sub_pack = max(1, min(n_rows, 128 // Hp))    # image rows stacked per grid step
    if n_rows >= 2:                              # keep >=2 grid steps (v7x: 2 TCs)
        sub_pack = min(sub_pack, _cdiv(n_rows, 2))
    n_blocks = _cdiv(n_rows, sub_pack)
    total = n_blocks * sub_pack * lane_pack      # batch padded up to capacity
    Hs, Ws = sub_pack * Hp, lane_pack * Wp       # packed slab (compute) domain

    # ---- pack: per-image 1px zero halo + 1px zero ring around whole slab --
    xb = jnp.pad(x, ((0, total - N), (0, 0), (1, 1), (1, 1)))   # (total,C,Hp,Wp)
    xb = xb.reshape(n_blocks, sub_pack, lane_pack, C, Hp, Wp)
    xb = xb.transpose(0, 3, 1, 4, 2, 5)                         # (nb,C,sp,Hp,lp,Wp)
    xb = xb.reshape(n_blocks, C, Hs, Ws)
    xb = jnp.pad(xb, ((0, 0), (0, 0), (1, 1), (1, 1)))          # (nb,C,Hs+2,Ws+2)

    # real-pixel mask (static constant): 0 at per-image halo rows/cols
    row_real = (np.arange(Hs) % Hp != 0) & (np.arange(Hs) % Hp != Hp - 1)
    col_real = (np.arange(Ws) % Wp != 0) & (np.arange(Ws) % Wp != Wp - 1)
    mask = jnp.asarray((row_real[:, None] & col_real[None, :]).astype(np.float32))

    # flat 1-D parameter table for SMEM scalar reads
    params = jnp.concatenate([
        w1.reshape(-1).astype(jnp.float32), b1.astype(jnp.float32),
        w2.reshape(-1).astype(jnp.float32), b2.astype(jnp.float32)])

    flops = 4 * C * C * K * K * n_blocks * Hs * Ws           # two convs, mul+add
    bytes_accessed = 4 * (xb.size + n_blocks * C * Hs * Ws + mask.size + params.size)

    out_packed = pl.pallas_call(
        _resblock_kernel,
        out_shape=jax.ShapeDtypeStruct((n_blocks, C, Hs, Ws), jnp.float32),
        grid=(n_blocks,),
        in_specs=[
            pl.BlockSpec(memory_space=pltpu.MemorySpace.SMEM),              # params
            pl.BlockSpec((1, C, Hs + 2, Ws + 2), lambda n: (n, 0, 0, 0)),   # packed x
            pl.BlockSpec((Hs, Ws), lambda n: (0, 0)),                       # mask
        ],
        out_specs=pl.BlockSpec((1, C, Hs, Ws), lambda n: (n, 0, 0, 0)),
        scratch_shapes=[pltpu.VMEM((C, Hs + 2, Ws + 2), jnp.float32)],
        compiler_params=pltpu.CompilerParams(
            dimension_semantics=("parallel",),
            vmem_limit_bytes=48 * 1024 * 1024),
        cost_estimate=pl.CostEstimate(flops=int(flops), transcendentals=0,
                                      bytes_accessed=int(bytes_accessed)),
    )(params, xb, mask)

    # ---- unpack back to (N, C, H, W): drop halos and batch padding --------
    out = out_packed.reshape(n_blocks, C, sub_pack, Hp, lane_pack, Wp)
    out = out.transpose(0, 2, 4, 1, 3, 5).reshape(total, C, Hp, Wp)
    return out[:N, :, 1:1 + H, 1:1 + W]


def _reference(x, w1, b1, w2, b2):
    def conv(h, w, b):
        y = jax.lax.conv_general_dilated(
            h, w, window_strides=(1, 1), padding=((1, 1), (1, 1)),
            dimension_numbers=("NCHW", "OIHW", "NCHW"))
        return y + b[None, :, None, None]
    out = jax.nn.relu(conv(x, w1, b1))
    out = conv(out, w2, b2)
    return jax.nn.relu(out) + x


if __name__ == "__main__":
    key = jax.random.PRNGKey(0)
    kx, kw1, kb1, kw2, kb2 = jax.random.split(key, 5)

    N, H, W = 2, 16, 16
    x = jax.random.normal(kx, (N, C, H, W), dtype=jnp.float32)

    # PyTorch Conv2d default init: uniform in +/- 1/sqrt(fan_in).
    fan_in = C * K * K
    bound = 1.0 / np.sqrt(fan_in)
    w1 = jax.random.uniform(kw1, (C, C, K, K), jnp.float32, -bound, bound)
    b1 = jax.random.uniform(kb1, (C,), jnp.float32, -bound, bound)
    w2 = jax.random.uniform(kw2, (C, C, K, K), jnp.float32, -bound, bound)
    b2 = jax.random.uniform(kb2, (C,), jnp.float32, -bound, bound)

    out = simple_residual_block(x, w1, b1, w2, b2)
    out = jax.block_until_ready(out)

    ref = _reference(x, w1, b1, w2, b2)
    assert out.shape == (N, C, H, W)
    assert np.allclose(np.asarray(out), np.asarray(ref), atol=1e-5, rtol=1e-5)

    print("KERNEL_OK")
</pallas_src>

<mosaic_0001>
module attributes {stable_mosaic.version = 11 : i64} {
  func.func @_resblock_kernel(%arg0: i32, %arg1: memref<168xf32, #tpu.memory_space<smem>>, %arg2: memref<1x3x20x38xf32, #tpu.memory_space<vmem>>, %arg3: memref<18x36xf32, #tpu.memory_space<vmem>>, %arg4: memref<1x3x18x36xf32, #tpu.memory_space<vmem>>, %arg5: memref<3x20x38xf32, #tpu.memory_space<vmem>>) attributes {dimension_semantics = [#tpu.dimension_semantics<parallel>], iteration_bounds = array<i64: 1>, scalar_prefetch = 0 : i64, scratch_operands = 1 : i64, tpu.core_type = #tpu.core_type<tc>, window_params = [{transform_indices = @transform_0, window_bounds = array<i64: 168>}, {transform_indices = @transform_1, window_bounds = array<i64: 1, 3, 20, 38>}, {pipeline_mode = #tpu.pipeline_mode<synchronous>, transform_indices = @transform_2, window_bounds = array<i64: 18, 36>}, {transform_indices = @transform_3, window_bounds = array<i64: 1, 3, 18, 36>}]} {
    %c0_i32 = arith.constant 0 : i32
    %0 = arith.cmpi eq, %arg0, %c0_i32 : i32
    %1 = arith.extui %0 : i1 to i32
    %c0_i32_0 = arith.constant 0 : i32
    %2 = arith.cmpi ne, %1, %c0_i32_0 : i32
    scf.if %2 {
      %cst_230 = arith.constant 0.000000e+00 : f32
      %814 = vector.broadcast %cst_230 : f32 to vector<3x20x38xf32>
      %c0_231 = arith.constant 0 : index
      %c0_232 = arith.constant 0 : index
      %c0_233 = arith.constant 0 : index
      %815 = vector.load %arg5[%c0_231, %c0_232, %c0_233] : memref<3x20x38xf32, #tpu.memory_space<vmem>>, vector<3x20x38xf32>
      tpu.vector_store %arg5[%c0_231, %c0_232, %c0_233], %814 {strides = array<i32>} : memref<3x20x38xf32, #tpu.memory_space<vmem>>, vector<3x20x38xf32>,
    } else {
    }
    %c0 = arith.constant 0 : index
    %3 = memref.load %arg1[%c0] : memref<168xf32, #tpu.memory_space<smem>>
    %c1 = arith.constant 1 : index
    %4 = memref.load %arg1[%c1] : memref<168xf32, #tpu.memory_space<smem>>
    %c2 = arith.constant 2 : index
    %5 = memref.load %arg1[%c2] : memref<168xf32, #tpu.memory_space<smem>>
    %c3 = arith.constant 3 : index
    %6 = memref.load %arg1[%c3] : memref<168xf32, #tpu.memory_space<smem>>
    %c4 = arith.constant 4 : index
    %7 = memref.load %arg1[%c4] : memref<168xf32, #tpu.memory_space<smem>>
    %c5 = arith.constant 5 : index
    %8 = memref.load %arg1[%c5] : memref<168xf32, #tpu.memory_space<smem>>
    %c6 = arith.constant 6 : index
    %9 = memref.load %arg1[%c6] : memref<168xf32, #tpu.memory_space<smem>>
    %c7 = arith.constant 7 : index
    %10 = memref.load %arg1[%c7] : memref<168xf32, #tpu.memory_space<smem>>
    %c8 = arith.constant 8 : index
    %11 = memref.load %arg1[%c8] : memref<168xf32, #tpu.memory_space<smem>>
    %c9 = arith.constant 9 : index
    %12 = memref.load %arg1[%c9] : memref<168xf32, #tpu.memory_space<smem>>
    %c10 = arith.constant 10 : index
    %13 = memref.load %arg1[%c10] : memref<168xf32, #tpu.memory_space<smem>>
    %c11 = arith.constant 11 : index
    %14 = memref.load %arg1[%c11] : memref<168xf32, #tpu.memory_space<smem>>
    %c12 = arith.constant 12 : index
    %15 = memref.load %arg1[%c12] : memref<168xf32, #tpu.memory_space<smem>>
    %c13 = arith.constant 13 : index
    %16 = memref.load %arg1[%c13] : memref<168xf32, #tpu.memory_space<smem>>
    %c14 = arith.constant 14 : index
    %17 = memref.load %arg1[%c14] : memref<168xf32, #tpu.memory_space<smem>>
    %c15 = arith.constant 15 : index
    %18 = memref.load %arg1[%c15] : memref<168xf32, #tpu.memory_space<smem>>
    %c16 = arith.constant 16 : index
    %19 = memref.load %arg1[%c16] : memref<168xf32, #tpu.memory_space<smem>>
    %c17 = arith.constant 17 : index
    %20 = memref.load %arg1[%c17] : memref<168xf32, #tpu.memory_space<smem>>
    %c18 = arith.constant 18 : index
    %21 = memref.load %arg1[%c18] : memref<168xf32, #tpu.memory_space<smem>>
    %c19 = arith.constant 19 : index
    %22 = memref.load %arg1[%c19] : memref<168xf32, #tpu.memory_space<smem>>
    %c20 = arith.constant 20 : index
    %23 = memref.load %arg1[%c20] : memref<168xf32, #tpu.memory_space<smem>>
    %c21 = arith.constant 21 : index
    %24 = memref.load %arg1[%c21] : memref<168xf32, #tpu.memory_space<smem>>
    %c22 = arith.constant 22 : index
    %25 = memref.load %arg1[%c22] : memref<168xf32, #tpu.memory_space<smem>>
    %c23 = arith.constant 23 : index
    %26 = memref.load %arg1[%c23] : memref<168xf32, #tpu.memory_space<smem>>
    %c24 = arith.constant 24 : index
    %27 = memref.load %arg1[%c24] : memref<168xf32, #tpu.memory_space<smem>>
    %c25 = arith.constant 25 : index
    %28 = memref.load %arg1[%c25] : memref<168xf32, #tpu.memory_space<smem>>
    %c26 = arith.constant 26 : index
    %29 = memref.load %arg1[%c26] : memref<168xf32, #tpu.memory_space<smem>>
    %c27 = arith.constant 27 : index
    %30 = memref.load %arg1[%c27] : memref<168xf32, #tpu.memory_space<smem>>
    %c28 = arith.constant 28 : index
    %31 = memref.load %arg1[%c28] : memref<168xf32, #tpu.memory_space<smem>>
    %c29 = arith.constant 29 : index
    %32 = memref.load %arg1[%c29] : memref<168xf32, #tpu.memory_space<smem>>
    %c30 = arith.constant 30 : index
    %33 = memref.load %arg1[%c30] : memref<168xf32, #tpu.memory_space<smem>>
    %c31 = arith.constant 31 : index
    %34 = memref.load %arg1[%c31] : memref<168xf32, #tpu.memory_space<smem>>
    %c32 = arith.constant 32 : index
    %35 = memref.load %arg1[%c32] : memref<168xf32, #tpu.memory_space<smem>>
    %c33 = arith.constant 33 : index
    %36 = memref.load %arg1[%c33] : memref<168xf32, #tpu.memory_space<smem>>
    %c34 = arith.constant 34 : index
    %37 = memref.load %arg1[%c34] : memref<168xf32, #tpu.memory_space<smem>>
    %c35 = arith.constant 35 : index
    %38 = memref.load %arg1[%c35] : memref<168xf32, #tpu.memory_space<smem>>
    %c36 = arith.constant 36 : index
    %39 = memref.load %arg1[%c36] : memref<168xf32, #tpu.memory_space<smem>>
    %c37 = arith.constant 37 : index
    %40 = memref.load %arg1[%c37] : memref<168xf32, #tpu.memory_space<smem>>
    %c38 = arith.constant 38 : index
    %41 = memref.load %arg1[%c38] : memref<168xf32, #tpu.memory_space<smem>>
    %c39 = arith.constant 39 : index
    %42 = memref.load %arg1[%c39] : memref<168xf32, #tpu.memory_space<smem>>
    %c40 = arith.constant 40 : index
    %43 = memref.load %arg1[%c40] : memref<168xf32, #tpu.memory_space<smem>>
    %c41 = arith.constant 41 : index
    %44 = memref.load %arg1[%c41] : memref<168xf32, #tpu.memory_space<smem>>
    %c42 = arith.constant 42 : index
    %45 = memref.load %arg1[%c42] : memref<168xf32, #tpu.memory_space<smem>>
    %c43 = arith.constant 43 : index
    %46 = memref.load %arg1[%c43] : memref<168xf32, #tpu.memory_space<smem>>
    %c44 = arith.constant 44 : index
    %47 = memref.load %arg1[%c44] : memref<168xf32, #tpu.memory_space<smem>>
    %c45 = arith.constant 45 : index
    %48 = memref.load %arg1[%c45] : memref<168xf32, #tpu.memory_space<smem>>
    %c46 = arith.constant 46 : index
    %49 = memref.load %arg1[%c46] : memref<168xf32, #tpu.memory_space<smem>>
    %c47 = arith.constant 47 : index
    %50 = memref.load %arg1[%c47] : memref<168xf32, #tpu.memory_space<smem>>
    %c48 = arith.constant 48 : index
    %51 = memref.load %arg1[%c48] : memref<168xf32, #tpu.memory_space<smem>>
    %c49 = arith.constant 49 : index
    %52 = memref.load %arg1[%c49] : memref<168xf32, #tpu.memory_space<smem>>
    %c50 = arith.constant 50 : index
    %53 = memref.load %arg1[%c50] : memref<168xf32, #tpu.memory_space<smem>>
    %c51 = arith.constant 51 : index
    %54 = memref.load %arg1[%c51] : memref<168xf32, #tpu.memory_space<smem>>
    %c52 = arith.constant 52 : index
    %55 = memref.load %arg1[%c52] : memref<168xf32, #tpu.memory_space<smem>>
    %c53 = arith.constant 53 : index
    %56 = memref.load %arg1[%c53] : memref<168xf32, #tpu.memory_space<smem>>
    %c54 = arith.constant 54 : index
    %57 = memref.load %arg1[%c54] : memref<168xf32, #tpu.memory_space<smem>>
    %c55 = arith.constant 55 : index
    %58 = memref.load %arg1[%c55] : memref<168xf32, #tpu.memory_space<smem>>
    %c56 = arith.constant 56 : index
    %59 = memref.load %arg1[%c56] : memref<168xf32, #tpu.memory_space<smem>>
    %c57 = arith.constant 57 : index
    %60 = memref.load %arg1[%c57] : memref<168xf32, #tpu.memory_space<smem>>
    %c58 = arith.constant 58 : index
    %61 = memref.load %arg1[%c58] : memref<168xf32, #tpu.memory_space<smem>>
    %c59 = arith.constant 59 : index
    %62 = memref.load %arg1[%c59] : memref<168xf32, #tpu.memory_space<smem>>
    %c60 = arith.constant 60 : index
    %63 = memref.load %arg1[%c60] : memref<168xf32, #tpu.memory_space<smem>>
    %c61 = arith.constant 61 : index
    %64 = memref.load %arg1[%c61] : memref<168xf32, #tpu.memory_space<smem>>
    %c62 = arith.constant 62 : index
    %65 = memref.load %arg1[%c62] : memref<168xf32, #tpu.memory_space<smem>>
    %c63 = arith.constant 63 : index
    %66 = memref.load %arg1[%c63] : memref<168xf32, #tpu.memory_space<smem>>
    %c64 = arith.constant 64 : index
    %67 = memref.load %arg1[%c64] : memref<168xf32, #tpu.memory_space<smem>>
    %c65 = arith.constant 65 : index
    %68 = memref.load %arg1[%c65] : memref<168xf32, #tpu.memory_space<smem>>
    %c66 = arith.constant 66 : index
    %69 = memref.load %arg1[%c66] : memref<168xf32, #tpu.memory_space<smem>>
    %c67 = arith.constant 67 : index
    %70 = memref.load %arg1[%c67] : memref<168xf32, #tpu.memory_space<smem>>
    %c68 = arith.constant 68 : index
    %71 = memref.load %arg1[%c68] : memref<168xf32, #tpu.memory_space<smem>>
    %c69 = arith.constant 69 : index
    %72 = memref.load %arg1[%c69] : memref<168xf32, #tpu.memory_space<smem>>
    %c70 = arith.constant 70 : index
    %73 = memref.load %arg1[%c70] : memref<168xf32, #tpu.memory_space<smem>>
    %c71 = arith.constant 71 : index
    %74 = memref.load %arg1[%c71] : memref<168xf32, #tpu.memory_space<smem>>
    %c72 = arith.constant 72 : index
    %75 = memref.load %arg1[%c72] : memref<168xf32, #tpu.memory_space<smem>>
    %c73 = arith.constant 73 : index
    %76 = memref.load %arg1[%c73] : memref<168xf32, #tpu.memory_space<smem>>
    %c74 = arith.constant 74 : index
    %77 = memref.load %arg1[%c74] : memref<168xf32, #tpu.memory_space<smem>>
    %c75 = arith.constant 75 : index
    %78 = memref.load %arg1[%c75] : memref<168xf32, #tpu.memory_space<smem>>
    %c76 = arith.constant 76 : index
    %79 = memref.load %arg1[%c76] : memref<168xf32, #tpu.memory_space<smem>>
    %c77 = arith.constant 77 : index
    %80 = memref.load %arg1[%c77] : memref<168xf32, #tpu.memory_space<smem>>
    %c78 = arith.constant 78 : index
    %81 = memref.load %arg1[%c78] : memref<168xf32, #tpu.memory_space<smem>>
    %c79 = arith.constant 79 : index
    %82 = memref.load %arg1[%c79] : memref<168xf32, #tpu.memory_space<smem>>
    %c80 = arith.constant 80 : index
    %83 = memref.load %arg1[%c80] : memref<168xf32, #tpu.memory_space<smem>>
    %c81 = arith.constant 81 : index
    %84 = memref.load %arg1[%c81] : memref<168xf32, #tpu.memory_space<smem>>
    %c82 = arith.constant 82 : index
    %85 = memref.load %arg1[%c82] : memref<168xf32, #tpu.memory_space<smem>>
    %c83 = arith.constant 83 : index
    %86 = memref.load %arg1[%c83] : memref<168xf32, #tpu.memory_space<smem>>
    %c84 = arith.constant 84 : index
    %87 = memref.load %arg1[%c84] : memref<168xf32, #tpu.memory_space<smem>>
    %c85 = arith.constant 85 : index
    %88 = memref.load %arg1[%c85] : memref<168xf32, #tpu.memory_space<smem>>
    %c86 = arith.constant 86 : index
    %89 = memref.load %arg1[%c86] : memref<168xf32, #tpu.memory_space<smem>>
    %c87 = arith.constant 87 : index
    %90 = memref.load %arg1[%c87] : memref<168xf32, #tpu.memory_space<smem>>
    %c88 = arith.constant 88 : index
    %91 = memref.load %arg1[%c88] : memref<168xf32, #tpu.memory_space<smem>>
    %c89 = arith.constant 89 : index
    %92 = memref.load %arg1[%c89] : memref<168xf32, #tpu.memory_space<smem>>
    %c90 = arith.constant 90 : index
    %93 = memref.load %arg1[%c90] : memref<168xf32, #tpu.memory_space<smem>>
    %c91 = arith.constant 91 : index
    %94 = memref.load %arg1[%c91] : memref<168xf32, #tpu.memory_space<smem>>
    %c92 = arith.constant 92 : index
    %95 = memref.load %arg1[%c92] : memref<168xf32, #tpu.memory_space<smem>>
    %c93 = arith.constant 93 : index
    %96 = memref.load %arg1[%c93] : memref<168xf32, #tpu.memory_space<smem>>
    %c94 = arith.constant 94 : index
    %97 = memref.load %arg1[%c94] : memref<168xf32, #tpu.memory_space<smem>>
    %c95 = arith.constant 95 : index
    %98 = memref.load %arg1[%c95] : memref<168xf32, #tpu.memory_space<smem>>
    %c96 = arith.constant 96 : index
    %99 = memref.load %arg1[%c96] : memref<168xf32, #tpu.memory_space<smem>>
    %c97 = arith.constant 97 : index
    %100 = memref.load %arg1[%c97] : memref<168xf32, #tpu.memory_space<smem>>
    %c98 = arith.constant 98 : index
    %101 = memref.load %arg1[%c98] : memref<168xf32, #tpu.memory_space<smem>>
    %c99 = arith.constant 99 : index
    %102 = memref.load %arg1[%c99] : memref<168xf32, #tpu.memory_space<smem>>
    %c100 = arith.constant 100 : index
    %103 = memref.load %arg1[%c100] : memref<168xf32, #tpu.memory_space<smem>>
    %c101 = arith.constant 101 : index
    %104 = memref.load %arg1[%c101] : memref<168xf32, #tpu.memory_space<smem>>
    %c102 = arith.constant 102 : index
    %105 = memref.load %arg1[%c102] : memref<168xf32, #tpu.memory_space<smem>>
    %c103 = arith.constant 103 : index
    %106 = memref.load %arg1[%c103] : memref<168xf32, #tpu.memory_space<smem>>
    %c104 = arith.constant 104 : index
    %107 = memref.load %arg1[%c104] : memref<168xf32, #tpu.memory_space<smem>>
    %c105 = arith.constant 105 : index
    %108 = memref.load %arg1[%c105] : memref<168xf32, #tpu.memory_space<smem>>
    %c106 = arith.constant 106 : index
    %109 = memref.load %arg1[%c106] : memref<168xf32, #tpu.memory_space<smem>>
    %c107 = arith.constant 107 : index
    %110 = memref.load %arg1[%c107] : memref<168xf32, #tpu.memory_space<smem>>
    %c108 = arith.constant 108 : index
    %111 = memref.load %arg1[%c108] : memref<168xf32, #tpu.memory_space<smem>>
    %c109 = arith.constant 109 : index
    %112 = memref.load %arg1[%c109] : memref<168xf32, #tpu.memory_space<smem>>
    %c110 = arith.constant 110 : index
    %113 = memref.load %arg1[%c110] : memref<168xf32, #tpu.memory_space<smem>>
    %c111 = arith.constant 111 : index
    %114 = memref.load %arg1[%c111] : memref<168xf32, #tpu.memory_space<smem>>
    %c112 = arith.constant 112 : index
    %115 = memref.load %arg1[%c112] : memref<168xf32, #tpu.memory_space<smem>>
    %c113 = arith.constant 113 : index
    %116 = memref.load %arg1[%c113] : memref<168xf32, #tpu.memory_space<smem>>
    %c114 = arith.constant 114 : index
    %117 = memref.load %arg1[%c114] : memref<168xf32, #tpu.memory_space<smem>>
    %c115 = arith.constant 115 : index
    %118 = memref.load %arg1[%c115] : memref<168xf32, #tpu.memory_space<smem>>
    %c116 = arith.constant 116 : index
    %119 = memref.load %arg1[%c116] : memref<168xf32, #tpu.memory_space<smem>>
    %c117 = arith.constant 117 : index
    %120 = memref.load %arg1[%c117] : memref<168xf32, #tpu.memory_space<smem>>
    %c118 = arith.constant 118 : index
    %121 = memref.load %arg1[%c118] : memref<168xf32, #tpu.memory_space<smem>>
    %c119 = arith.constant 119 : index
    %122 = memref.load %arg1[%c119] : memref<168xf32, #tpu.memory_space<smem>>
    %c120 = arith.constant 120 : index
    %123 = memref.load %arg1[%c120] : memref<168xf32, #tpu.memory_space<smem>>
    %c121 = arith.constant 121 : index
    %124 = memref.load %arg1[%c121] : memref<168xf32, #tpu.memory_space<smem>>
    %c122 = arith.constant 122 : index
    %125 = memref.load %arg1[%c122] : memref<168xf32, #tpu.memory_space<smem>>
    %c123 = arith.constant 123 : index
    %126 = memref.load %arg1[%c123] : memref<168xf32, #tpu.memory_space<smem>>
    %c124 = arith.constant 124 : index
    %127 = memref.load %arg1[%c124] : memref<168xf32, #tpu.memory_space<smem>>
    %c125 = arith.constant 125 : index
    %128 = memref.load %arg1[%c125] : memref<168xf32, #tpu.memory_space<smem>>
    %c126 = arith.constant 126 : index
    %129 = memref.load %arg1[%c126] : memref<168xf32, #tpu.memory_space<smem>>
    %c127 = arith.constant 127 : index
    %130 = memref.load %arg1[%c127] : memref<168xf32, #tpu.memory_space<smem>>
    %c128 = arith.constant 128 : index
    %131 = memref.load %arg1[%c128] : memref<168xf32, #tpu.memory_space<smem>>
    %c129 = arith.constant 129 : index
    %132 = memref.load %arg1[%c129] : memref<168xf32, #tpu.memory_space<smem>>
    %c130 = arith.constant 130 : index
    %133 = memref.load %arg1[%c130] : memref<168xf32, #tpu.memory_space<smem>>
    %c131 = arith.constant 131 : index
    %134 = memref.load %arg1[%c131] : memref<168xf32, #tpu.memory_space<smem>>
    %c132 = arith.constant 132 : index
    %135 = memref.load %arg1[%c132] : memref<168xf32, #tpu.memory_space<smem>>
    %c133 = arith.constant 133 : index
    %136 = memref.load %arg1[%c133] : memref<168xf32, #tpu.memory_space<smem>>
    %c134 = arith.constant 134 : index
    %137 = memref.load %arg1[%c134] : memref<168xf32, #tpu.memory_space<smem>>
    %c135 = arith.constant 135 : index
    %138 = memref.load %arg1[%c135] : memref<168xf32, #tpu.memory_space<smem>>
    %c136 = arith.constant 136 : index
    %139 = memref.load %arg1[%c136] : memref<168xf32, #tpu.memory_space<smem>>
    %c137 = arith.constant 137 : index
    %140 = memref.load %arg1[%c137] : memref<168xf32, #tpu.memory_space<smem>>
    %c138 = arith.constant 138 : index
    %141 = memref.load %arg1[%c138] : memref<168xf32, #tpu.memory_space<smem>>
    %c139 = arith.constant 139 : index
    %142 = memref.load %arg1[%c139] : memref<168xf32, #tpu.memory_space<smem>>
    %c140 = arith.constant 140 : index
    %143 = memref.load %arg1[%c140] : memref<168xf32, #tpu.memory_space<smem>>
    %c141 = arith.constant 141 : index
    %144 = memref.load %arg1[%c141] : memref<168xf32, #tpu.memory_space<smem>>
    %c142 = arith.constant 142 : index
    %145 = memref.load %arg1[%c142] : memref<168xf32, #tpu.memory_space<smem>>
    %c143 = arith.constant 143 : index
    %146 = memref.load %arg1[%c143] : memref<168xf32, #tpu.memory_space<smem>>
    %c144 = arith.constant 144 : index
    %147 = memref.load %arg1[%c144] : memref<168xf32, #tpu.memory_space<smem>>
    %c145 = arith.constant 145 : index
    %148 = memref.load %arg1[%c145] : memref<168xf32, #tpu.memory_space<smem>>
    %c146 = arith.constant 146 : index
    %149 = memref.load %arg1[%c146] : memref<168xf32, #tpu.memory_space<smem>>
    %c147 = arith.constant 147 : index
    %150 = memref.load %arg1[%c147] : memref<168xf32, #tpu.memory_space<smem>>
    %c148 = arith.constant 148 : index
    %151 = memref.load %arg1[%c148] : memref<168xf32, #tpu.memory_space<smem>>
    %c149 = arith.constant 149 : index
    %152 = memref.load %arg1[%c149] : memref<168xf32, #tpu.memory_space<smem>>
    %c150 = arith.constant 150 : index
    %153 = memref.load %arg1[%c150] : memref<168xf32, #tpu.memory_space<smem>>
    %c151 = arith.constant 151 : index
    %154 = memref.load %arg1[%c151] : memref<168xf32, #tpu.memory_space<smem>>
    %c152 = arith.constant 152 : index
    %155 = memref.load %arg1[%c152] : memref<168xf32, #tpu.memory_space<smem>>
    %c153 = arith.constant 153 : index
    %156 = memref.load %arg1[%c153] : memref<168xf32, #tpu.memory_space<smem>>
    %c154 = arith.constant 154 : index
    %157 = memref.load %arg1[%c154] : memref<168xf32, #tpu.memory_space<smem>>
    %c155 = arith.constant 155 : index
    %158 = memref.load %arg1[%c155] : memref<168xf32, #tpu.memory_space<smem>>
    %c156 = arith.constant 156 : index
    %159 = memref.load %arg1[%c156] : memref<168xf32, #tpu.memory_space<smem>>
    %c157 = arith.constant 157 : index
    %160 = memref.load %arg1[%c157] : memref<168xf32, #tpu.memory_space<smem>>
    %c158 = arith.constant 158 : index
    %161 = memref.load %arg1[%c158] : memref<168xf32, #tpu.memory_space<smem>>
    %c159 = arith.constant 159 : index
    %162 = memref.load %arg1[%c159] : memref<168xf32, #tpu.memory_space<smem>>
    %c160 = arith.constant 160 : index
    %163 = memref.load %arg1[%c160] : memref<168xf32, #tpu.memory_space<smem>>
    %c161 = arith.constant 161 : index
    %164 = memref.load %arg1[%c161] : memref<168xf32, #tpu.memory_space<smem>>
    %c162 = arith.constant 162 : index
    %165 = memref.load %arg1[%c162] : memref<168xf32, #tpu.memory_space<smem>>
    %c163 = arith.constant 163 : index
    %166 = memref.load %arg1[%c163] : memref<168xf32, #tpu.memory_space<smem>>
    %c164 = arith.constant 164 : index
    %167 = memref.load %arg1[%c164] : memref<168xf32, #tpu.memory_space<smem>>
    %c165 = arith.constant 165 : index
    %168 = memref.load %arg1[%c165] : memref<168xf32, #tpu.memory_space<smem>>
    %c166 = arith.constant 166 : index
    %169 = memref.load %arg1[%c166] : memref<168xf32, #tpu.memory_space<smem>>
    %c167 = arith.constant 167 : index
    %170 = memref.load %arg1[%c167] : memref<168xf32, #tpu.memory_space<smem>>
    %c0_1 = arith.constant 0 : index
    %c0_2 = arith.constant 0 : index
    %171 = vector.load %arg3[%c0_1, %c0_2] : memref<18x36xf32, #tpu.memory_space<vmem>>, vector<18x36xf32>
    %172 = vector.broadcast %84 : f32 to vector<18x36xf32>
    %173 = vector.broadcast %85 : f32 to vector<18x36xf32>
    %174 = vector.broadcast %86 : f32 to vector<18x36xf32>
    %c0_3 = arith.constant 0 : index
    %c0_4 = arith.constant 0 : index
    %c0_5 = arith.constant 0 : index
    %c0_6 = arith.constant 0 : index
    %175 = vector.load %arg2[%c0_3, %c0_4, %c0_5, %c0_6] : memref<1x3x20x38xf32, #tpu.memory_space<vmem>>, vector<1x1x18x36xf32>
    %176 = vector.shape_cast %175 : vector<1x1x18x36xf32> to vector<18x36xf32>
    %177 = vector.broadcast %3 : f32 to vector<18x36xf32>
    %178 = arith.mulf %177, %176 : vector<18x36xf32>
    %179 = arith.addf %172, %178 : vector<18x36xf32>
    %180 = vector.broadcast %30 : f32 to vector<18x36xf32>
    %181 = arith.mulf %180, %176 : vector<18x36xf32>
    %182 = arith.addf %173, %181 : vector<18x36xf32>
    %183 = vector.broadcast %57 : f32 to vector<18x36xf32>
    %184 = arith.mulf %183, %176 : vector<18x36xf32>
    %185 = arith.addf %174, %184 : vector<18x36xf32>
    %c0_7 = arith.constant 0 : index
    %c0_8 = arith.constant 0 : index
    %c0_9 = arith.constant 0 : index
    %c1_10 = arith.constant 1 : index
    %186 = vector.load %arg2[%c0_7, %c0_8, %c0_9, %c1_10] : memref<1x3x20x38xf32, #tpu.memory_space<vmem>>, vector<1x1x18x36xf32>
    %187 = vector.shape_cast %186 : vector<1x1x18x36xf32> to vector<18x36xf32>
    %188 = vector.broadcast %4 : f32 to vector<18x36xf32>
    %189 = arith.mulf %188, %187 : vector<18x36xf32>
    %190 = arith.addf %179, %189 : vector<18x36xf32>
    %191 = vector.broadcast %31 : f32 to vector<18x36xf32>
    %192 = arith.mulf %191, %187 : vector<18x36xf32>
    %193 = arith.addf %182, %192 : vector<18x36xf32>
    %194 = vector.broadcast %58 : f32 to vector<18x36xf32>
    %195 = arith.mulf %194, %187 : vector<18x36xf32>
    %196 = arith.addf %185, %195 : vector<18x36xf32>
    %c0_11 = arith.constant 0 : index
    %c0_12 = arith.constant 0 : index
    %c0_13 = arith.constant 0 : index
    %c2_14 = arith.constant 2 : index
    %197 = vector.load %arg2[%c0_11, %c0_12, %c0_13, %c2_14] : memref<1x3x20x38xf32, #tpu.memory_space<vmem>>, vector<1x1x18x36xf32>
    %198 = vector.shape_cast %197 : vector<1x1x18x36xf32> to vector<18x36xf32>
    %199 = vector.broadcast %5 : f32 to vector<18x36xf32>
    %200 = arith.mulf %199, %198 : vector<18x36xf32>
    %201 = arith.addf %190, %200 : vector<18x36xf32>
    %202 = vector.broadcast %32 : f32 to vector<18x36xf32>
    %203 = arith.mulf %202, %198 : vector<18x36xf32>
    %204 = arith.addf %193, %203 : vector<18x36xf32>
    %205 = vector.broadcast %59 : f32 to vector<18x36xf32>
    %206 = arith.mulf %205, %198 : vector<18x36xf32>
    %207 = arith.addf %196, %206 : vector<18x36xf32>
    %c0_15 = arith.constant 0 : index
    %c0_16 = arith.constant 0 : index
    %c1_17 = arith.constant 1 : index
    %c0_18 = arith.constant 0 : index
    %208 = vector.load %arg2[%c0_15, %c0_16, %c1_17, %c0_18] : memref<1x3x20x38xf32, #tpu.memory_space<vmem>>, vector<1x1x18x36xf32>
    %209 = vector.shape_cast %208 : vector<1x1x18x36xf32> to vector<18x36xf32>
    %210 = vector.broadcast %6 : f32 to vector<18x36xf32>
    %211 = arith.mulf %210, %209 : vector<18x36xf32>
    %212 = arith.addf %201, %211 : vector<18x36xf32>
    %213 = vector.broadcast %33 : f32 to vector<18x36xf32>
    %214 = arith.mulf %213, %209 : vector<18x36xf32>
    %215 = arith.addf %204, %214 : vector<18x36xf32>
    %216 = vector.broadcast %60 : f32 to vector<18x36xf32>
    %217 = arith.mulf %216, %209 : vector<18x36xf32>
    %218 = arith.addf %207, %217 : vector<18x36xf32>
    %c0_19 = arith.constant 0 : index
    %c0_20 = arith.constant 0 : index
    %c1_21 = arith.constant 1 : index
    %c1_22 = arith.constant 1 : index
    %219 = vector.load %arg2[%c0_19, %c0_20, %c1_21, %c1_22] : memref<1x3x20x38xf32, #tpu.memory_space<vmem>>, vector<1x1x18x36xf32>
    %220 = vector.shape_cast %219 : vector<1x1x18x36xf32> to vector<18x36xf32>
    %221 = vector.broadcast %7 : f32 to vector<18x36xf32>
    %222 = arith.mulf %221, %220 : vector<18x36xf32>
    %223 = arith.addf %212, %222 : vector<18x36xf32>
    %224 = vector.broadcast %34 : f32 to vector<18x36xf32>
    %225 = arith.mulf %224, %220 : vector<18x36xf32>
    %226 = arith.addf %215, %225 : vector<18x36xf32>
    %227 = vector.broadcast %61 : f32 to vector<18x36xf32>
    %228 = arith.mulf %227, %220 : vector<18x36xf32>
    %229 = arith.addf %218, %228 : vector<18x36xf32>
    %c0_23 = arith.constant 0 : index
    %c0_24 = arith.constant 0 : index
    %c1_25 = arith.constant 1 : index
    %c2_26 = arith.constant 2 : index
    %230 = vector.load %arg2[%c0_23, %c0_24, %c1_25, %c2_26] : memref<1x3x20x38xf32, #tpu.memory_space<vmem>>, vector<1x1x18x36xf32>
    %231 = vector.shape_cast %230 : vector<1x1x18x36xf32> to vector<18x36xf32>
    %232 = vector.broadcast %8 : f32 to vector<18x36xf32>
    %233 = arith.mulf %232, %231 : vector<18x36xf32>
    %234 = arith.addf %223, %233 : vector<18x36xf32>
    %235 = vector.broadcast %35 : f32 to vector<18x36xf32>
    %236 = arith.mulf %235, %231 : vector<18x36xf32>
    %237 = arith.addf %226, %236 : vector<18x36xf32>
    %238 = vector.broadcast %62 : f32 to vector<18x36xf32>
    %239 = arith.mulf %238, %231 : vector<18x36xf32>
    %240 = arith.addf %229, %239 : vector<18x36xf32>
    %c0_27 = arith.constant 0 : index
    %c0_28 = arith.constant 0 : index
    %c2_29 = arith.constant 2 : index
    %c0_30 = arith.constant 0 : index
    %241 = vector.load %arg2[%c0_27, %c0_28, %c2_29, %c0_30] : memref<1x3x20x38xf32, #tpu.memory_space<vmem>>, vector<1x1x18x36xf32>
    %242 = vector.shape_cast %241 : vector<1x1x18x36xf32> to vector<18x36xf32>
    %243 = vector.broadcast %9 : f32 to vector<18x36xf32>
    %244 = arith.mulf %243, %242 : vector<18x36xf32>
    %245 = arith.addf %234, %244 : vector<18x36xf32>
    %246 = vector.broadcast %36 : f32 to vector<18x36xf32>
    %247 = arith.mulf %246, %242 : vector<18x36xf32>
    %248 = arith.addf %237, %247 : vector<18x36xf32>
    %249 = vector.broadcast %63 : f32 to vector<18x36xf32>
    %250 = arith.mulf %249, %242 : vector<18x36xf32>
    %251 = arith.addf %240, %250 : vector<18x36xf32>
    %c0_31 = arith.constant 0 : index
    %c0_32 = arith.constant 0 : index
    %c2_33 = arith.constant 2 : index
    %c1_34 = arith.constant 1 : index
    %252 = vector.load %arg2[%c0_31, %c0_32, %c2_33, %c1_34] : memref<1x3x20x38xf32, #tpu.memory_space<vmem>>, vector<1x1x18x36xf32>
    %253 = vector.shape_cast %252 : vector<1x1x18x36xf32> to vector<18x36xf32>
    %254 = vector.broadcast %10 : f32 to vector<18x36xf32>
    %255 = arith.mulf %254, %253 : vector<18x36xf32>
    %256 = arith.addf %245, %255 : vector<18x36xf32>
    %257 = vector.broadcast %37 : f32 to vector<18x36xf32>
    %258 = arith.mulf %257, %253 : vector<18x36xf32>
    %259 = arith.addf %248, %258 : vector<18x36xf32>
    %260 = vector.broadcast %64 : f32 to vector<18x36xf32>
    %261 = arith.mulf %260, %253 : vector<18x36xf32>
    %262 = arith.addf %251, %261 : vector<18x36xf32>
    %c0_35 = arith.constant 0 : index
    %c0_36 = arith.constant 0 : index
    %c2_37 = arith.constant 2 : index
    %c2_38 = arith.constant 2 : index
    %263 = vector.load %arg2[%c0_35, %c0_36, %c2_37, %c2_38] : memref<1x3x20x38xf32, #tpu.memory_space<vmem>>, vector<1x1x18x36xf32>
    %264 = vector.shape_cast %263 : vector<1x1x18x36xf32> to vector<18x36xf32>
    %265 = vector.broadcast %11 : f32 to vector<18x36xf32>
    %266 = arith.mulf %265, %264 : vector<18x36xf32>
    %267 = arith.addf %256, %266 : vector<18x36xf32>
    %268 = vector.broadcast %38 : f32 to vector<18x36xf32>
    %269 = arith.mulf %268, %264 : vector<18x36xf32>
    %270 = arith.addf %259, %269 : vector<18x36xf32>
    %271 = vector.broadcast %65 : f32 to vector<18x36xf32>
    %272 = arith.mulf %271, %264 : vector<18x36xf32>
    %273 = arith.addf %262, %272 : vector<18x36xf32>
    %c0_39 = arith.constant 0 : index
    %c1_40 = arith.constant 1 : index
    %c0_41 = arith.constant 0 : index
    %c0_42 = arith.constant 0 : index
    %274 = vector.load %arg2[%c0_39, %c1_40, %c0_41, %c0_42] : memref<1x3x20x38xf32, #tpu.memory_space<vmem>>, vector<1x1x18x36xf32>
    %275 = vector.shape_cast %274 : vector<1x1x18x36xf32> to vector<18x36xf32>
    %276 = vector.broadcast %12 : f32 to vector<18x36xf32>
    %277 = arith.mulf %276, %275 : vector<18x36xf32>
    %278 = arith.addf %267, %277 : vector<18x36xf32>
    %279 = vector.broadcast %39 : f32 to vector<18x36xf32>
    %280 = arith.mulf %279, %275 : vector<18x36xf32>
    %281 = arith.addf %270, %280 : vector<18x36xf32>
    %282 = vector.broadcast %66 : f32 to vector<18x36xf32>
    %283 = arith.mulf %282, %275 : vector<18x36xf32>
    %284 = arith.addf %273, %283 : vector<18x36xf32>
    %c0_43 = arith.constant 0 : index
    %c1_44 = arith.constant 1 : index
    %c0_45 = arith.constant 0 : index
    %c1_46 = arith.constant 1 : index
    %285 = vector.load %arg2[%c0_43, %c1_44, %c0_45, %c1_46] : memref<1x3x20x38xf32, #tpu.memory_space<vmem>>, vector<1x1x18x36xf32>
    %286 = vector.shape_cast %285 : vector<1x1x18x36xf32> to vector<18x36xf32>
    %287 = vector.broadcast %13 : f32 to vector<18x36xf32>
    %288 = arith.mulf %287, %286 : vector<18x36xf32>
    %289 = arith.addf %278, %288 : vector<18x36xf32>
    %290 = vector.broadcast %40 : f32 to vector<18x36xf32>
    %291 = arith.mulf %290, %286 : vector<18x36xf32>
    %292 = arith.addf %281, %291 : vector<18x36xf32>
    %293 = vector.broadcast %67 : f32 to vector<18x36xf32>
    %294 = arith.mulf %293, %286 : vector<18x36xf32>
    %295 = arith.addf %284, %294 : vector<18x36xf32>
    %c0_47 = arith.constant 0 : index
    %c1_48 = arith.constant 1 : index
    %c0_49 = arith.constant 0 : index
    %c2_50 = arith.constant 2 : index
    %296 = vector.load %arg2[%c0_47, %c1_48, %c0_49, %c2_50] : memref<1x3x20x38xf32, #tpu.memory_space<vmem>>, vector<1x1x18x36xf32>
    %297 = vector.shape_cast %296 : vector<1x1x18x36xf32> to vector<18x36xf32>
    %298 = vector.broadcast %14 : f32 to vector<18x36xf32>
    %299 = arith.mulf %298, %297 : vector<18x36xf32>
    %300 = arith.addf %289, %299 : vector<18x36xf32>
    %301 = vector.broadcast %41 : f32 to vector<18x36xf32>
    %302 = arith.mulf %301, %297 : vector<18x36xf32>
    %303 = arith.addf %292, %302 : vector<18x36xf32>
    %304 = vector.broadcast %68 : f32 to vector<18x36xf32>
    %305 = arith.mulf %304, %297 : vector<18x36xf32>
    %306 = arith.addf %295, %305 : vector<18x36xf32>
    %c0_51 = arith.constant 0 : index
    %c1_52 = arith.constant 1 : index
    %c1_53 = arith.constant 1 : index
    %c0_54 = arith.constant 0 : index
    %307 = vector.load %arg2[%c0_51, %c1_52, %c1_53, %c0_54] : memref<1x3x20x38xf32, #tpu.memory_space<vmem>>, vector<1x1x18x36xf32>
    %308 = vector.shape_cast %307 : vector<1x1x18x36xf32> to vector<18x36xf32>
    %309 = vector.broadcast %15 : f32 to vector<18x36xf32>
    %310 = arith.mulf %309, %308 : vector<18x36xf32>
    %311 = arith.addf %300, %310 : vector<18x36xf32>
    %312 = vector.broadcast %42 : f32 to vector<18x36xf32>
    %313 = arith.mulf %312, %308 : vector<18x36xf32>
    %314 = arith.addf %303, %313 : vector<18x36xf32>
    %315 = vector.broadcast %69 : f32 to vector<18x36xf32>
    %316 = arith.mulf %315, %308 : vector<18x36xf32>
    %317 = arith.addf %306, %316 : vector<18x36xf32>
    %c0_55 = arith.constant 0 : index
    %c1_56 = arith.constant 1 : index
    %c1_57 = arith.constant 1 : index
    %c1_58 = arith.constant 1 : index
    %318 = vector.load %arg2[%c0_55, %c1_56, %c1_57, %c1_58] : memref<1x3x20x38xf32, #tpu.memory_space<vmem>>, vector<1x1x18x36xf32>
    %319 = vector.shape_cast %318 : vector<1x1x18x36xf32> to vector<18x36xf32>
    %320 = vector.broadcast %16 : f32 to vector<18x36xf32>
    %321 = arith.mulf %320, %319 : vector<18x36xf32>
    %322 = arith.addf %311, %321 : vector<18x36xf32>
    %323 = vector.broadcast %43 : f32 to vector<18x36xf32>
    %324 = arith.mulf %323, %319 : vector<18x36xf32>
    %325 = arith.addf %314, %324 : vector<18x36xf32>
    %326 = vector.broadcast %70 : f32 to vector<18x36xf32>
    %327 = arith.mulf %326, %319 : vector<18x36xf32>
    %328 = arith.addf %317, %327 : vector<18x36xf32>
    %c0_59 = arith.constant 0 : index
    %c1_60 = arith.constant 1 : index
    %c1_61 = arith.constant 1 : index
    %c2_62 = arith.constant 2 : index
    %329 = vector.load %arg2[%c0_59, %c1_60, %c1_61, %c2_62] : memref<1x3x20x38xf32, #tpu.memory_space<vmem>>, vector<1x1x18x36xf32>
    %330 = vector.shape_cast %329 : vector<1x1x18x36xf32> to vector<18x36xf32>
    %331 = vector.broadcast %17 : f32 to vector<18x36xf32>
    %332 = arith.mulf %331, %330 : vector<18x36xf32>
    %333 = arith.addf %322, %332 : vector<18x36xf32>
    %334 = vector.broadcast %44 : f32 to vector<18x36xf32>
    %335 = arith.mulf %334, %330 : vector<18x36xf32>
    %336 = arith.addf %325, %335 : vector<18x36xf32>
    %337 = vector.broadcast %71 : f32 to vector<18x36xf32>
    %338 = arith.mulf %337, %330 : vector<18x36xf32>
    %339 = arith.addf %328, %338 : vector<18x36xf32>
    %c0_63 = arith.constant 0 : index
    %c1_64 = arith.constant 1 : index
    %c2_65 = arith.constant 2 : index
    %c0_66 = arith.constant 0 : index
    %340 = vector.load %arg2[%c0_63, %c1_64, %c2_65, %c0_66] : memref<1x3x20x38xf32, #tpu.memory_space<vmem>>, vector<1x1x18x36xf32>
    %341 = vector.shape_cast %340 : vector<1x1x18x36xf32> to vector<18x36xf32>
    %342 = vector.broadcast %18 : f32 to vector<18x36xf32>
    %343 = arith.mulf %342, %341 : vector<18x36xf32>
    %344 = arith.addf %333, %343 : vector<18x36xf32>
    %345 = vector.broadcast %45 : f32 to vector<18x36xf32>
    %346 = arith.mulf %345, %341 : vector<18x36xf32>
    %347 = arith.addf %336, %346 : vector<18x36xf32>
    %348 = vector.broadcast %72 : f32 to vector<18x36xf32>
    %349 = arith.mulf %348, %341 : vector<18x36xf32>
    %350 = arith.addf %339, %349 : vector<18x36xf32>
    %c0_67 = arith.constant 0 : index
    %c1_68 = arith.constant 1 : index
    %c2_69 = arith.constant 2 : index
    %c1_70 = arith.constant 1 : index
    %351 = vector.load %arg2[%c0_67, %c1_68, %c2_69, %c1_70] : memref<1x3x20x38xf32, #tpu.memory_space<vmem>>, vector<1x1x18x36xf32>
    %352 = vector.shape_cast %351 : vector<1x1x18x36xf32> to vector<18x36xf32>
    %353 = vector.broadcast %19 : f32 to vector<18x36xf32>
    %354 = arith.mulf %353, %352 : vector<18x36xf32>
    %355 = arith.addf %344, %354 : vector<18x36xf32>
    %356 = vector.broadcast %46 : f32 to vector<18x36xf32>
    %357 = arith.mulf %356, %352 : vector<18x36xf32>
    %358 = arith.addf %347, %357 : vector<18x36xf32>
    %359 = vector.broadcast %73 : f32 to vector<18x36xf32>
    %360 = arith.mulf %359, %352 : vector<18x36xf32>
    %361 = arith.addf %350, %360 : vector<18x36xf32>
    %c0_71 = arith.constant 0 : index
    %c1_72 = arith.constant 1 : index
    %c2_73 = arith.constant 2 : index
    %c2_74 = arith.constant 2 : index
    %362 = vector.load %arg2[%c0_71, %c1_72, %c2_73, %c2_74] : memref<1x3x20x38xf32, #tpu.memory_space<vmem>>, vector<1x1x18x36xf32>
    %363 = vector.shape_cast %362 : vector<1x1x18x36xf32> to vector<18x36xf32>
    %364 = vector.broadcast %20 : f32 to vector<18x36xf32>
    %365 = arith.mulf %364, %363 : vector<18x36xf32>
    %366 = arith.addf %355, %365 : vector<18x36xf32>
    %367 = vector.broadcast %47 : f32 to vector<18x36xf32>
    %368 = arith.mulf %367, %363 : vector<18x36xf32>
    %369 = arith.addf %358, %368 : vector<18x36xf32>
    %370 = vector.broadcast %74 : f32 to vector<18x36xf32>
    %371 = arith.mulf %370, %363 : vector<18x36xf32>
    %372 = arith.addf %361, %371 : vector<18x36xf32>
    %c0_75 = arith.constant 0 : index
    %c2_76 = arith.constant 2 : index
    %c0_77 = arith.constant 0 : index
    %c0_78 = arith.constant 0 : index
    %373 = vector.load %arg2[%c0_75, %c2_76, %c0_77, %c0_78] : memref<1x3x20x38xf32, #tpu.memory_space<vmem>>, vector<1x1x18x36xf32>
    %374 = vector.shape_cast %373 : vector<1x1x18x36xf32> to vector<18x36xf32>
    %375 = vector.broadcast %21 : f32 to vector<18x36xf32>
    %376 = arith.mulf %375, %374 : vector<18x36xf32>
    %377 = arith.addf %366, %376 : vector<18x36xf32>
    %378 = vector.broadcast %48 : f32 to vector<18x36xf32>
    %379 = arith.mulf %378, %374 : vector<18x36xf32>
    %380 = arith.addf %369, %379 : vector<18x36xf32>
    %381 = vector.broadcast %75 : f32 to vector<18x36xf32>
    %382 = arith.mulf %381, %374 : vector<18x36xf32>
    %383 = arith.addf %372, %382 : vector<18x36xf32>
    %c0_79 = arith.constant 0 : index
    %c2_80 = arith.constant 2 : index
    %c0_81 = arith.constant 0 : index
    %c1_82 = arith.constant 1 : index
    %384 = vector.load %arg2[%c0_79, %c2_80, %c0_81, %c1_82] : memref<1x3x20x38xf32, #tpu.memory_space<vmem>>, vector<1x1x18x36xf32>
    %385 = vector.shape_cast %384 : vector<1x1x18x36xf32> to vector<18x36xf32>
    %386 = vector.broadcast %22 : f32 to vector<18x36xf32>
    %387 = arith.mulf %386, %385 : vector<18x36xf32>
    %388 = arith.addf %377, %387 : vector<18x36xf32>
    %389 = vector.broadcast %49 : f32 to vector<18x36xf32>
    %390 = arith.mulf %389, %385 : vector<18x36xf32>
    %391 = arith.addf %380, %390 : vector<18x36xf32>
    %392 = vector.broadcast %76 : f32 to vector<18x36xf32>
    %393 = arith.mulf %392, %385 : vector<18x36xf32>
    %394 = arith.addf %383, %393 : vector<18x36xf32>
    %c0_83 = arith.constant 0 : index
    %c2_84 = arith.constant 2 : index
    %c0_85 = arith.constant 0 : index
    %c2_86 = arith.constant 2 : index
    %395 = vector.load %arg2[%c0_83, %c2_84, %c0_85, %c2_86] : memref<1x3x20x38xf32, #tpu.memory_space<vmem>>, vector<1x1x18x36xf32>
    %396 = vector.shape_cast %395 : vector<1x1x18x36xf32> to vector<18x36xf32>
    %397 = vector.broadcast %23 : f32 to vector<18x36xf32>
    %398 = arith.mulf %397, %396 : vector<18x36xf32>
    %399 = arith.addf %388, %398 : vector<18x36xf32>
    %400 = vector.broadcast %50 : f32 to vector<18x36xf32>
    %401 = arith.mulf %400, %396 : vector<18x36xf32>
    %402 = arith.addf %391, %401 : vector<18x36xf32>
    %403 = vector.broadcast %77 : f32 to vector<18x36xf32>
    %404 = arith.mulf %403, %396 : vector<18x36xf32>
    %405 = arith.addf %394, %404 : vector<18x36xf32>
    %c0_87 = arith.constant 0 : index
    %c2_88 = arith.constant 2 : index
    %c1_89 = arith.constant 1 : index
    %c0_90 = arith.constant 0 : index
    %406 = vector.load %arg2[%c0_87, %c2_88, %c1_89, %c0_90] : memref<1x3x20x38xf32, #tpu.memory_space<vmem>>, vector<1x1x18x36xf32>
    %407 = vector.shape_cast %406 : vector<1x1x18x36xf32> to vector<18x36xf32>
    %408 = vector.broadcast %24 : f32 to vector<18x36xf32>
    %409 = arith.mulf %408, %407 : vector<18x36xf32>
    %410 = arith.addf %399, %409 : vector<18x36xf32>
    %411 = vector.broadcast %51 : f32 to vector<18x36xf32>
    %412 = arith.mulf %411, %407 : vector<18x36xf32>
    %413 = arith.addf %402, %412 : vector<18x36xf32>
    %414 = vector.broadcast %78 : f32 to vector<18x36xf32>
    %415 = arith.mulf %414, %407 : vector<18x36xf32>
    %416 = arith.addf %405, %415 : vector<18x36xf32>
    %c0_91 = arith.constant 0 : index
    %c2_92 = arith.constant 2 : index
    %c1_93 = arith.constant 1 : index
    %c1_94 = arith.constant 1 : index
    %417 = vector.load %arg2[%c0_91, %c2_92, %c1_93, %c1_94] : memref<1x3x20x38xf32, #tpu.memory_space<vmem>>, vector<1x1x18x36xf32>
    %418 = vector.shape_cast %417 : vector<1x1x18x36xf32> to vector<18x36xf32>
    %419 = vector.broadcast %25 : f32 to vector<18x36xf32>
    %420 = arith.mulf %419, %418 : vector<18x36xf32>
    %421 = arith.addf %410, %420 : vector<18x36xf32>
    %422 = vector.broadcast %52 : f32 to vector<18x36xf32>
    %423 = arith.mulf %422, %418 : vector<18x36xf32>
    %424 = arith.addf %413, %423 : vector<18x36xf32>
    %425 = vector.broadcast %79 : f32 to vector<18x36xf32>
    %426 = arith.mulf %425, %418 : vector<18x36xf32>
    %427 = arith.addf %416, %426 : vector<18x36xf32>
    %c0_95 = arith.constant 0 : index
    %c2_96 = arith.constant 2 : index
    %c1_97 = arith.constant 1 : index
    %c2_98 = arith.constant 2 : index
    %428 = vector.load %arg2[%c0_95, %c2_96, %c1_97, %c2_98] : memref<1x3x20x38xf32, #tpu.memory_space<vmem>>, vector<1x1x18x36xf32>
    %429 = vector.shape_cast %428 : vector<1x1x18x36xf32> to vector<18x36xf32>
    %430 = vector.broadcast %26 : f32 to vector<18x36xf32>
    %431 = arith.mulf %430, %429 : vector<18x36xf32>
    %432 = arith.addf %421, %431 : vector<18x36xf32>
    %433 = vector.broadcast %53 : f32 to vector<18x36xf32>
    %434 = arith.mulf %433, %429 : vector<18x36xf32>
    %435 = arith.addf %424, %434 : vector<18x36xf32>
    %436 = vector.broadcast %80 : f32 to vector<18x36xf32>
    %437 = arith.mulf %436, %429 : vector<18x36xf32>
    %438 = arith.addf %427, %437 : vector<18x36xf32>
    %c0_99 = arith.constant 0 : index
    %c2_100 = arith.constant 2 : index
    %c2_101 = arith.constant 2 : index
    %c0_102 = arith.constant 0 : index
    %439 = vector.load %arg2[%c0_99, %c2_100, %c2_101, %c0_102] : memref<1x3x20x38xf32, #tpu.memory_space<vmem>>, vector<1x1x18x36xf32>
    %440 = vector.shape_cast %439 : vector<1x1x18x36xf32> to vector<18x36xf32>
    %441 = vector.broadcast %27 : f32 to vector<18x36xf32>
    %442 = arith.mulf %441, %440 : vector<18x36xf32>
    %443 = arith.addf %432, %442 : vector<18x36xf32>
    %444 = vector.broadcast %54 : f32 to vector<18x36xf32>
    %445 = arith.mulf %444, %440 : vector<18x36xf32>
    %446 = arith.addf %435, %445 : vector<18x36xf32>
    %447 = vector.broadcast %81 : f32 to vector<18x36xf32>
    %448 = arith.mulf %447, %440 : vector<18x36xf32>
    %449 = arith.addf %438, %448 : vector<18x36xf32>
    %c0_103 = arith.constant 0 : index
    %c2_104 = arith.constant 2 : index
    %c2_105 = arith.constant 2 : index
    %c1_106 = arith.constant 1 : index
    %450 = vector.load %arg2[%c0_103, %c2_104, %c2_105, %c1_106] : memref<1x3x20x38xf32, #tpu.memory_space<vmem>>, vector<1x1x18x36xf32>
    %451 = vector.shape_cast %450 : vector<1x1x18x36xf32> to vector<18x36xf32>
    %452 = vector.broadcast %28 : f32 to vector<18x36xf32>
    %453 = arith.mulf %452, %451 : vector<18x36xf32>
    %454 = arith.addf %443, %453 : vector<18x36xf32>
    %455 = vector.broadcast %55 : f32 to vector<18x36xf32>
    %456 = arith.mulf %455, %451 : vector<18x36xf32>
    %457 = arith.addf %446, %456 : vector<18x36xf32>
    %458 = vector.broadcast %82 : f32 to vector<18x36xf32>
    %459 = arith.mulf %458, %451 : vector<18x36xf32>
    %460 = arith.addf %449, %459 : vector<18x36xf32>
    %c0_107 = arith.constant 0 : index
    %c2_108 = arith.constant 2 : index
    %c2_109 = arith.constant 2 : index
    %c2_110 = arith.constant 2 : index
    %461 = vector.load %arg2[%c0_107, %c2_108, %c2_109, %c2_110] : memref<1x3x20x38xf32, #tpu.memory_space<vmem>>, vector<1x1x18x36xf32>
    %462 = vector.shape_cast %461 : vector<1x1x18x36xf32> to vector<18x36xf32>
    %463 = vector.broadcast %29 : f32 to vector<18x36xf32>
    %464 = arith.mulf %463, %462 : vector<18x36xf32>
    %465 = arith.addf %454, %464 : vector<18x36xf32>
    %466 = vector.broadcast %56 : f32 to vector<18x36xf32>
    %467 = arith.mulf %466, %462 : vector<18x36xf32>
    %468 = arith.addf %457, %467 : vector<18x36xf32>
    %469 = vector.broadcast %83 : f32 to vector<18x36xf32>
    %470 = arith.mulf %469, %462 : vector<18x36xf32>
    %471 = arith.addf %460, %470 : vector<18x36xf32>
    %cst = arith.constant 0.000000e+00 : f32
    %472 = vector.broadcast %cst : f32 to vector<18x36xf32>
    %473 = arith.maximumf %465, %472 : vector<18x36xf32>
    %474 = arith.mulf %473, %171 : vector<18x36xf32>
    %c0_111 = arith.constant 0 : index
    %c1_112 = arith.constant 1 : index
    %c1_113 = arith.constant 1 : index
    %475 = vector.load %arg5[%c0_111, %c1_112, %c1_113] : memref<3x20x38xf32, #tpu.memory_space<vmem>>, vector<1x18x36xf32>
    %476 = vector.shape_cast %475 : vector<1x18x36xf32> to vector<18x36xf32>
    %477 = vector.shape_cast %474 : vector<18x36xf32> to vector<1x18x36xf32>
    tpu.vector_store %arg5[%c0_111, %c1_112, %c1_113], %477 {strides = array<i32>} : memref<3x20x38xf32, #tpu.memory_space<vmem>>, vector<1x18x36xf32>,
    %cst_114 = arith.constant 0.000000e+00 : f32
    %478 = vector.broadcast %cst_114 : f32 to vector<18x36xf32>
    %479 = arith.maximumf %468, %478 : vector<18x36xf32>
    %480 = arith.mulf %479, %171 : vector<18x36xf32>
    %c1_115 = arith.constant 1 : index
    %c1_116 = arith.constant 1 : index
    %c1_117 = arith.constant 1 : index
    %481 = vector.load %arg5[%c1_115, %c1_116, %c1_117] : memref<3x20x38xf32, #tpu.memory_space<vmem>>, vector<1x18x36xf32>
    %482 = vector.shape_cast %481 : vector<1x18x36xf32> to vector<18x36xf32>
    %483 = vector.shape_cast %480 : vector<18x36xf32> to vector<1x18x36xf32>
    tpu.vector_store %arg5[%c1_115, %c1_116, %c1_117], %483 {strides = array<i32>} : memref<3x20x38xf32, #tpu.memory_space<vmem>>, vector<1x18x36xf32>,
    %cst_118 = arith.constant 0.000000e+00 : f32
    %484 = vector.broadcast %cst_118 : f32 to vector<18x36xf32>
    %485 = arith.maximumf %471, %484 : vector<18x36xf32>
    %486 = arith.mulf %485, %171 : vector<18x36xf32>
    %c2_119 = arith.constant 2 : index
    %c1_120 = arith.constant 1 : index
    %c1_121 = arith.constant 1 : index
    %487 = vector.load %arg5[%c2_119, %c1_120, %c1_121] : memref<3x20x38xf32, #tpu.memory_space<vmem>>, vector<1x18x36xf32>
    %488 = vector.shape_cast %487 : vector<1x18x36xf32> to vector<18x36xf32>
    %489 = vector.shape_cast %486 : vector<18x36xf32> to vector<1x18x36xf32>
    tpu.vector_store %arg5[%c2_119, %c1_120, %c1_121], %489 {strides = array<i32>} : memref<3x20x38xf32, #tpu.memory_space<vmem>>, vector<1x18x36xf32>,
    %490 = vector.broadcast %168 : f32 to vector<18x36xf32>
    %491 = vector.broadcast %169 : f32 to vector<18x36xf32>
    %492 = vector.broadcast %170 : f32 to vector<18x36xf32>
    %c0_122 = arith.constant 0 : index
    %c0_123 = arith.constant 0 : index
    %c0_124 = arith.constant 0 : index
    %493 = vector.load %arg5[%c0_122, %c0_123, %c0_124] : memref<3x20x38xf32, #tpu.memory_space<vmem>>, vector<1x18x36xf32>
    %494 = vector.shape_cast %493 : vector<1x18x36xf32> to vector<18x36xf32>
    %495 = vector.broadcast %87 : f32 to vector<18x36xf32>
    %496 = arith.mulf %495, %494 : vector<18x36xf32>
    %497 = arith.addf %490, %496 : vector<18x36xf32>
    %498 = vector.broadcast %114 : f32 to vector<18x36xf32>
    %499 = arith.mulf %498, %494 : vector<18x36xf32>
    %500 = arith.addf %491, %499 : vector<18x36xf32>
    %501 = vector.broadcast %141 : f32 to vector<18x36xf32>
    %502 = arith.mulf %501, %494 : vector<18x36xf32>
    %503 = arith.addf %492, %502 : vector<18x36xf32>
    %c0_125 = arith.constant 0 : index
    %c0_126 = arith.constant 0 : index
    %c1_127 = arith.constant 1 : index
    %504 = vector.load %arg5[%c0_125, %c0_126, %c1_127] : memref<3x20x38xf32, #tpu.memory_space<vmem>>, vector<1x18x36xf32>
    %505 = vector.shape_cast %504 : vector<1x18x36xf32> to vector<18x36xf32>
    %506 = vector.broadcast %88 : f32 to vector<18x36xf32>
    %507 = arith.mulf %506, %505 : vector<18x36xf32>
    %508 = arith.addf %497, %507 : vector<18x36xf32>
    %509 = vector.broadcast %115 : f32 to vector<18x36xf32>
    %510 = arith.mulf %509, %505 : vector<18x36xf32>
    %511 = arith.addf %500, %510 : vector<18x36xf32>
    %512 = vector.broadcast %142 : f32 to vector<18x36xf32>
    %513 = arith.mulf %512, %505 : vector<18x36xf32>
    %514 = arith.addf %503, %513 : vector<18x36xf32>
    %c0_128 = arith.constant 0 : index
    %c0_129 = arith.constant 0 : index
    %c2_130 = arith.constant 2 : index
    %515 = vector.load %arg5[%c0_128, %c0_129, %c2_130] : memref<3x20x38xf32, #tpu.memory_space<vmem>>, vector<1x18x36xf32>
    %516 = vector.shape_cast %515 : vector<1x18x36xf32> to vector<18x36xf32>
    %517 = vector.broadcast %89 : f32 to vector<18x36xf32>
    %518 = arith.mulf %517, %516 : vector<18x36xf32>
    %519 = arith.addf %508, %518 : vector<18x36xf32>
    %520 = vector.broadcast %116 : f32 to vector<18x36xf32>
    %521 = arith.mulf %520, %516 : vector<18x36xf32>
    %522 = arith.addf %511, %521 : vector<18x36xf32>
    %523 = vector.broadcast %143 : f32 to vector<18x36xf32>
    %524 = arith.mulf %523, %516 : vector<18x36xf32>
    %525 = arith.addf %514, %524 : vector<18x36xf32>
    %c0_131 = arith.constant 0 : index
    %c1_132 = arith.constant 1 : index
    %c0_133 = arith.constant 0 : index
    %526 = vector.load %arg5[%c0_131, %c1_132, %c0_133] : memref<3x20x38xf32, #tpu.memory_space<vmem>>, vector<1x18x36xf32>
    %527 = vector.shape_cast %526 : vector<1x18x36xf32> to vector<18x36xf32>
    %528 = vector.broadcast %90 : f32 to vector<18x36xf32>
    %529 = arith.mulf %528, %527 : vector<18x36xf32>
    %530 = arith.addf %519, %529 : vector<18x36xf32>
    %531 = vector.broadcast %117 : f32 to vector<18x36xf32>
    %532 = arith.mulf %531, %527 : vector<18x36xf32>
    %533 = arith.addf %522, %532 : vector<18x36xf32>
    %534 = vector.broadcast %144 : f32 to vector<18x36xf32>
    %535 = arith.mulf %534, %527 : vector<18x36xf32>
    %536 = arith.addf %525, %535 : vector<18x36xf32>
    %c0_134 = arith.constant 0 : index
    %c1_135 = arith.constant 1 : index
    %c1_136 = arith.constant 1 : index
    %537 = vector.load %arg5[%c0_134, %c1_135, %c1_136] : memref<3x20x38xf32, #tpu.memory_space<vmem>>, vector<1x18x36xf32>
    %538 = vector.shape_cast %537 : vector<1x18x36xf32> to vector<18x36xf32>
    %539 = vector.broadcast %91 : f32 to vector<18x36xf32>
    %540 = arith.mulf %539, %538 : vector<18x36xf32>
    %541 = arith.addf %530, %540 : vector<18x36xf32>
    %542 = vector.broadcast %118 : f32 to vector<18x36xf32>
    %543 = arith.mulf %542, %538 : vector<18x36xf32>
    %544 = arith.addf %533, %543 : vector<18x36xf32>
    %545 = vector.broadcast %145 : f32 to vector<18x36xf32>
    %546 = arith.mulf %545, %538 : vector<18x36xf32>
    %547 = arith.addf %536, %546 : vector<18x36xf32>
    %c0_137 = arith.constant 0 : index
    %c1_138 = arith.constant 1 : index
    %c2_139 = arith.constant 2 : index
    %548 = vector.load %arg5[%c0_137, %c1_138, %c2_139] : memref<3x20x38xf32, #tpu.memory_space<vmem>>, vector<1x18x36xf32>
    %549 = vector.shape_cast %548 : vector<1x18x36xf32> to vector<18x36xf32>
    %550 = vector.broadcast %92 : f32 to vector<18x36xf32>
    %551 = arith.mulf %550, %549 : vector<18x36xf32>
    %552 = arith.addf %541, %551 : vector<18x36xf32>
    %553 = vector.broadcast %119 : f32 to vector<18x36xf32>
    %554 = arith.mulf %553, %549 : vector<18x36xf32>
    %555 = arith.addf %544, %554 : vector<18x36xf32>
    %556 = vector.broadcast %146 : f32 to vector<18x36xf32>
    %557 = arith.mulf %556, %549 : vector<18x36xf32>
    %558 = arith.addf %547, %557 : vector<18x36xf32>
    %c0_140 = arith.constant 0 : index
    %c2_141 = arith.constant 2 : index
    %c0_142 = arith.constant 0 : index
    %559 = vector.load %arg5[%c0_140, %c2_141, %c0_142] : memref<3x20x38xf32, #tpu.memory_space<vmem>>, vector<1x18x36xf32>
    %560 = vector.shape_cast %559 : vector<1x18x36xf32> to vector<18x36xf32>
    %561 = vector.broadcast %93 : f32 to vector<18x36xf32>
    %562 = arith.mulf %561, %560 : vector<18x36xf32>
    %563 = arith.addf %552, %562 : vector<18x36xf32>
    %564 = vector.broadcast %120 : f32 to vector<18x36xf32>
    %565 = arith.mulf %564, %560 : vector<18x36xf32>
    %566 = arith.addf %555, %565 : vector<18x36xf32>
    %567 = vector.broadcast %147 : f32 to vector<18x36xf32>
    %568 = arith.mulf %567, %560 : vector<18x36xf32>
    %569 = arith.addf %558, %568 : vector<18x36xf32>
    %c0_143 = arith.constant 0 : index
    %c2_144 = arith.constant 2 : index
    %c1_145 = arith.constant 1 : index
    %570 = vector.load %arg5[%c0_143, %c2_144, %c1_145] : memref<3x20x38xf32, #tpu.memory_space<vmem>>, vector<1x18x36xf32>
    %571 = vector.shape_cast %570 : vector<1x18x36xf32> to vector<18x36xf32>
    %572 = vector.broadcast %94 : f32 to vector<18x36xf32>
    %573 = arith.mulf %572, %571 : vector<18x36xf32>
    %574 = arith.addf %563, %573 : vector<18x36xf32>
    %575 = vector.broadcast %121 : f32 to vector<18x36xf32>
    %576 = arith.mulf %575, %571 : vector<18x36xf32>
    %577 = arith.addf %566, %576 : vector<18x36xf32>
    %578 = vector.broadcast %148 : f32 to vector<18x36xf32>
    %579 = arith.mulf %578, %571 : vector<18x36xf32>
    %580 = arith.addf %569, %579 : vector<18x36xf32>
    %c0_146 = arith.constant 0 : index
    %c2_147 = arith.constant 2 : index
    %c2_148 = arith.constant 2 : index
    %581 = vector.load %arg5[%c0_146, %c2_147, %c2_148] : memref<3x20x38xf32, #tpu.memory_space<vmem>>, vector<1x18x36xf32>
    %582 = vector.shape_cast %581 : vector<1x18x36xf32> to vector<18x36xf32>
    %583 = vector.broadcast %95 : f32 to vector<18x36xf32>
    %584 = arith.mulf %583, %582 : vector<18x36xf32>
    %585 = arith.addf %574, %584 : vector<18x36xf32>
    %586 = vector.broadcast %122 : f32 to vector<18x36xf32>
    %587 = arith.mulf %586, %582 : vector<18x36xf32>
    %588 = arith.addf %577, %587 : vector<18x36xf32>
    %589 = vector.broadcast %149 : f32 to vector<18x36xf32>
    %590 = arith.mulf %589, %582 : vector<18x36xf32>
    %591 = arith.addf %580, %590 : vector<18x36xf32>
    %c1_149 = arith.constant 1 : index
    %c0_150 = arith.constant 0 : index
    %c0_151 = arith.constant 0 : index
    %592 = vector.load %arg5[%c1_149, %c0_150, %c0_151] : memref<3x20x38xf32, #tpu.memory_space<vmem>>, vector<1x18x36xf32>
    %593 = vector.shape_cast %592 : vector<1x18x36xf32> to vector<18x36xf32>
    %594 = vector.broadcast %96 : f32 to vector<18x36xf32>
    %595 = arith.mulf %594, %593 : vector<18x36xf32>
    %596 = arith.addf %585, %595 : vector<18x36xf32>
    %597 = vector.broadcast %123 : f32 to vector<18x36xf32>
    %598 = arith.mulf %597, %593 : vector<18x36xf32>
    %599 = arith.addf %588, %598 : vector<18x36xf32>
    %600 = vector.broadcast %150 : f32 to vector<18x36xf32>
    %601 = arith.mulf %600, %593 : vector<18x36xf32>
    %602 = arith.addf %591, %601 : vector<18x36xf32>
    %c1_152 = arith.constant 1 : index
    %c0_153 = arith.constant 0 : index
    %c1_154 = arith.constant 1 : index
    %603 = vector.load %arg5[%c1_152, %c0_153, %c1_154] : memref<3x20x38xf32, #tpu.memory_space<vmem>>, vector<1x18x36xf32>
    %604 = vector.shape_cast %603 : vector<1x18x36xf32> to vector<18x36xf32>
    %605 = vector.broadcast %97 : f32 to vector<18x36xf32>
    %606 = arith.mulf %605, %604 : vector<18x36xf32>
    %607 = arith.addf %596, %606 : vector<18x36xf32>
    %608 = vector.broadcast %124 : f32 to vector<18x36xf32>
    %609 = arith.mulf %608, %604 : vector<18x36xf32>
    %610 = arith.addf %599, %609 : vector<18x36xf32>
    %611 = vector.broadcast %151 : f32 to vector<18x36xf32>
    %612 = arith.mulf %611, %604 : vector<18x36xf32>
    %613 = arith.addf %602, %612 : vector<18x36xf32>
    %c1_155 = arith.constant 1 : index
    %c0_156 = arith.constant 0 : index
    %c2_157 = arith.constant 2 : index
    %614 = vector.load %arg5[%c1_155, %c0_156, %c2_157] : memref<3x20x38xf32, #tpu.memory_space<vmem>>, vector<1x18x36xf32>
    %615 = vector.shape_cast %614 : vector<1x18x36xf32> to vector<18x36xf32>
    %616 = vector.broadcast %98 : f32 to vector<18x36xf32>
    %617 = arith.mulf %616, %615 : vector<18x36xf32>
    %618 = arith.addf %607, %617 : vector<18x36xf32>
    %619 = vector.broadcast %125 : f32 to vector<18x36xf32>
    %620 = arith.mulf %619, %615 : vector<18x36xf32>
    %621 = arith.addf %610, %620 : vector<18x36xf32>
    %622 = vector.broadcast %152 : f32 to vector<18x36xf32>
    %623 = arith.mulf %622, %615 : vector<18x36xf32>
    %624 = arith.addf %613, %623 : vector<18x36xf32>
    %c1_158 = arith.constant 1 : index
    %c1_159 = arith.constant 1 : index
    %c0_160 = arith.constant 0 : index
    %625 = vector.load %arg5[%c1_158, %c1_159, %c0_160] : memref<3x20x38xf32, #tpu.memory_space<vmem>>, vector<1x18x36xf32>
    %626 = vector.shape_cast %625 : vector<1x18x36xf32> to vector<18x36xf32>
    %627 = vector.broadcast %99 : f32 to vector<18x36xf32>
    %628 = arith.mulf %627, %626 : vector<18x36xf32>
    %629 = arith.addf %618, %628 : vector<18x36xf32>
    %630 = vector.broadcast %126 : f32 to vector<18x36xf32>
    %631 = arith.mulf %630, %626 : vector<18x36xf32>
    %632 = arith.addf %621, %631 : vector<18x36xf32>
    %633 = vector.broadcast %153 : f32 to vector<18x36xf32>
    %634 = arith.mulf %633, %626 : vector<18x36xf32>
    %635 = arith.addf %624, %634 : vector<18x36xf32>
    %c1_161 = arith.constant 1 : index
    %c1_162 = arith.constant 1 : index
    %c1_163 = arith.constant 1 : index
    %636 = vector.load %arg5[%c1_161, %c1_162, %c1_163] : memref<3x20x38xf32, #tpu.memory_space<vmem>>, vector<1x18x36xf32>
    %637 = vector.shape_cast %636 : vector<1x18x36xf32> to vector<18x36xf32>
    %638 = vector.broadcast %100 : f32 to vector<18x36xf32>
    %639 = arith.mulf %638, %637 : vector<18x36xf32>
    %640 = arith.addf %629, %639 : vector<18x36xf32>
    %641 = vector.broadcast %127 : f32 to vector<18x36xf32>
    %642 = arith.mulf %641, %637 : vector<18x36xf32>
    %643 = arith.addf %632, %642 : vector<18x36xf32>
    %644 = vector.broadcast %154 : f32 to vector<18x36xf32>
    %645 = arith.mulf %644, %637 : vector<18x36xf32>
    %646 = arith.addf %635, %645 : vector<18x36xf32>
    %c1_164 = arith.constant 1 : index
    %c1_165 = arith.constant 1 : index
    %c2_166 = arith.constant 2 : index
    %647 = vector.load %arg5[%c1_164, %c1_165, %c2_166] : memref<3x20x38xf32, #tpu.memory_space<vmem>>, vector<1x18x36xf32>
    %648 = vector.shape_cast %647 : vector<1x18x36xf32> to vector<18x36xf32>
    %649 = vector.broadcast %101 : f32 to vector<18x36xf32>
    %650 = arith.mulf %649, %648 : vector<18x36xf32>
    %651 = arith.addf %640, %650 : vector<18x36xf32>
    %652 = vector.broadcast %128 : f32 to vector<18x36xf32>
    %653 = arith.mulf %652, %648 : vector<18x36xf32>
    %654 = arith.addf %643, %653 : vector<18x36xf32>
    %655 = vector.broadcast %155 : f32 to vector<18x36xf32>
    %656 = arith.mulf %655, %648 : vector<18x36xf32>
    %657 = arith.addf %646, %656 : vector<18x36xf32>
    %c1_167 = arith.constant 1 : index
    %c2_168 = arith.constant 2 : index
    %c0_169 = arith.constant 0 : index
    %658 = vector.load %arg5[%c1_167, %c2_168, %c0_169] : memref<3x20x38xf32, #tpu.memory_space<vmem>>, vector<1x18x36xf32>
    %659 = vector.shape_cast %658 : vector<1x18x36xf32> to vector<18x36xf32>
    %660 = vector.broadcast %102 : f32 to vector<18x36xf32>
    %661 = arith.mulf %660, %659 : vector<18x36xf32>
    %662 = arith.addf %651, %661 : vector<18x36xf32>
    %663 = vector.broadcast %129 : f32 to vector<18x36xf32>
    %664 = arith.mulf %663, %659 : vector<18x36xf32>
    %665 = arith.addf %654, %664 : vector<18x36xf32>
    %666 = vector.broadcast %156 : f32 to vector<18x36xf32>
    %667 = arith.mulf %666, %659 : vector<18x36xf32>
    %668 = arith.addf %657, %667 : vector<18x36xf32>
    %c1_170 = arith.constant 1 : index
    %c2_171 = arith.constant 2 : index
    %c1_172 = arith.constant 1 : index
    %669 = vector.load %arg5[%c1_170, %c2_171, %c1_172] : memref<3x20x38xf32, #tpu.memory_space<vmem>>, vector<1x18x36xf32>
    %670 = vector.shape_cast %669 : vector<1x18x36xf32> to vector<18x36xf32>
    %671 = vector.broadcast %103 : f32 to vector<18x36xf32>
    %672 = arith.mulf %671, %670 : vector<18x36xf32>
    %673 = arith.addf %662, %672 : vector<18x36xf32>
    %674 = vector.broadcast %130 : f32 to vector<18x36xf32>
    %675 = arith.mulf %674, %670 : vector<18x36xf32>
    %676 = arith.addf %665, %675 : vector<18x36xf32>
    %677 = vector.broadcast %157 : f32 to vector<18x36xf32>
    %678 = arith.mulf %677, %670 : vector<18x36xf32>
    %679 = arith.addf %668, %678 : vector<18x36xf32>
    %c1_173 = arith.constant 1 : index
    %c2_174 = arith.constant 2 : index
    %c2_175 = arith.constant 2 : index
    %680 = vector.load %arg5[%c1_173, %c2_174, %c2_175] : memref<3x20x38xf32, #tpu.memory_space<vmem>>, vector<1x18x36xf32>
    %681 = vector.shape_cast %680 : vector<1x18x36xf32> to vector<18x36xf32>
    %682 = vector.broadcast %104 : f32 to vector<18x36xf32>
    %683 = arith.mulf %682, %681 : vector<18x36xf32>
    %684 = arith.addf %673, %683 : vector<18x36xf32>
    %685 = vector.broadcast %131 : f32 to vector<18x36xf32>
    %686 = arith.mulf %685, %681 : vector<18x36xf32>
    %687 = arith.addf %676, %686 : vector<18x36xf32>
    %688 = vector.broadcast %158 : f32 to vector<18x36xf32>
    %689 = arith.mulf %688, %681 : vector<18x36xf32>
    %690 = arith.addf %679, %689 : vector<18x36xf32>
    %c2_176 = arith.constant 2 : index
    %c0_177 = arith.constant 0 : index
    %c0_178 = arith.constant 0 : index
    %691 = vector.load %arg5[%c2_176, %c0_177, %c0_178] : memref<3x20x38xf32, #tpu.memory_space<vmem>>, vector<1x18x36xf32>
    %692 = vector.shape_cast %691 : vector<1x18x36xf32> to vector<18x36xf32>
    %693 = vector.broadcast %105 : f32 to vector<18x36xf32>
    %694 = arith.mulf %693, %692 : vector<18x36xf32>
    %695 = arith.addf %684, %694 : vector<18x36xf32>
    %696 = vector.broadcast %132 : f32 to vector<18x36xf32>
    %697 = arith.mulf %696, %692 : vector<18x36xf32>
    %698 = arith.addf %687, %697 : vector<18x36xf32>
    %699 = vector.broadcast %159 : f32 to vector<18x36xf32>
    %700 = arith.mulf %699, %692 : vector<18x36xf32>
    %701 = arith.addf %690, %700 : vector<18x36xf32>
    %c2_179 = arith.constant 2 : index
    %c0_180 = arith.constant 0 : index
    %c1_181 = arith.constant 1 : index
    %702 = vector.load %arg5[%c2_179, %c0_180, %c1_181] : memref<3x20x38xf32, #tpu.memory_space<vmem>>, vector<1x18x36xf32>
    %703 = vector.shape_cast %702 : vector<1x18x36xf32> to vector<18x36xf32>
    %704 = vector.broadcast %106 : f32 to vector<18x36xf32>
    %705 = arith.mulf %704, %703 : vector<18x36xf32>
    %706 = arith.addf %695, %705 : vector<18x36xf32>
    %707 = vector.broadcast %133 : f32 to vector<18x36xf32>
    %708 = arith.mulf %707, %703 : vector<18x36xf32>
    %709 = arith.addf %698, %708 : vector<18x36xf32>
    %710 = vector.broadcast %160 : f32 to vector<18x36xf32>
    %711 = arith.mulf %710, %703 : vector<18x36xf32>
    %712 = arith.addf %701, %711 : vector<18x36xf32>
    %c2_182 = arith.constant 2 : index
    %c0_183 = arith.constant 0 : index
    %c2_184 = arith.constant 2 : index
    %713 = vector.load %arg5[%c2_182, %c0_183, %c2_184] : memref<3x20x38xf32, #tpu.memory_space<vmem>>, vector<1x18x36xf32>
    %714 = vector.shape_cast %713 : vector<1x18x36xf32> to vector<18x36xf32>
    %715 = vector.broadcast %107 : f32 to vector<18x36xf32>
    %716 = arith.mulf %715, %714 : vector<18x36xf32>
    %717 = arith.addf %706, %716 : vector<18x36xf32>
    %718 = vector.broadcast %134 : f32 to vector<18x36xf32>
    %719 = arith.mulf %718, %714 : vector<18x36xf32>
    %720 = arith.addf %709, %719 : vector<18x36xf32>
    %721 = vector.broadcast %161 : f32 to vector<18x36xf32>
    %722 = arith.mulf %721, %714 : vector<18x36xf32>
    %723 = arith.addf %712, %722 : vector<18x36xf32>
    %c2_185 = arith.constant 2 : index
    %c1_186 = arith.constant 1 : index
    %c0_187 = arith.constant 0 : index
    %724 = vector.load %arg5[%c2_185, %c1_186, %c0_187] : memref<3x20x38xf32, #tpu.memory_space<vmem>>, vector<1x18x36xf32>
    %725 = vector.shape_cast %724 : vector<1x18x36xf32> to vector<18x36xf32>
    %726 = vector.broadcast %108 : f32 to vector<18x36xf32>
    %727 = arith.mulf %726, %725 : vector<18x36xf32>
    %728 = arith.addf %717, %727 : vector<18x36xf32>
    %729 = vector.broadcast %135 : f32 to vector<18x36xf32>
    %730 = arith.mulf %729, %725 : vector<18x36xf32>
    %731 = arith.addf %720, %730 : vector<18x36xf32>
    %732 = vector.broadcast %162 : f32 to vector<18x36xf32>
    %733 = arith.mulf %732, %725 : vector<18x36xf32>
    %734 = arith.addf %723, %733 : vector<18x36xf32>
    %c2_188 = arith.constant 2 : index
    %c1_189 = arith.constant 1 : index
    %c1_190 = arith.constant 1 : index
    %735 = vector.load %arg5[%c2_188, %c1_189, %c1_190] : memref<3x20x38xf32, #tpu.memory_space<vmem>>, vector<1x18x36xf32>
    %736 = vector.shape_cast %735 : vector<1x18x36xf32> to vector<18x36xf32>
    %737 = vector.broadcast %109 : f32 to vector<18x36xf32>
    %738 = arith.mulf %737, %736 : vector<18x36xf32>
    %739 = arith.addf %728, %738 : vector<18x36xf32>
    %740 = vector.broadcast %136 : f32 to vector<18x36xf32>
    %741 = arith.mulf %740, %736 : vector<18x36xf32>
    %742 = arith.addf %731, %741 : vector<18x36xf32>
    %743 = vector.broadcast %163 : f32 to vector<18x36xf32>
    %744 = arith.mulf %743, %736 : vector<18x36xf32>
    %745 = arith.addf %734, %744 : vector<18x36xf32>
    %c2_191 = arith.constant 2 : index
    %c1_192 = arith.constant 1 : index
    %c2_193 = arith.constant 2 : index
    %746 = vector.load %arg5[%c2_191, %c1_192, %c2_193] : memref<3x20x38xf32, #tpu.memory_space<vmem>>, vector<1x18x36xf32>
    %747 = vector.shape_cast %746 : vector<1x18x36xf32> to vector<18x36xf32>
    %748 = vector.broadcast %110 : f32 to vector<18x36xf32>
    %749 = arith.mulf %748, %747 : vector<18x36xf32>
    %750 = arith.addf %739, %749 : vector<18x36xf32>
    %751 = vector.broadcast %137 : f32 to vector<18x36xf32>
    %752 = arith.mulf %751, %747 : vector<18x36xf32>
    %753 = arith.addf %742, %752 : vector<18x36xf32>
    %754 = vector.broadcast %164 : f32 to vector<18x36xf32>
    %755 = arith.mulf %754, %747 : vector<18x36xf32>
    %756 = arith.addf %745, %755 : vector<18x36xf32>
    %c2_194 = arith.constant 2 : index
    %c2_195 = arith.constant 2 : index
    %c0_196 = arith.constant 0 : index
    %757 = vector.load %arg5[%c2_194, %c2_195, %c0_196] : memref<3x20x38xf32, #tpu.memory_space<vmem>>, vector<1x18x36xf32>
    %758 = vector.shape_cast %757 : vector<1x18x36xf32> to vector<18x36xf32>
    %759 = vector.broadcast %111 : f32 to vector<18x36xf32>
    %760 = arith.mulf %759, %758 : vector<18x36xf32>
    %761 = arith.addf %750, %760 : vector<18x36xf32>
    %762 = vector.broadcast %138 : f32 to vector<18x36xf32>
    %763 = arith.mulf %762, %758 : vector<18x36xf32>
    %764 = arith.addf %753, %763 : vector<18x36xf32>
    %765 = vector.broadcast %165 : f32 to vector<18x36xf32>
    %766 = arith.mulf %765, %758 : vector<18x36xf32>
    %767 = arith.addf %756, %766 : vector<18x36xf32>
    %c2_197 = arith.constant 2 : index
    %c2_198 = arith.constant 2 : index
    %c1_199 = arith.constant 1 : index
    %768 = vector.load %arg5[%c2_197, %c2_198, %c1_199] : memref<3x20x38xf32, #tpu.memory_space<vmem>>, vector<1x18x36xf32>
    %769 = vector.shape_cast %768 : vector<1x18x36xf32> to vector<18x36xf32>
    %770 = vector.broadcast %112 : f32 to vector<18x36xf32>
    %771 = arith.mulf %770, %769 : vector<18x36xf32>
    %772 = arith.addf %761, %771 : vector<18x36xf32>
    %773 = vector.broadcast %139 : f32 to vector<18x36xf32>
    %774 = arith.mulf %773, %769 : vector<18x36xf32>
    %775 = arith.addf %764, %774 : vector<18x36xf32>
    %776 = vector.broadcast %166 : f32 to vector<18x36xf32>
    %777 = arith.mulf %776, %769 : vector<18x36xf32>
    %778 = arith.addf %767, %777 : vector<18x36xf32>
    %c2_200 = arith.constant 2 : index
    %c2_201 = arith.constant 2 : index
    %c2_202 = arith.constant 2 : index
    %779 = vector.load %arg5[%c2_200, %c2_201, %c2_202] : memref<3x20x38xf32, #tpu.memory_space<vmem>>, vector<1x18x36xf32>
    %780 = vector.shape_cast %779 : vector<1x18x36xf32> to vector<18x36xf32>
    %781 = vector.broadcast %113 : f32 to vector<18x36xf32>
    %782 = arith.mulf %781, %780 : vector<18x36xf32>
    %783 = arith.addf %772, %782 : vector<18x36xf32>
    %784 = vector.broadcast %140 : f32 to vector<18x36xf32>
    %785 = arith.mulf %784, %780 : vector<18x36xf32>
    %786 = arith.addf %775, %785 : vector<18x36xf32>
    %787 = vector.broadcast %167 : f32 to vector<18x36xf32>
    %788 = arith.mulf %787, %780 : vector<18x36xf32>
    %789 = arith.addf %778, %788 : vector<18x36xf32>
    %cst_203 = arith.constant 0.000000e+00 : f32
    %790 = vector.broadcast %cst_203 : f32 to vector<18x36xf32>
    %791 = arith.maximumf %783, %790 : vector<18x36xf32>
    %c0_204 = arith.constant 0 : index
    %c0_205 = arith.constant 0 : index
    %c1_206 = arith.constant 1 : index
    %c1_207 = arith.constant 1 : index
    %792 = vector.load %arg2[%c0_204, %c0_205, %c1_206, %c1_207] : memref<1x3x20x38xf32, #tpu.memory_space<vmem>>, vector<1x1x18x36xf32>
    %793 = vector.shape_cast %792 : vector<1x1x18x36xf32> to vector<18x36xf32>
    %794 = arith.addf %791, %793 : vector<18x36xf32>
    %c0_208 = arith.constant 0 : index
    %c0_209 = arith.constant 0 : index
    %c0_210 = arith.constant 0 : index
    %c0_211 = arith.constant 0 : index
    %795 = vector.load %arg4[%c0_208, %c0_209, %c0_210, %c0_211] : memref<1x3x18x36xf32, #tpu.memory_space<vmem>>, vector<1x1x18x36xf32>
    %796 = vector.shape_cast %795 : vector<1x1x18x36xf32> to vector<18x36xf32>
    %797 = vector.shape_cast %794 : vector<18x36xf32> to vector<1x1x18x36xf32>
    tpu.vector_store %arg4[%c0_208, %c0_209, %c0_210, %c0_211], %797 {strides = array<i32>} : memref<1x3x18x36xf32, #tpu.memory_space<vmem>>, vector<1x1x18x36xf32>,
    %cst_212 = arith.constant 0.000000e+00 : f32
    %798 = vector.broadcast %cst_212 : f32 to vector<18x36xf32>
    %799 = arith.maximumf %786, %798 : vector<18x36xf32>
    %c0_213 = arith.constant 0 : index
    %c1_214 = arith.constant 1 : index
    %c1_215 = arith.constant 1 : index
    %c1_216 = arith.constant 1 : index
    %800 = vector.load %arg2[%c0_213, %c1_214, %c1_215, %c1_216] : memref<1x3x20x38xf32, #tpu.memory_space<vmem>>, vector<1x1x18x36xf32>
    %801 = vector.shape_cast %800 : vector<1x1x18x36xf32> to vector<18x36xf32>
    %802 = arith.addf %799, %801 : vector<18x36xf32>
    %c0_217 = arith.constant 0 : index
    %c1_218 = arith.constant 1 : index
    %c0_219 = arith.constant 0 : index
    %c0_220 = arith.constant 0 : index
    %803 = vector.load %arg4[%c0_217, %c1_218, %c0_219, %c0_220] : memref<1x3x18x36xf32, #tpu.memory_space<vmem>>, vector<1x1x18x36xf32>
    %804 = vector.shape_cast %803 : vector<1x1x18x36xf32> to vector<18x36xf32>
    %805 = vector.shape_cast %802 : vector<18x36xf32> to vector<1x1x18x36xf32>
    tpu.vector_store %arg4[%c0_217, %c1_218, %c0_219, %c0_220], %805 {strides = array<i32>} : memref<1x3x18x36xf32, #tpu.memory_space<vmem>>, vector<1x1x18x36xf32>,
    %cst_221 = arith.constant 0.000000e+00 : f32
    %806 = vector.broadcast %cst_221 : f32 to vector<18x36xf32>
    %807 = arith.maximumf %789, %806 : vector<18x36xf32>
    %c0_222 = arith.constant 0 : index
    %c2_223 = arith.constant 2 : index
    %c1_224 = arith.constant 1 : index
    %c1_225 = arith.constant 1 : index
    %808 = vector.load %arg2[%c0_222, %c2_223, %c1_224, %c1_225] : memref<1x3x20x38xf32, #tpu.memory_space<vmem>>, vector<1x1x18x36xf32>
    %809 = vector.shape_cast %808 : vector<1x1x18x36xf32> to vector<18x36xf32>
    %810 = arith.addf %807, %809 : vector<18x36xf32>
    %c0_226 = arith.constant 0 : index
    %c2_227 = arith.constant 2 : index
    %c0_228 = arith.constant 0 : index
    %c0_229 = arith.constant 0 : index
    %811 = vector.load %arg4[%c0_226, %c2_227, %c0_228, %c0_229] : memref<1x3x18x36xf32, #tpu.memory_space<vmem>>, vector<1x1x18x36xf32>
    %812 = vector.shape_cast %811 : vector<1x1x18x36xf32> to vector<18x36xf32>
    %813 = vector.shape_cast %810 : vector<18x36xf32> to vector<1x1x18x36xf32>
    tpu.vector_store %arg4[%c0_226, %c2_227, %c0_228, %c0_229], %813 {strides = array<i32>} : memref<1x3x18x36xf32, #tpu.memory_space<vmem>>, vector<1x1x18x36xf32>,
    return
  }
  func.func @transform_0(%arg0: i32) -> i32 {
    %c0_i32 = arith.constant 0 : i32
    %c0_i32_0 = arith.constant 0 : i32
    return %c0_i32 : i32
  }
  func.func @transform_1(%arg0: i32) -> (i32, i32, i32, i32) {
    %c0_i32 = arith.constant 0 : i32
    %c0_i32_0 = arith.constant 0 : i32
    %c0_i32_1 = arith.constant 0 : i32
    %c0_i32_2 = arith.constant 0 : i32
    return %arg0, %c0_i32, %c0_i32_0, %c0_i32_1 : i32, i32, i32, i32
  }
  func.func @transform_2(%arg0: i32) -> (i32, i32) {
    %c0_i32 = arith.constant 0 : i32
    %c0_i32_0 = arith.constant 0 : i32
    %c0_i32_1 = arith.constant 0 : i32
    return %c0_i32, %c0_i32_0 : i32, i32
  }
  func.func @transform_3(%arg0: i32) -> (i32, i32, i32, i32) {
    %c0_i32 = arith.constant 0 : i32
    %c0_i32_0 = arith.constant 0 : i32
    %c0_i32_1 = arith.constant 0 : i32
    %c0_i32_2 = arith.constant 0 : i32
    return %arg0, %c0_i32, %c0_i32_0, %c0_i32_1 : i32, i32, i32, i32
  }
}

</mosaic_0001>

<bundles_post_ra>
// kernel: simple_residual_block.1
= control target key start
LH: loop header
LB: loop body
LE: loop exit
PB: predicated region body
PF: predicated region fallthrough
CT: control target
= control target key end

     0   :  { %8 = vsyncpa [#allocation4], 0  ;;  %s3091_s15 = smov [#allocation3]   ;;  %s4851_s0 = inlined_call_operand.vmem [shape: f32[168], index: 0, kind: input, shape index: {}]   ;;  %s4852_s1 = inlined_call_operand.vmem [shape: f32[1,3,20,38], index: 1, kind: input, shape index: {}]   ;;  %s4853_s2 = inlined_call_operand.vmem [shape: f32[18,36], index: 2, kind: input, shape index: {}]   ;;  %s4854_s3 = inlined_call_operand.vmem [shape: f32[1,3,18,36], index: 3, kind: output, shape index: {}]  }
   0x1   :  { %s14_s14 = sshll.u32 %s4851_s0, 4  ;;  %s15_s14 = int_to_ptr.vmem [resolvable:$true] %s14_s14 }
   0x2   :  { %17 = dma.vmem_to_smem %s15_s14, 32, %s3091_s15, [#allocation4]  }
   0x3   :  { %3089 = dma.done.wait [#allocation4], 32  }
   0x4   :  { %3090 = vsyncadd [#allocation4], 4294967264 }
   0x5   :  { %26 = sfence }
   0x6   :  { %s2880_s16 = sld [smem:[#allocation3 + $0x1c]]  ;;  %v217_v0 = vld [vmem:[%s4852_s1 + $0x8] sm:$0xff]  ;;  %v218_v1 = vld [vmem:[%s4852_s1 + $0x10] sm:$0x3]  ;;  %v216_v2 = vld [vmem:[%s4852_s1] sm:$0xff]  ;;  %s3092_s0 = smov 127  }
   0x7   :  { %s2853_s17 = sld [smem:[#allocation3 + $0x1]]  ;;  %s3093_s27 = smov 126   ;;  %v356_v27 = vld [vmem:[%s4852_s1 + $0x11] sm:$0x3]  ;;  %v355_v29 = vld [vmem:[%s4852_s1 + $0x9] sm:$0xff]  ;;  %v354_v30 = vld [vmem:[%s4852_s1 + $0x1] sm:$0xff] }
   0x8   :  { %s2907_s24 = sld [smem:[#allocation3 + $0x37]]  ;;  %v494_v54 = vld [vmem:[%s4852_s1 + $0x12] sm:$0x3]  ;;  %v493_v57 = vld [vmem:[%s4852_s1 + $0xa] sm:$0xff]  ;;  %v492_v58 = vld [vmem:[%s4852_s1 + $0x2] sm:$0xff]  ;;  %vm34_vm0 = vcmask 306176  }
   0x9   :  { %s2854_s25 = sld [smem:[#allocation3 + $0x2]]  ;;  %vm1481_vm1 = vcmask 295944   ;;  %vm31_vm2 = vcmask 310272   ;;  %vm1478_vm3 = vcmask 302088   ;;  %vm2796_vm4 = vcmask 287744  }
   0xa   :  { %s2881_s26 = sld [smem:[#allocation3 + $0x1d]]  ;;  %vm2793_vm5 = vcmask 293888  }
   0xb   :  { %s2908_s28 = sld [smem:[#allocation3 + $0x38]] }
   0xc   :  { %v259_v3 = vstv %s2880_s16  ;;  %s2856_s29 = sld [smem:[#allocation3 + $0x4]] }
   0xd   :  { %v261_v4 = vmul.f32 %v259_v3, %v217_v0  ;;  %v240_v5 = vstv %s2853_s17  ;;  %v262_v8 = vmul.f32 %v259_v3, %v218_v1  ;;  %v260_v9 = vmul.f32 %v259_v3, %v216_v2  ;;  %s2883_s5 = sld [smem:[#allocation3 + $0x1f]] }
   0xe   :  { %v243_v6 = vmul.f32 %v240_v5, %v218_v1  ;;  %v241_v7 = vmul.f32 %v240_v5, %v216_v2  ;;  %v242_v10 = vmul.f32 %v240_v5, %v217_v0  ;;  %v278_v11 = vstv %s2907_s24  ;;  %s2910_s10 = sld [smem:[#allocation3 + $0x3a]] }
   0xf   :  { %268 = vrot.lane.b32.xlu2 %v261_v4, %s3092_s0  ;;  %v281_v12 = vmul.f32 %v278_v11, %v218_v1  ;;  %v280_v13 = vmul.f32 %v278_v11, %v217_v0  ;;  %v279_v14 = vmul.f32 %v278_v11, %v216_v2  ;;  %v297_v15 = vstv %s2854_s25  ;;  %s2857_s11 = sld [smem:[#allocation3 + $0x5]] }
  0x10   :  { %251 = vrot.lane.b32.xlu1 %v243_v6, %s3092_s0  ;;  %247 = vrot.lane.b32.xlu0 %v241_v7, %s3092_s0  ;;  %v300_v16 = vmul.f32 %v297_v15, %v218_v1  ;;  %v299_v17 = vmul.f32 %v297_v15, %v217_v0  ;;  %v298_v18 = vmul.f32 %v297_v15, %v216_v2  ;;  %v316_v19 = vstv %s2881_s26  ;;  %s2884_s12 = sld [smem:[#allocation3 + $0x20]] }
  0x11   :  { %v319_v20 = vmul.f32 %v316_v19, %v218_v1  ;;  %v318_v21 = vmul.f32 %v316_v19, %v217_v0  ;;  %v317_v22 = vmul.f32 %v316_v19, %v216_v2  ;;  %v335_v23 = vstv %s2908_s28  ;;  %s2911_s13 = sld [smem:[#allocation3 + $0x3b]] }
  0x12   :  { %v338_v24 = vmul.f32 %v335_v23, %v218_v1  ;;  %v337_v25 = vmul.f32 %v335_v23, %v217_v0  ;;  %v336_v26 = vmul.f32 %v335_v23, %v216_v2  ;;  %v378_v28 = vstv %s2856_s29  ;;  %s2859_s14 = sld [smem:[#allocation3 + $0x7]] }
  0x13   :  { %v381_v31 = vmul.f32 %v378_v28, %v356_v27  ;;  %v380_v32 = vmul.f32 %v378_v28, %v355_v29  ;;  %v379_v33 = vmul.f32 %v378_v28, %v354_v30  ;;  %v397_v34 = vstv %s2883_s5  ;;  %s2886_s17 = sld [smem:[#allocation3 + $0x22]] }
  0x14   :  { %v400_v35 = vmul.f32 %v397_v34, %v356_v27  ;;  %v399_v36 = vmul.f32 %v397_v34, %v355_v29  ;;  %v398_v37 = vmul.f32 %v397_v34, %v354_v30  ;;  %v416_v38 = vstv %s2910_s10  ;;  %s2913_s22 = sld [smem:[#allocation3 + $0x3d]] }
  0x15   :  { %v419_v39 = vmul.f32 %v416_v38, %v356_v27  ;;  %v418_v40 = vmul.f32 %v416_v38, %v355_v29  ;;  %v417_v41 = vmul.f32 %v416_v38, %v354_v30  ;;  %v435_v42 = vstv %s2857_s11  ;;  %s2860_s23 = sld [smem:[#allocation3 + $0x8]] }
  0x16   :  { %v438_v43 = vmul.f32 %v435_v42, %v356_v27  ;;  %v437_v44 = vmul.f32 %v435_v42, %v355_v29  ;;  %v436_v45 = vmul.f32 %v435_v42, %v354_v30  ;;  %v454_v46 = vstv %s2884_s12  ;;  %s2887_s24 = sld [smem:[#allocation3 + $0x23]] }
  0x17   :  { %270 = vrot.lane.b32.xlu2 %v262_v8, %s3092_s0  ;;  %v457_v47 = vmul.f32 %v454_v46, %v356_v27  ;;  %v456_v48 = vmul.f32 %v454_v46, %v355_v29  ;;  %v455_v49 = vmul.f32 %v454_v46, %v354_v30  ;;  %v473_v50 = vstv %s2911_s13  ;;  %s2914_s25 = sld [smem:[#allocation3 + $0x3e]] }
  0x18   :  { %266 = vrot.lane.b32.xlu1 %v260_v9, %s3092_s0  ;;  %249 = vrot.lane.b32.xlu0 %v242_v10, %s3092_s0  ;;  %v476_v51 = vmul.f32 %v473_v50, %v356_v27  ;;  %v475_v52 = vmul.f32 %v473_v50, %v355_v29  ;;  %v474_v53 = vmul.f32 %v473_v50, %v354_v30  ;;  %v516_v55 = vstv %s2859_s14  ;;  %s2862_s26 = sld [smem:[#allocation3 + $0xa]]  ;;  %v3227_v29 = vld [vmem:[%s4852_s1 + $0x28] sm:$0x3] }
  0x19   :  { %v519_v59 = vmul.f32 %v516_v55, %v494_v54  ;;  %v518_v60 = vmul.f32 %v516_v55, %v493_v57  ;;  %v517_v61 = vmul.f32 %v516_v55, %v492_v58  ;;  %v535_v62 = vstv %s2886_s17  ;;  %s2889_s30 = sld [smem:[#allocation3 + $0x25]] }
  0x1a   :  { %v538_v0 = vmul.f32 %v535_v62, %v494_v54  ;;  %v537_v1 = vmul.f32 %v535_v62, %v493_v57  ;;  %v536_v2 = vmul.f32 %v535_v62, %v492_v58  ;;  %v554_v3 = vstv %s2913_s22  ;;  %s2916_s8 = sld [smem:[#allocation3 + $0x40]] }
  0x1b   :  { %v557_v5 = vmul.f32 %v554_v3, %v494_v54  ;;  %v556_v6 = vmul.f32 %v554_v3, %v493_v57  ;;  %v555_v7 = vmul.f32 %v554_v3, %v492_v58  ;;  %v573_v8 = vstv %s2860_s23  ;;  %s2863_s9 = sld [smem:[#allocation3 + $0xb]] }
  0x1c   :  { %v592_v15 = vstv %s2887_s24  ;;  %s2890_s10 = sld [smem:[#allocation3 + $0x26]] }
  0x1d   :  { %v595_v19 = vmul.f32 %v592_v15, %v494_v54  ;;  %s2917_s11 = sld [smem:[#allocation3 + $0x41]] }
  0x1e   :  { %v655_v30 = vstv %s2862_s26  ;;  %s2865_s12 = sld [smem:[#allocation3 + $0xd]] }
  0x1f   :  { %289 = vrot.lane.b32.xlu2 %v281_v12, %s3092_s0  ;;  %v576_v12 = vmul.f32 %v573_v8, %v494_v54  ;;  %s2892_s15 = sld [smem:[#allocation3 + $0x28]] }
  0x20   :  { %287 = vrot.lane.b32.xlu1 %v280_v13, %s3092_s0  ;;  %285 = vrot.lane.b32.xlu0 %v279_v14, %s3092_s0  ;;  %v575_v13 = vmul.f32 %v573_v8, %v493_v57  ;;  %v574_v14 = vmul.f32 %v573_v8, %v492_v58  ;;  %v693_v46 = vstv %s2916_s8  ;;  %s2919_s20 = sld [smem:[#allocation3 + $0x43]] }
  0x21   :  { %v696_v50 = vmul.f32 %v3227_v29, %v693_v46  ;;  %s2866_s21 = sld [smem:[#allocation3 + $0xe]] }
  0x22   :  { %s2893_s22 = sld [smem:[#allocation3 + $0x29]] }
  0x23   :  { %s2920_s23 = sld [smem:[#allocation3 + $0x44]] }
  0x24   :  { %s2868_s24 = sld [smem:[#allocation3 + $0x10]] }
  0x25   :  { %s2895_s28 = sld [smem:[#allocation3 + $0x2b]] }
  0x26   :  { %s2922_s6 = sld [smem:[#allocation3 + $0x46]] }
  0x27   :  { %308 = vrot.lane.b32.xlu2 %v300_v16, %s3093_s27  ;;  %s2869_s7 = sld [smem:[#allocation3 + $0x11]] }
  0x28   :  { %306 = vrot.lane.b32.xlu1 %v299_v17, %s3093_s27  ;;  %304 = vrot.lane.b32.xlu0 %v298_v18, %s3093_s27  ;;  %s2896_s8 = sld [smem:[#allocation3 + $0x2c]] }
  0x29   :  { %s2898_s13 = sld [smem:[#allocation3 + $0x2e]] }
  0x2a   :  { %s2925_s18 = sld [smem:[#allocation3 + $0x49]] }
  0x2b   :  { %s2872_s19 = sld [smem:[#allocation3 + $0x14]] }
  0x2c   :  { %s2928_s4 = sld [smem:[#allocation3 + $0x4c]] }
  0x2d   :  { %s2875_s5 = sld [smem:[#allocation3 + $0x17]] }
  0x2e   :  { %s2931_s16 = sld [smem:[#allocation3 + $0x4f]] }
  0x2f   :  { %327 = vrot.lane.b32.xlu2 %v319_v20, %s3093_s27  ;;  %v594_v20 = vmul.f32 %v592_v15, %v493_v57  ;;  %s2878_s17 = sld [smem:[#allocation3 + $0x1a]] }
  0x30   :  { %325 = vrot.lane.b32.xlu1 %v318_v21, %s3093_s27  ;;  %323 = vrot.lane.b32.xlu0 %v317_v22, %s3093_s27  ;;  %v593_v21 = vmul.f32 %v592_v15, %v492_v58  ;;  %v611_v22 = vstv %s2914_s25  ;;  %s2901_s25 = sld [smem:[#allocation3 + $0x31]] }
  0x31   :  { %v613_v27 = vmul.f32 %v611_v22, %v493_v57  ;;  %v612_v28 = vmul.f32 %v611_v22, %v492_v58  ;;  %s2935_s29 = sld [smem:[#allocation3 + $0x53]] }
  0x32   :  { %s3720_s14 = sld [smem:[#allocation3 + $0x3c]] }
  0x33   :  { %s2965_s26 = sld [smem:[#allocation3 + $0x71]] }
  0x37   :  { %346 = vrot.lane.b32.xlu2 %v338_v24, %s3093_s27 }
  0x38   :  { %344 = vrot.lane.b32.xlu1 %v337_v25, %s3093_s27  ;;  %342 = vrot.lane.b32.xlu0 %v336_v26, %s3093_s27  ;;  %v614_v26 = vmul.f32 %v611_v22, %v494_v54  ;;  %v3024_v22 = vld [vmem:[%s4852_s1 + $0x21] sm:$0xff] }
  0x3f   :  { %389 = vrot.lane.b32.xlu2 %v381_v31, %s3092_s0 }
  0x40   :  { %387 = vrot.lane.b32.xlu1 %v380_v32, %s3092_s0  ;;  %385 = vrot.lane.b32.xlu0 %v379_v33, %s3092_s0  ;;  %v3021_v32 = vld [vmem:[%s4852_s1 + $0x20] sm:$0xff]  ;;  %v3020_v33 = vld [vmem:[%s4852_s1 + $0x18] sm:$0xff] }
  0x41   :  { %v656_v38 = vmul.f32 %v3020_v33, %v655_v30 }
  0x47   :  { %408 = vrot.lane.b32.xlu2 %v400_v35, %s3092_s0 }
  0x48   :  { %406 = vrot.lane.b32.xlu1 %v399_v36, %s3092_s0  ;;  %404 = vrot.lane.b32.xlu0 %v398_v37, %s3092_s0  ;;  %v658_v36 = vmul.f32 %v3227_v29, %v655_v30  ;;  %v657_v37 = vmul.f32 %v3021_v32, %v655_v30 }
  0x4f   :  { %427 = vrot.lane.b32.xlu2 %v419_v39, %s3092_s0  ;;  %v674_v39 = vstv %s2889_s30  ;;  %s2882_s30 = sld [smem:[#allocation3 + $0x1e]] }
  0x50   :  { %425 = vrot.lane.b32.xlu1 %v418_v40, %s3092_s0  ;;  %423 = vrot.lane.b32.xlu0 %v417_v41, %s3092_s0 }
  0x57   :  { %446 = vrot.lane.b32.xlu2 %v438_v43, %s3093_s27  ;;  %v677_v43 = vmul.f32 %v3227_v29, %v674_v39 }
  0x58   :  { %444 = vrot.lane.b32.xlu1 %v437_v44, %s3093_s27  ;;  %442 = vrot.lane.b32.xlu0 %v436_v45, %s3093_s27  ;;  %v676_v44 = vmul.f32 %v3021_v32, %v674_v39  ;;  %v675_v45 = vmul.f32 %v3020_v33, %v674_v39 }
  0x5f   :  { %465 = vrot.lane.b32.xlu2 %v457_v47, %s3093_s27 }
  0x60   :  { %463 = vrot.lane.b32.xlu1 %v456_v48, %s3093_s27  ;;  %461 = vrot.lane.b32.xlu0 %v455_v49, %s3093_s27 }
  0x67   :  { %484 = vrot.lane.b32.xlu2 %v476_v51, %s3093_s27  ;;  %v695_v51 = vmul.f32 %v3021_v32, %v693_v46 }
  0x68   :  { %482 = vrot.lane.b32.xlu1 %v475_v52, %s3093_s27  ;;  %480 = vrot.lane.b32.xlu0 %v474_v53, %s3093_s27  ;;  %v694_v52 = vmul.f32 %v3020_v33, %v693_v46  ;;  %v712_v53 = vstv %s2863_s9  ;;  %v831_v46 = vstv %s2919_s20  ;;  %s2923_s9 = sld [smem:[#allocation3 + $0x47]] }
  0x69   :  { %v3176_v56 = vpop.permute.xlu2 %268  ;;  %v715_v58 = vmul.f32 %v3227_v29, %v712_v53  ;;  %s2899_s20 = sld [smem:[#allocation3 + $0x2f]] }
  0x6f   :  { %527 = vrot.lane.b32.xlu2 %v519_v59, %s3092_s0  ;;  %v714_v59 = vmul.f32 %v3021_v32, %v712_v53 }
  0x70   :  { %525 = vrot.lane.b32.xlu1 %v518_v60, %s3092_s0  ;;  %523 = vrot.lane.b32.xlu0 %v517_v61, %s3092_s0  ;;  %v713_v60 = vmul.f32 %v3020_v33, %v712_v53  ;;  %v731_v61 = vstv %s2890_s10  ;;  %s2871_s10 = sld [smem:[#allocation3 + $0x13]] }
  0x71   :  { %v3187_v63 = vpop.permute.xlu2 %270  ;;  %v733_v3 = vmul.f32 %v3021_v32, %v731_v61 }
  0x77   :  { %546 = vrot.lane.b32.xlu2 %v538_v0, %s3092_s0 }
  0x78   :  { %544 = vrot.lane.b32.xlu1 %v537_v1, %s3092_s0  ;;  %542 = vrot.lane.b32.xlu0 %v536_v2, %s3092_s0  ;;  %v734_v2 = vmul.f32 %v3227_v29, %v731_v61 }
  0x79   :  { %v3192_v4 = vpop.permute.xlu2 %289 }
  0x7f   :  { %565 = vrot.lane.b32.xlu2 %v557_v5, %s3092_s0  ;;  %v732_v5 = vmul.f32 %v3020_v33, %v731_v61 }
  0x80   :  { %563 = vrot.lane.b32.xlu1 %v556_v6, %s3092_s0  ;;  %561 = vrot.lane.b32.xlu0 %v555_v7, %s3092_s0  ;;  %v750_v6 = vstv %s2917_s11  ;;  %s2904_s11 = sld [smem:[#allocation3 + $0x34]] }
  0x81   :  { %v3197_v9 = vpop.permute.xlu2 %308  ;;  %v751_v15 = vmul.f32 %v3020_v33, %v750_v6 }
  0x82   :  { %v3199_v10 = vpop.permute.xlu1 %251  ;;  %v3201_v11 = vpop.permute.xlu0 %247 }
  0x87   :  { %584 = vrot.lane.b32.xlu2 %v576_v12, %s3093_s27 }
  0x88   :  { %582 = vrot.lane.b32.xlu1 %v575_v13, %s3093_s27  ;;  %580 = vrot.lane.b32.xlu0 %v574_v14, %s3093_s27  ;;  %v753_v13 = vmul.f32 %v3227_v29, %v750_v6  ;;  %v752_v14 = vmul.f32 %v3021_v32, %v750_v6 }
  0x89   :  { %v3206_v16 = vpop.permute.xlu2 %327 }
  0x8a   :  { %v3208_v17 = vpop.permute.xlu1 %266  ;;  %v3210_v18 = vpop.permute.xlu0 %249 }
  0x8f   :  { %603 = vrot.lane.b32.xlu2 %v595_v19, %s3093_s27  ;;  %v3298_v19 = vld [vmem:[%s4852_s1 + $0x29] sm:$0x3] }
  0x90   :  { %601 = vrot.lane.b32.xlu1 %v594_v20, %s3093_s27  ;;  %599 = vrot.lane.b32.xlu0 %v593_v21, %s3093_s27  ;;  %v793_v20 = vstv %s2865_s12  ;;  %v834_v53 = vmul.f32 %v3298_v19, %v831_v46  ;;  %s3712_s12 = sld [smem:[#allocation3 + $0x21]] }
  0x91   :  { %v3215_v23 = vpop.permute.xlu2 %346  ;;  %v796_v30 = vmul.f32 %v3298_v19, %v793_v20  ;;  %v795_v32 = vmul.f32 %v3024_v22, %v793_v20 }
  0x92   :  { %v3217_v24 = vpop.permute.xlu1 %287  ;;  %v3219_v25 = vpop.permute.xlu0 %285 }
  0x97   :  { %622 = vrot.lane.b32.xlu2 %v614_v26, %s3093_s27  ;;  %v3023_v26 = vld [vmem:[%s4852_s1 + $0x19] sm:$0xff] }
  0x98   :  { %620 = vrot.lane.b32.xlu1 %v613_v27, %s3093_s27  ;;  %618 = vrot.lane.b32.xlu0 %v612_v28, %s3093_s27  ;;  %v794_v33 = vmul.f32 %v3023_v26, %v793_v20 }
  0x99   :  { %v3229_v31 = vpop.permute.xlu2 %389 }
  0x9a   :  { %v3237_v34 = vpop.permute.xlu1 %306  ;;  %v3239_v35 = vpop.permute.xlu0 %304 }
  0x9f   :  { %666 = vrot.lane.b32.xlu2 %v658_v36, %s3092_s0  ;;  %v812_v36 = vstv %s2892_s15  ;;  %s3887_s15 = sld [smem:[#allocation3 + $0x15]] }
  0xa0   :  { %664 = vrot.lane.b32.xlu1 %v657_v37, %s3092_s0  ;;  %662 = vrot.lane.b32.xlu0 %v656_v38, %s3092_s0 }
  0xa1   :  { %v3245_v40 = vpop.permute.xlu2 %408 }
  0xa2   :  { %v3247_v41 = vpop.permute.xlu1 %325  ;;  %v3249_v42 = vpop.permute.xlu0 %323 }
  0xa7   :  { %685 = vrot.lane.b32.xlu2 %v677_v43, %s3092_s0  ;;  %v815_v43 = vmul.f32 %v3298_v19, %v812_v36 }
  0xa8   :  { %683 = vrot.lane.b32.xlu1 %v676_v44, %s3092_s0  ;;  %681 = vrot.lane.b32.xlu0 %v675_v45, %s3092_s0  ;;  %v814_v44 = vmul.f32 %v3024_v22, %v812_v36  ;;  %v813_v45 = vmul.f32 %v3023_v26, %v812_v36 }
  0xa9   :  { %v3255_v47 = vpop.permute.xlu2 %427 }
  0xaa   :  { %v3257_v48 = vpop.permute.xlu1 %344  ;;  %v3259_v49 = vpop.permute.xlu0 %342 }
  0xaf   :  { %704 = vrot.lane.b32.xlu2 %v696_v50, %s3092_s0 }
  0xb0   :  { %702 = vrot.lane.b32.xlu1 %v695_v51, %s3092_s0  ;;  %700 = vrot.lane.b32.xlu0 %v694_v52, %s3092_s0 }
  0xb1   :  { %v3265_v54 = vpop.permute.xlu2 %446 }
  0xb2   :  { %v3267_v55 = vpop.permute.xlu1 %387  ;;  %v3269_v57 = vpop.permute.xlu0 %385 }
  0xb7   :  { %723 = vrot.lane.b32.xlu2 %v715_v58, %s3093_s27  ;;  %v833_v58 = vmul.f32 %v3024_v22, %v831_v46 }
  0xb8   :  { %721 = vrot.lane.b32.xlu1 %v714_v59, %s3093_s27  ;;  %719 = vrot.lane.b32.xlu0 %v713_v60, %s3093_s27  ;;  %v832_v59 = vmul.f32 %v3023_v26, %v831_v46  ;;  %v850_v60 = vstv %s2866_s21  ;;  %s2926_s21 = sld [smem:[#allocation3 + $0x4a]] }
  0xb9   :  { %v3275_v62 = vpop.permute.xlu2 %465  ;;  %v852_v6 = vmul.f32 %v3024_v22, %v850_v60 }
  0xba   :  { %v3277_v0 = vpop.permute.xlu1 %406  ;;  %v3279_v1 = vpop.permute.xlu0 %404 }
  0xbf   :  { %742 = vrot.lane.b32.xlu2 %v734_v2, %s3093_s27 }
  0xc0   :  { %740 = vrot.lane.b32.xlu1 %v733_v3, %s3093_s27  ;;  %738 = vrot.lane.b32.xlu0 %v732_v5, %s3093_s27  ;;  %v853_v5 = vmul.f32 %v3298_v19, %v850_v60 }
  0xc1   :  { %v3285_v7 = vpop.permute.xlu2 %484 }
  0xc2   :  { %v3287_v8 = vpop.permute.xlu1 %425  ;;  %v3289_v12 = vpop.permute.xlu0 %423 }
  0xc3   :  { %4871 = vst [vmem:[#allocation6_spill] sm:$0xff] %v3287_v8 }
  0xc4   :  { %4872 = vst [vmem:[#allocation7_spill] sm:$0xff] %v3289_v12 }
  0xc7   :  { %761 = vrot.lane.b32.xlu2 %v753_v13, %s3093_s27  ;;  %v851_v13 = vmul.f32 %v3023_v26, %v850_v60  ;;  %v3369_v60 = vld [vmem:[%s4852_s1 + $0x2a] sm:$0x3] }
  0xc8   :  { %759 = vrot.lane.b32.xlu1 %v752_v14, %s3093_s27  ;;  %757 = vrot.lane.b32.xlu0 %v751_v15, %s3093_s27  ;;  %v869_v14 = vstv %s2893_s22  ;;  %4884 = vst [vmem:[#allocation19_spill] sm:$0xff] %v3369_v60  ;;  %s2874_s22 = sld [smem:[#allocation3 + $0x16]] }
  0xc9   :  { %v3300_v21 = vpop.permute.xlu2 %527  ;;  %v870_v36 = vmul.f32 %v3023_v26, %v869_v14 }
  0xca   :  { %v3308_v27 = vpop.permute.xlu1 %444  ;;  %v3310_v28 = vpop.permute.xlu0 %442 }
  0xcf   :  { %804 = vrot.lane.b32.xlu2 %v796_v30, %s3092_s0 }
  0xd0   :  { %802 = vrot.lane.b32.xlu1 %v795_v32, %s3092_s0  ;;  %800 = vrot.lane.b32.xlu0 %v794_v33, %s3092_s0  ;;  %v872_v32 = vmul.f32 %v3298_v19, %v869_v14  ;;  %v871_v33 = vmul.f32 %v3024_v22, %v869_v14 }
  0xd1   :  { %v3316_v37 = vpop.permute.xlu2 %546 }
  0xd2   :  { %v3318_v38 = vpop.permute.xlu1 %463  ;;  %v3320_v39 = vpop.permute.xlu0 %461 }
  0xd3   :  { %4873 = vst [vmem:[#allocation8_spill] sm:$0xff] %v3320_v39 }
  0xd7   :  { %823 = vrot.lane.b32.xlu2 %v815_v43, %s3092_s0  ;;  %v888_v43 = vstv %s2920_s23  ;;  %s2934_s23 = sld [smem:[#allocation3 + $0x52]] }
  0xd8   :  { %821 = vrot.lane.b32.xlu1 %v814_v44, %s3092_s0  ;;  %819 = vrot.lane.b32.xlu0 %v813_v45, %s3092_s0 }
  0xd9   :  { %v3326_v50 = vpop.permute.xlu2 %565 }
  0xda   :  { %4874 = vst [vmem:[#allocation9_spill] sm:$0xff] %v3326_v50  ;;  %v3328_v51 = vpop.permute.xlu1 %482  ;;  %v3330_v52 = vpop.permute.xlu0 %480 }
  0xdb   :  { %4875 = vst [vmem:[#allocation10_spill] sm:$0xff] %v3328_v51 }
  0xdc   :  { %4876 = vst [vmem:[#allocation11_spill] sm:$0xff] %v3330_v52  ;;  %v364_v52 = vstv %s2882_s30  ;;  %s3795_s30 = sld [smem:[#allocation3 + $0xf]] }
  0xdf   :  { %842 = vrot.lane.b32.xlu2 %v834_v53, %s3092_s0  ;;  %v891_v53 = vmul.f32 %v3298_v19, %v888_v43 }
  0xe0   :  { %840 = vrot.lane.b32.xlu1 %v833_v58, %s3092_s0  ;;  %838 = vrot.lane.b32.xlu0 %v832_v59, %s3092_s0  ;;  %v890_v58 = vmul.f32 %v3024_v22, %v888_v43  ;;  %v889_v59 = vmul.f32 %v3023_v26, %v888_v43  ;;  %v3027_v22 = vld [vmem:[%s4852_s1 + $0x22] sm:$0xff]  ;;  %v3026_v26 = vld [vmem:[%s4852_s1 + $0x1a] sm:$0xff] }
  0xe1   :  { %v3336_v61 = vpop.permute.xlu2 %584  ;;  %v950_v43 = vstv %s2895_s28  ;;  %s2855_s28 = sld [smem:[#allocation3 + $0x3]] }
  0xe2   :  { %v3338_v2 = vpop.permute.xlu1 %525  ;;  %v3340_v3 = vpop.permute.xlu0 %523 }
  0xe3   :  { %4877 = vst [vmem:[#allocation12_spill] sm:$0xff] %v3338_v2 }
  0xe4   :  { %4878 = vst [vmem:[#allocation13_spill] sm:$0xff] %v3340_v3 }
  0xe7   :  { %861 = vrot.lane.b32.xlu2 %v853_v5, %s3093_s27  ;;  %v931_v5 = vstv %s2868_s24  ;;  %s2906_s24 = sld [smem:[#allocation3 + $0x36]]  ;;  %v357_v2 = vstv %s2855_s28 }
  0xe8   :  { %859 = vrot.lane.b32.xlu1 %v852_v6, %s3093_s27  ;;  %857 = vrot.lane.b32.xlu0 %v851_v13, %s3093_s27  ;;  %s3971_s28 = sld [smem:[#allocation3 + $0x4b]] }
  0xe9   :  { %v3346_v15 = vpop.permute.xlu2 %603 }
  0xea   :  { %v3348_v20 = vpop.permute.xlu1 %544  ;;  %v3350_v30 = vpop.permute.xlu0 %542 }
  0xeb   :  { %4879 = vst [vmem:[#allocation14_spill] sm:$0xff] %v3348_v20 }
  0xec   :  { %4880 = vst [vmem:[#allocation15_spill] sm:$0xff] %v3350_v30 }
  0xef   :  { %880 = vrot.lane.b32.xlu2 %v872_v32, %s3093_s27  ;;  %v934_v32 = vmul.f32 %v3369_v60, %v931_v5 }
  0xf0   :  { %878 = vrot.lane.b32.xlu1 %v871_v33, %s3093_s27  ;;  %876 = vrot.lane.b32.xlu0 %v870_v36, %s3093_s27  ;;  %v933_v33 = vmul.f32 %v3027_v22, %v931_v5  ;;  %v932_v36 = vmul.f32 %v3026_v26, %v931_v5  ;;  %v969_v5 = vstv %s2922_s6  ;;  %s2902_s6 = sld [smem:[#allocation3 + $0x32]] }
  0xf1   :  { %v3356_v44 = vpop.permute.xlu2 %622 }
  0xf2   :  { %4881 = vst [vmem:[#allocation16_spill] sm:$0xff] %v3356_v44  ;;  %v3358_v45 = vpop.permute.xlu1 %563  ;;  %v3360_v46 = vpop.permute.xlu0 %561 }
  0xf3   :  { %4882 = vst [vmem:[#allocation17_spill] sm:$0xff] %v3358_v45  ;;  %v970_v45 = vmul.f32 %v3026_v26, %v969_v5 }
  0xf4   :  { %4883 = vst [vmem:[#allocation18_spill] sm:$0xff] %v3360_v46  ;;  %v951_v46 = vmul.f32 %v3026_v26, %v950_v43 }
  0xf7   :  { %899 = vrot.lane.b32.xlu2 %v891_v53, %s3093_s27 }
  0xf8   :  { %897 = vrot.lane.b32.xlu1 %v890_v58, %s3093_s27  ;;  %895 = vrot.lane.b32.xlu0 %v889_v59, %s3093_s27 }
  0xf9   :  { %v3371_v6 = vpop.permute.xlu2 %666 }
  0xfa   :  { %v3379_v13 = vpop.permute.xlu1 %582  ;;  %v3381_v14 = vpop.permute.xlu0 %580 }
  0xfb   :  { %4885 = vst [vmem:[#allocation20_spill] sm:$0xff] %v3379_v13  ;;  %v952_v13 = vmul.f32 %v3027_v22, %v950_v43 }
  0xfc   :  { %4886 = vst [vmem:[#allocation21_spill] sm:$0xff] %v3381_v14  ;;  %v953_v14 = vmul.f32 %v3369_v60, %v950_v43 }
  0xff   :  { %942 = vrot.lane.b32.xlu2 %v934_v32, %s3092_s0 }
 0x100   :  { %940 = vrot.lane.b32.xlu1 %v933_v33, %s3092_s0  ;;  %938 = vrot.lane.b32.xlu0 %v932_v36, %s3092_s0 }
 0x101   :  { %v3387_v53 = vpop.permute.xlu2 %685 }
 0x102   :  { %4887 = vst [vmem:[#allocation22_spill] sm:$0xff] %v3387_v53  ;;  %v3389_v58 = vpop.permute.xlu1 %601  ;;  %v3391_v59 = vpop.permute.xlu0 %599 }
 0x103   :  { %4888 = vst [vmem:[#allocation23_spill] sm:$0xff] %v3389_v58  ;;  %v971_v58 = vmul.f32 %v3027_v22, %v969_v5 }
 0x104   :  { %4889 = vst [vmem:[#allocation24_spill] sm:$0xff] %v3391_v59  ;;  %v972_v59 = vmul.f32 %v3369_v60, %v969_v5 }
 0x107   :  { %961 = vrot.lane.b32.xlu2 %v953_v14, %s3092_s0 }
 0x108   :  { %959 = vrot.lane.b32.xlu1 %v952_v13, %s3092_s0  ;;  %957 = vrot.lane.b32.xlu0 %v951_v46, %s3092_s0  ;;  %v988_v13 = vstv %s2869_s7  ;;  %s2929_s7 = sld [smem:[#allocation3 + $0x4d]] }
 0x109   :  { %v3397_v32 = vpop.permute.xlu2 %704 }
 0x10a   :  { %4890 = vst [vmem:[#allocation25_spill] sm:$0xff] %v3397_v32  ;;  %v3399_v33 = vpop.permute.xlu1 %620  ;;  %v3401_v36 = vpop.permute.xlu0 %618  ;;  %v989_v32 = vmul.f32 %v3026_v26, %v988_v13 }
 0x10b   :  { %4891 = vst [vmem:[#allocation26_spill] sm:$0xff] %v3399_v33  ;;  %v990_v33 = vmul.f32 %v3027_v22, %v988_v13 }
 0x10c   :  { %4892 = vst [vmem:[#allocation27_spill] sm:$0xff] %v3401_v36  ;;  %v991_v36 = vmul.f32 %v3369_v60, %v988_v13 }
 0x10f   :  { %980 = vrot.lane.b32.xlu2 %v972_v59, %s3092_s0 }
 0x110   :  { %978 = vrot.lane.b32.xlu1 %v971_v58, %s3092_s0  ;;  %976 = vrot.lane.b32.xlu0 %v970_v45, %s3092_s0  ;;  %v1007_v58 = vstv %s2896_s8  ;;  %s2877_s8 = sld [smem:[#allocation3 + $0x19]] }
 0x111   :  { %v3407_v46 = vpop.permute.xlu2 %723  ;;  %v1008_v30 = vmul.f32 %v3026_v26, %v1007_v58 }
 0x112   :  { %v3409_v14 = vpop.permute.xlu1 %664  ;;  %v3411_v43 = vpop.permute.xlu0 %662 }
 0x113   :  { %4893 = vst [vmem:[#allocation28_spill] sm:$0xff] %v3409_v14  ;;  %v1009_v14 = vmul.f32 %v3027_v22, %v1007_v58 }
 0x114   :  { %4894 = vst [vmem:[#allocation29_spill] sm:$0xff] %v3411_v43  ;;  %v1010_v43 = vmul.f32 %v3369_v60, %v1007_v58 }
 0x117   :  { %999 = vrot.lane.b32.xlu2 %v991_v36, %s3093_s27 }
 0x118   :  { %997 = vrot.lane.b32.xlu1 %v990_v33, %s3093_s27  ;;  %995 = vrot.lane.b32.xlu0 %v989_v32, %s3093_s27  ;;  %v1026_v33 = vstv %s2923_s9  ;;  %s2970_s9 = sld [smem:[#allocation3 + $0x76]] }
 0x119   :  { %v3417_v45 = vpop.permute.xlu2 %742  ;;  %v1027_v20 = vmul.f32 %v3026_v26, %v1026_v33  ;;  %v3029_v26 = vld [vmem:[%s4852_s1 + $0x30] sm:$0xff] }
 0x11a   :  { %4895 = vst [vmem:[#allocation30_spill] sm:$0xff] %v3417_v45  ;;  %v3419_v59 = vpop.permute.xlu1 %683  ;;  %v3421_v5 = vpop.permute.xlu0 %681 }
 0x11b   :  { %4896 = vst [vmem:[#allocation31_spill] sm:$0xff] %v3419_v59  ;;  %v1028_v59 = vmul.f32 %v3027_v22, %v1026_v33  ;;  %v3030_v22 = vld [vmem:[%s4852_s1 + $0x38] sm:$0xff] }
 0x11c   :  { %4897 = vst [vmem:[#allocation32_spill] sm:$0xff] %v3421_v5  ;;  %v1029_v5 = vmul.f32 %v3369_v60, %v1026_v33 }
 0x11f   :  { %1018 = vrot.lane.b32.xlu2 %v1010_v43, %s3093_s27 }
 0x120   :  { %1016 = vrot.lane.b32.xlu1 %v1009_v14, %s3093_s27  ;;  %1014 = vrot.lane.b32.xlu0 %v1008_v30, %s3093_s27  ;;  %v3440_v30 = vld [vmem:[%s4852_s1 + $0x40] sm:$0x3]  ;;  %v1070_v14 = vstv %s2871_s10  ;;  %s2936_s10 = sld [smem:[#allocation3 + $0x54]] }
 0x121   :  { %v3427_v32 = vpop.permute.xlu2 %761  ;;  %4901 = vst [vmem:[#allocation36_spill] sm:$0xff] %v3440_v30  ;;  %v1071_v33 = vmul.f32 %v3029_v26, %v1070_v14 }
 0x122   :  { %4898 = vst [vmem:[#allocation33_spill] sm:$0xff] %v3427_v32  ;;  %v3429_v36 = vpop.permute.xlu1 %702  ;;  %v3431_v13 = vpop.permute.xlu0 %700 }
 0x123   :  { %4899 = vst [vmem:[#allocation34_spill] sm:$0xff] %v3429_v36 }
 0x124   :  { %4900 = vst [vmem:[#allocation35_spill] sm:$0xff] %v3431_v13  ;;  %v1089_v13 = vstv %s2898_s13  ;;  %s3716_s13 = sld [smem:[#allocation3 + $0x9]] }
 0x125   :  { %v1090_v60 = vmul.f32 %v3029_v26, %v1089_v13 }
 0x127   :  { %1037 = vrot.lane.b32.xlu2 %v1029_v5, %s3093_s27  ;;  %v1072_v5 = vmul.f32 %v3030_v22, %v1070_v14 }
 0x128   :  { %1035 = vrot.lane.b32.xlu1 %v1028_v59, %s3093_s27  ;;  %1033 = vrot.lane.b32.xlu0 %v1027_v20, %s3093_s27  ;;  %v1073_v59 = vmul.f32 %v3440_v30, %v1070_v14  ;;  %v1108_v14 = vstv %s2925_s18  ;;  %s2905_s18 = sld [smem:[#allocation3 + $0x35]] }
 0x129   :  { %v3442_v43 = vpop.permute.xlu2 %804 }
 0x12a   :  { %4902 = vst [vmem:[#allocation37_spill] sm:$0xff] %v3442_v43  ;;  %v3450_v58 = vpop.permute.xlu1 %721  ;;  %v3452_v20 = vpop.permute.xlu0 %719 }
 0x12b   :  { %4903 = vst [vmem:[#allocation38_spill] sm:$0xff] %v3450_v58  ;;  %v1091_v58 = vmul.f32 %v3030_v22, %v1089_v13 }
 0x12c   :  { %4904 = vst [vmem:[#allocation39_spill] sm:$0xff] %v3452_v20  ;;  %v1092_v20 = vmul.f32 %v3440_v30, %v1089_v13  ;;  %v1127_v13 = vstv %s2872_s19  ;;  %s2932_s19 = sld [smem:[#allocation3 + $0x50]] }
 0x12f   :  { %1081 = vrot.lane.b32.xlu2 %v1073_v59, %s3092_s0 }
 0x130   :  { %1079 = vrot.lane.b32.xlu1 %v1072_v5, %s3092_s0  ;;  %1077 = vrot.lane.b32.xlu0 %v1071_v33, %s3092_s0 }
 0x131   :  { %v3458_v36 = vpop.permute.xlu2 %823 }
 0x132   :  { %4905 = vst [vmem:[#allocation40_spill] sm:$0xff] %v3458_v36  ;;  %v3460_v32 = vpop.permute.xlu1 %740  ;;  %v3462_v3 = vpop.permute.xlu0 %738  ;;  %v1109_v36 = vmul.f32 %v3029_v26, %v1108_v14 }
 0x133   :  { %4906 = vst [vmem:[#allocation41_spill] sm:$0xff] %v3460_v32  ;;  %v1110_v32 = vmul.f32 %v3030_v22, %v1108_v14 }
 0x134   :  { %4907 = vst [vmem:[#allocation42_spill] sm:$0xff] %v3462_v3  ;;  %v1111_v3 = vmul.f32 %v3440_v30, %v1108_v14 }
 0x137   :  { %1100 = vrot.lane.b32.xlu2 %v1092_v20, %s3092_s0 }
 0x138   :  { %1098 = vrot.lane.b32.xlu1 %v1091_v58, %s3092_s0  ;;  %1096 = vrot.lane.b32.xlu0 %v1090_v60, %s3092_s0 }
 0x139   :  { %v3468_v59 = vpop.permute.xlu2 %842 }
 0x13a   :  { %4908 = vst [vmem:[#allocation43_spill] sm:$0xff] %v3468_v59  ;;  %v3470_v5 = vpop.permute.xlu1 %759  ;;  %v3472_v33 = vpop.permute.xlu0 %757  ;;  %v1128_v59 = vmul.f32 %v3029_v26, %v1127_v13 }
 0x13b   :  { %4909 = vst [vmem:[#allocation44_spill] sm:$0xff] %v3470_v5  ;;  %v1129_v5 = vmul.f32 %v3030_v22, %v1127_v13 }
 0x13c   :  { %4910 = vst [vmem:[#allocation45_spill] sm:$0xff] %v3472_v33  ;;  %v1130_v33 = vmul.f32 %v3440_v30, %v1127_v13 }
 0x13f   :  { %1119 = vrot.lane.b32.xlu2 %v1111_v3, %s3092_s0  ;;  %v1146_v3 = vstv %s2899_s20  ;;  %s42_s20 = sld [smem:[#allocation3]] }
 0x140   :  { %1117 = vrot.lane.b32.xlu1 %v1110_v32, %s3092_s0  ;;  %1115 = vrot.lane.b32.xlu0 %v1109_v36, %s3092_s0 }
 0x141   :  { %v3478_v60 = vpop.permute.xlu2 %861 }
 0x142   :  { %4911 = vst [vmem:[#allocation46_spill] sm:$0xff] %v3478_v60  ;;  %v3480_v58 = vpop.permute.xlu1 %802  ;;  %v3482_v20 = vpop.permute.xlu0 %800  ;;  %v1147_v60 = vmul.f32 %v3029_v26, %v1146_v3 }
 0x143   :  { %4912 = vst [vmem:[#allocation47_spill] sm:$0xff] %v3480_v58  ;;  %v1148_v58 = vmul.f32 %v3030_v22, %v1146_v3 }
 0x144   :  { %4913 = vst [vmem:[#allocation48_spill] sm:$0xff] %v3482_v20  ;;  %v1149_v20 = vmul.f32 %v3440_v30, %v1146_v3 }
 0x147   :  { %1138 = vrot.lane.b32.xlu2 %v1130_v33, %s3093_s27 }
 0x148   :  { %1136 = vrot.lane.b32.xlu1 %v1129_v5, %s3093_s27  ;;  %1134 = vrot.lane.b32.xlu0 %v1128_v59, %s3093_s27  ;;  %v1165_v5 = vstv %s2926_s21  ;;  %s2933_s21 = sld [smem:[#allocation3 + $0x51]] }
 0x149   :  { %v3488_v32 = vpop.permute.xlu2 %880 }
 0x14a   :  { %4914 = vst [vmem:[#allocation49_spill] sm:$0xff] %v3488_v32  ;;  %v3490_v36 = vpop.permute.xlu1 %821  ;;  %v3492_v14 = vpop.permute.xlu0 %819  ;;  %v1166_v32 = vmul.f32 %v3029_v26, %v1165_v5  ;;  %v3523_v26 = vld [vmem:[%s4852_s1 + $0x31] sm:$0xff] }
 0x14b   :  { %4915 = vst [vmem:[#allocation50_spill] sm:$0xff] %v3490_v36  ;;  %v1167_v36 = vmul.f32 %v3030_v22, %v1165_v5  ;;  %v3518_v22 = vld [vmem:[%s4852_s1 + $0x39] sm:$0xff] }
 0x14c   :  { %4916 = vst [vmem:[#allocation51_spill] sm:$0xff] %v3492_v14  ;;  %v1168_v14 = vmul.f32 %v3440_v30, %v1165_v5 }
 0x14d   :  { %4922 = vst [vmem:[#allocation57_spill] sm:$0xff] %v3518_v22 }
 0x14e   :  { %4923 = vst [vmem:[#allocation58_spill] sm:$0xff] %v3523_v26 }
 0x14f   :  { %1157 = vrot.lane.b32.xlu2 %v1149_v20, %s3093_s27 }
 0x150   :  { %1155 = vrot.lane.b32.xlu1 %v1148_v58, %s3093_s27  ;;  %1153 = vrot.lane.b32.xlu0 %v1147_v60, %s3093_s27  ;;  %v3511_v60 = vld [vmem:[%s4852_s1 + $0x41] sm:$0x3]  ;;  %v1208_v58 = vstv %s2874_s22  ;;  %s2879_s22 = sld [smem:[#allocation3 + $0x1b]] }
 0x151   :  { %v3498_v59 = vpop.permute.xlu2 %899  ;;  %4920 = vst [vmem:[#allocation55_spill] sm:$0xff] %v3511_v60  ;;  %v1209_v5 = vmul.f32 %v3523_v26, %v1208_v58 }
 0x152   :  { %4917 = vst [vmem:[#allocation52_spill] sm:$0xff] %v3498_v59  ;;  %v3500_v33 = vpop.permute.xlu1 %840  ;;  %v3502_v13 = vpop.permute.xlu0 %838 }
 0x153   :  { %4918 = vst [vmem:[#allocation53_spill] sm:$0xff] %v3500_v33 }
 0x154   :  { %4919 = vst [vmem:[#allocation54_spill] sm:$0xff] %v3502_v13  ;;  %v1227_v13 = vstv %s2901_s25  ;;  %s2938_s25 = sld [smem:[#allocation3 + $0x56]] }
 0x155   :  { %v1229_v30 = vmul.f32 %v3518_v22, %v1227_v13 }
 0x157   :  { %1176 = vrot.lane.b32.xlu2 %v1168_v14, %s3093_s27  ;;  %v1210_v14 = vmul.f32 %v3518_v22, %v1208_v58 }
 0x158   :  { %1174 = vrot.lane.b32.xlu1 %v1167_v36, %s3093_s27  ;;  %1172 = vrot.lane.b32.xlu0 %v1166_v32, %s3093_s27  ;;  %v1211_v36 = vmul.f32 %v3511_v60, %v1208_v58  ;;  %v1228_v58 = vmul.f32 %v3523_v26, %v1227_v13 }
 0x159   :  { %v3513_v20 = vpop.permute.xlu2 %942 }
 0x15a   :  { %4921 = vst [vmem:[#allocation56_spill] sm:$0xff] %v3513_v20  ;;  %v3525_v3 = vpop.permute.xlu1 %859  ;;  %v3527_v32 = vpop.permute.xlu0 %857 }
 0x15b   :  { %4924 = vst [vmem:[#allocation59_spill] sm:$0xff] %v3525_v3 }
 0x15c   :  { %4925 = vst [vmem:[#allocation60_spill] sm:$0xff] %v3527_v32  ;;  %v1230_v32 = vmul.f32 %v3511_v60, %v1227_v13 }
 0x15f   :  { %1219 = vrot.lane.b32.xlu2 %v1211_v36, %s3092_s0  ;;  %v1246_v36 = vstv %s2928_s4  ;;  %s2858_s4 = sld [smem:[#allocation3 + $0x6]] }
 0x160   :  { %1217 = vrot.lane.b32.xlu1 %v1210_v14, %s3092_s0  ;;  %1215 = vrot.lane.b32.xlu0 %v1209_v5, %s3092_s0  ;;  %v1247_v13 = vmul.f32 %v3523_v26, %v1246_v36 }
 0x161   :  { %v3535_v33 = vpop.permute.xlu2 %961 }
 0x162   :  { %4926 = vst [vmem:[#allocation61_spill] sm:$0xff] %v3535_v33  ;;  %v3537_v59 = vpop.permute.xlu1 %878  ;;  %v3539_v3 = vpop.permute.xlu0 %876  ;;  %v1248_v33 = vmul.f32 %v3518_v22, %v1246_v36 }
 0x163   :  { %4927 = vst [vmem:[#allocation62_spill] sm:$0xff] %v3537_v59 }
 0x164   :  { %4928 = vst [vmem:[#allocation63_spill] sm:$0xff] %v3539_v3  ;;  %v1249_v3 = vmul.f32 %v3511_v60, %v1246_v36 }
 0x165   :  { %v3714_v12 = vstv %s2858_s4  ;;  %s2994_s4 = sld [smem:[#allocation3 + $0x8e]] }
 0x167   :  { %1238 = vrot.lane.b32.xlu2 %v1230_v32, %s3092_s0 }
 0x168   :  { %1236 = vrot.lane.b32.xlu1 %v1229_v30, %s3092_s0  ;;  %1234 = vrot.lane.b32.xlu0 %v1228_v58, %s3092_s0  ;;  %v1265_v30 = vstv %s2875_s5  ;;  %s2941_s5 = sld [smem:[#allocation3 + $0x59]] }
 0x169   :  { %v3547_v14 = vpop.permute.xlu2 %980  ;;  %v1266_v36 = vmul.f32 %v3523_v26, %v1265_v30 }
 0x16a   :  { %4929 = vst [vmem:[#allocation64_spill] sm:$0xff] %v3547_v14  ;;  %v3549_v5 = vpop.permute.xlu1 %897  ;;  %v3551_v59 = vpop.permute.xlu0 %895  ;;  %v1267_v14 = vmul.f32 %v3518_v22, %v1265_v30 }
 0x16b   :  { %4930 = vst [vmem:[#allocation65_spill] sm:$0xff] %v3549_v5 }
 0x16c   :  { %4931 = vst [vmem:[#allocation66_spill] sm:$0xff] %v3551_v59  ;;  %v1268_v59 = vmul.f32 %v3511_v60, %v1265_v30 }
 0x16f   :  { %1257 = vrot.lane.b32.xlu2 %v1249_v3, %s3092_s0 }
 0x170   :  { %1255 = vrot.lane.b32.xlu1 %v1248_v33, %s3092_s0  ;;  %1253 = vrot.lane.b32.xlu0 %v1247_v13, %s3092_s0  ;;  %v1284_v33 = vstv %s2902_s6  ;;  %s3825_s6 = sld [smem:[#allocation3 + $0x42]] }
 0x171   :  { %v3559_v32 = vpop.permute.xlu2 %999  ;;  %v1285_v30 = vmul.f32 %v3523_v26, %v1284_v33 }
 0x172   :  { %4932 = vst [vmem:[#allocation67_spill] sm:$0xff] %v3559_v32  ;;  %v3561_v58 = vpop.permute.xlu1 %940  ;;  %v3563_v5 = vpop.permute.xlu0 %938  ;;  %v1286_v32 = vmul.f32 %v3518_v22, %v1284_v33 }
 0x173   :  { %4933 = vst [vmem:[#allocation68_spill] sm:$0xff] %v3561_v58 }
 0x174   :  { %4934 = vst [vmem:[#allocation69_spill] sm:$0xff] %v3563_v5  ;;  %v1287_v5 = vmul.f32 %v3511_v60, %v1284_v33 }
 0x177   :  { %1276 = vrot.lane.b32.xlu2 %v1268_v59, %s3093_s27  ;;  %v1303_v59 = vstv %s2929_s7  ;;  %s3699_s7 = sld [smem:[#allocation3 + $0x39]] }
 0x178   :  { %1274 = vrot.lane.b32.xlu1 %v1267_v14, %s3093_s27  ;;  %1272 = vrot.lane.b32.xlu0 %v1266_v36, %s3093_s27  ;;  %v1304_v33 = vmul.f32 %v3523_v26, %v1303_v59 }
 0x179   :  { %v3571_v3 = vpop.permute.xlu2 %1018 }
 0x17a   :  { %4935 = vst [vmem:[#allocation70_spill] sm:$0xff] %v3571_v3  ;;  %v3573_v13 = vpop.permute.xlu1 %959  ;;  %v3575_v58 = vpop.permute.xlu0 %957  ;;  %v1305_v3 = vmul.f32 %v3518_v22, %v1303_v59  ;;  %v1365_v22 = vstv %s2904_s11  ;;  %s2997_s11 = sld [smem:[#allocation3 + $0x91]] }
 0x17b   :  { %4936 = vst [vmem:[#allocation71_spill] sm:$0xff] %v3573_v13 }
 0x17c   :  { %4937 = vst [vmem:[#allocation72_spill] sm:$0xff] %v3575_v58  ;;  %v1306_v58 = vmul.f32 %v3511_v60, %v1303_v59 }
 0x17f   :  { %1295 = vrot.lane.b32.xlu2 %v1287_v5, %s3093_s27  ;;  %v3598_v5 = vld [vmem:[%s4852_s1 + $0x42] sm:$0x3] }
 0x180   :  { %1293 = vrot.lane.b32.xlu1 %v1286_v32, %s3093_s27  ;;  %1291 = vrot.lane.b32.xlu0 %v1285_v30, %s3093_s27  ;;  %4941 = vst [vmem:[#allocation76_spill] sm:$0xff] %v3598_v5  ;;  %v1346_v32 = vstv %s2877_s8  ;;  %s3836_s8 = sld [smem:[#allocation3 + $0x12]] }
 0x181   :  { %v3583_v14 = vpop.permute.xlu2 %1037 }
 0x182   :  { %4938 = vst [vmem:[#allocation73_spill] sm:$0xff] %v3583_v14  ;;  %v3585_v36 = vpop.permute.xlu1 %978  ;;  %v3587_v13 = vpop.permute.xlu0 %976 }
 0x183   :  { %4939 = vst [vmem:[#allocation74_spill] sm:$0xff] %v3585_v36 }
 0x184   :  { %4940 = vst [vmem:[#allocation75_spill] sm:$0xff] %v3587_v13  ;;  %v3605_v13 = vld [vmem:[%s4852_s1 + $0x3a] sm:$0xff] }
 0x185   :  { %4943 = vst [vmem:[#allocation78_spill] sm:$0xff] %v3605_v13  ;;  %v1348_v36 = vmul.f32 %v3605_v13, %v1346_v32 }
 0x187   :  { %1314 = vrot.lane.b32.xlu2 %v1306_v58, %s3093_s27  ;;  %v3610_v58 = vld [vmem:[%s4852_s1 + $0x32] sm:$0xff] }
 0x188   :  { %1312 = vrot.lane.b32.xlu1 %v1305_v3, %s3093_s27  ;;  %1310 = vrot.lane.b32.xlu0 %v1304_v33, %s3093_s27  ;;  %4944 = vst [vmem:[#allocation79_spill] sm:$0xff] %v3610_v58  ;;  %v1349_v33 = vmul.f32 %v3598_v5, %v1346_v32  ;;  %v1347_v26 = vmul.f32 %v3610_v58, %v1346_v32 }
 0x189   :  { %v3600_v30 = vpop.permute.xlu2 %1081  ;;  %v1366_v32 = vmul.f32 %v3610_v58, %v1365_v22 }
 0x18a   :  { %4942 = vst [vmem:[#allocation77_spill] sm:$0xff] %v3600_v30  ;;  %v3612_v3 = vpop.permute.xlu1 %997  ;;  %v3614_v59 = vpop.permute.xlu0 %995  ;;  %v1367_v30 = vmul.f32 %v3605_v13, %v1365_v22 }
 0x18b   :  { %4945 = vst [vmem:[#allocation80_spill] sm:$0xff] %v3612_v3 }
 0x18c   :  { %4946 = vst [vmem:[#allocation81_spill] sm:$0xff] %v3614_v59  ;;  %v1368_v59 = vmul.f32 %v3598_v5, %v1365_v22 }
 0x18f   :  { %1357 = vrot.lane.b32.xlu2 %v1349_v33, %s3092_s0 }
 0x190   :  { %1355 = vrot.lane.b32.xlu1 %v1348_v36, %s3092_s0  ;;  %1353 = vrot.lane.b32.xlu0 %v1347_v26, %s3092_s0  ;;  %v1384_v26 = vstv %s2931_s16  ;;  %s3018_s16 = sld [smem:[#allocation3 + $0xa6]] }
 0x191   :  { %v3622_v14 = vpop.permute.xlu2 %1100  ;;  %v1385_v22 = vmul.f32 %v3610_v58, %v1384_v26 }
 0x192   :  { %4947 = vst [vmem:[#allocation82_spill] sm:$0xff] %v3622_v14  ;;  %v3624_v60 = vpop.permute.xlu1 %1016  ;;  %v3626_v3 = vpop.permute.xlu0 %1014  ;;  %v1386_v14 = vmul.f32 %v3605_v13, %v1384_v26 }
 0x193   :  { %4948 = vst [vmem:[#allocation83_spill] sm:$0xff] %v3624_v60 }
 0x194   :  { %4949 = vst [vmem:[#allocation84_spill] sm:$0xff] %v3626_v3  ;;  %v1387_v3 = vmul.f32 %v3598_v5, %v1384_v26 }
 0x197   :  { %1376 = vrot.lane.b32.xlu2 %v1368_v59, %s3092_s0 }
 0x198   :  { %1374 = vrot.lane.b32.xlu1 %v1367_v30, %s3092_s0  ;;  %1372 = vrot.lane.b32.xlu0 %v1366_v32, %s3092_s0  ;;  %v1403_v30 = vstv %s2878_s17  ;;  %s2966_s17 = sld [smem:[#allocation3 + $0x72]] }
 0x199   :  { %v3634_v36 = vpop.permute.xlu2 %1119  ;;  %v1404_v26 = vmul.f32 %v3610_v58, %v1403_v30 }
 0x19a   :  { %4950 = vst [vmem:[#allocation85_spill] sm:$0xff] %v3634_v36  ;;  %v3636_v33 = vpop.permute.xlu1 %1035  ;;  %v3638_v60 = vpop.permute.xlu0 %1033  ;;  %v1405_v36 = vmul.f32 %v3605_v13, %v1403_v30 }
 0x19b   :  { %4951 = vst [vmem:[#allocation86_spill] sm:$0xff] %v3636_v33 }
 0x19c   :  { %4952 = vst [vmem:[#allocation87_spill] sm:$0xff] %v3638_v60  ;;  %v1406_v60 = vmul.f32 %v3598_v5, %v1403_v30 }
 0x19f   :  { %1395 = vrot.lane.b32.xlu2 %v1387_v3, %s3092_s0 }
 0x1a0   :  { %1393 = vrot.lane.b32.xlu1 %v1386_v14, %s3092_s0  ;;  %1391 = vrot.lane.b32.xlu0 %v1385_v22, %s3092_s0  ;;  %v1422_v14 = vstv %s2905_s18  ;;  %s2990_s18 = sld [smem:[#allocation3 + $0x8a]] }
 0x1a1   :  { %v3646_v59 = vpop.permute.xlu2 %1138  ;;  %v1423_v30 = vmul.f32 %v3610_v58, %v1422_v14 }
 0x1a2   :  { %4953 = vst [vmem:[#allocation88_spill] sm:$0xff] %v3646_v59  ;;  %v3648_v32 = vpop.permute.xlu1 %1079  ;;  %v3650_v33 = vpop.permute.xlu0 %1077  ;;  %v1424_v59 = vmul.f32 %v3605_v13, %v1422_v14 }
 0x1a3   :  { %4954 = vst [vmem:[#allocation89_spill] sm:$0xff] %v3648_v32 }
 0x1a4   :  { %4955 = vst [vmem:[#allocation90_spill] sm:$0xff] %v3650_v33  ;;  %v1425_v33 = vmul.f32 %v3598_v5, %v1422_v14 }
 0x1a7   :  { %1414 = vrot.lane.b32.xlu2 %v1406_v60, %s3093_s27  ;;  %v1441_v60 = vstv %s2932_s19  ;;  %s2971_s19 = sld [smem:[#allocation3 + $0x77]] }
 0x1a8   :  { %1412 = vrot.lane.b32.xlu1 %v1405_v36, %s3093_s27  ;;  %1410 = vrot.lane.b32.xlu0 %v1404_v26, %s3093_s27  ;;  %v1443_v14 = vmul.f32 %v3605_v13, %v1441_v60  ;;  %v1442_v20 = vmul.f32 %v3610_v58, %v1441_v60 }
 0x1a9   :  { %v3658_v3 = vpop.permute.xlu2 %1157 }
 0x1aa   :  { %4956 = vst [vmem:[#allocation91_spill] sm:$0xff] %v3658_v3  ;;  %v3660_v22 = vpop.permute.xlu1 %1098  ;;  %v3662_v32 = vpop.permute.xlu0 %1096  ;;  %v1444_v3 = vmul.f32 %v3598_v5, %v1441_v60  ;;  %v214_v5 = vstv %s2934_s23  ;;  %s3774_s23 = sld [smem:[#allocation3 + $0x3f]] }
 0x1ab   :  { %4957 = vst [vmem:[#allocation92_spill] sm:$0xff] %v3660_v22  ;;  %v219_v22 = vstv %s42_s20  ;;  %s3019_s20 = sld [smem:[#allocation3 + $0xa7]] }
 0x1ac   :  { %4958 = vst [vmem:[#allocation93_spill] sm:$0xff] %v3662_v32 }
 0x1af   :  { %1433 = vrot.lane.b32.xlu2 %v1425_v33, %s3093_s27  ;;  %v3055_v33 = vld [vmem:[%s4852_s1 + $0x10] sm:$0x3] }
 0x1b0   :  { %1431 = vrot.lane.b32.xlu1 %v1424_v59, %s3093_s27  ;;  %1429 = vrot.lane.b32.xlu0 %v1423_v30, %s3093_s27  ;;  %v222_v59 = vmul.f32 %v3055_v33, %v219_v22  ;;  %v213_v30 = vstv %s2933_s21  ;;  %s3748_s21 = sld [smem:[#allocation3 + $0x24]] }
 0x1b1   :  { %v3670_v36 = vpop.permute.xlu2 %1176 }
 0x1b2   :  { %4959 = vst [vmem:[#allocation94_spill] sm:$0xff] %v3670_v36  ;;  %v3672_v26 = vpop.permute.xlu1 %1117  ;;  %v3674_v32 = vpop.permute.xlu0 %1115  ;;  %v225_v60 = vadd.f32 %v222_v59, %v213_v30 }
 0x1b3   :  { %4960 = vst [vmem:[#allocation95_spill] sm:$0xff] %v3672_v26 }
 0x1b4   :  { %4961 = vst [vmem:[#allocation96_spill] sm:$0xff] %v3674_v32  ;;  %v226_v32 = vstv %s2879_s22  ;;  %v258_v44 = vadd.f32 %v3199_v10, %v225_v60  ;;  %s3756_s22 = sld [smem:[#allocation3 + $0xc]] }
 0x1b5   :  { %v229_v13 = vmul.f32 %v3055_v33, %v226_v32 }
 0x1b6   :  { %v315_v59 = vadd.f32 %v3197_v9, %v258_v44  ;;  %v3058_v9 = vld [vmem:[%s4852_s1] sm:$0xff] }
 0x1b7   :  { %1452 = vrot.lane.b32.xlu2 %v1444_v3, %s3093_s27  ;;  %v232_v45 = vadd.f32 %v229_v13, %v214_v5  ;;  %v233_v3 = vstv %s2906_s24  ;;  %v220_v44 = vmul.f32 %v3058_v9, %v219_v22  ;;  %s3938_s24 = sld [smem:[#allocation3 + $0x18]] }
 0x1b8   :  { %1450 = vrot.lane.b32.xlu1 %v1443_v14, %s3093_s27  ;;  %1448 = vrot.lane.b32.xlu0 %v1442_v20, %s3093_s27  ;;  %v236_v14 = vmul.f32 %v3055_v33, %v233_v3  ;;  %v3057_v33 = vld [vmem:[%s4852_s1 + $0x8] sm:$0xff]  ;;  %v234_v50 = vmul.f32 %v3058_v9, %v233_v3 }
 0x1b9   :  { %v3685_v26 = vpop.permute.xlu2 %1219  ;;  %v228_v60 = vmul.f32 %v3057_v33, %v226_v32  ;;  %v221_v43 = vmul.f32 %v3057_v33, %v219_v22  ;;  %v235_v53 = vmul.f32 %v3057_v33, %v233_v3  ;;  %v223_v8 = vadd.f32 %v220_v44, %v213_v30 }
 0x1ba   :  { %4962 = vst [vmem:[#allocation97_spill] sm:$0xff] %v3685_v26  ;;  %v3687_v58 = vpop.permute.xlu1 %1136  ;;  %v3689_v36 = vpop.permute.xlu0 %1134  ;;  %v277_v26 = vadd.f32 %v3187_v63, %v232_v45  ;;  %v227_v45 = vmul.f32 %v3058_v9, %v226_v32 }
 0x1bb   :  { %4963 = vst [vmem:[#allocation98_spill] sm:$0xff] %v3687_v58  ;;  %v231_v39 = vadd.f32 %v228_v60, %v214_v5  ;;  %v224_v3 = vadd.f32 %v221_v43, %v213_v30  ;;  %v3059_v60 = vld [vmem:[%s4852_s1 + $0x12] sm:$0x3] }
 0x1bc   :  { %4964 = vst [vmem:[#allocation99_spill] sm:$0xff] %v3689_v36  ;;  %v3056_v36 = vld [vmem:[%s4852_s1 + $0x11] sm:$0x3]  ;;  %v230_v22 = vadd.f32 %v227_v45, %v214_v5  ;;  %v256_v5 = vadd.f32 %v3201_v11, %v223_v8  ;;  %v502_v8 = vstv %s3712_s12  ;;  %s3017_s12 = sld [smem:[#allocation3 + $0xa5]] }
 0x1bd   :  { %v360_v58 = vmul.f32 %v3056_v36, %v357_v2  ;;  %v367_v51 = vmul.f32 %v3056_v36, %v364_v52 }
 0x1c1   :  { %v3692_v20 = vpop.permute.xlu2 %1238 }
 0x1c2   :  { %4965 = vst [vmem:[#allocation100_spill] sm:$0xff] %v3692_v20  ;;  %v3701_v13 = vpop.permute.xlu1 %1155  ;;  %v3703_v10 = vpop.permute.xlu0 %1153  ;;  %v215_v20 = vstv %s2935_s29  ;;  %s3789_s29 = sld [smem:[#allocation3 + $0x27]] }
 0x1c3   :  { %4966 = vst [vmem:[#allocation101_spill] sm:$0xff] %v3701_v13  ;;  %v239_v63 = vadd.f32 %v236_v14, %v215_v20  ;;  %v334_v13 = vadd.f32 %v3206_v16, %v277_v26  ;;  %v238_v33 = vadd.f32 %v235_v53, %v215_v20  ;;  %v237_v9 = vadd.f32 %v234_v50, %v215_v20  ;;  %v3060_v53 = vld [vmem:[%s4852_s1 + $0x9] sm:$0xff] }
 0x1c4   :  { %4967 = vst [vmem:[#allocation102_spill] sm:$0xff] %v3703_v10  ;;  %v363_v10 = vadd.f32 %v360_v58, %v315_v59  ;;  %v371_v26 = vstv %s3699_s7  ;;  %v276_v50 = vadd.f32 %v3176_v56, %v231_v39  ;;  %v275_v56 = vadd.f32 %v3208_v17, %v230_v22  ;;  %s3827_s7 = sld [smem:[#allocation3 + $0x2a]] }
 0x1c5   :  { %v296_v14 = vadd.f32 %v3192_v4, %v239_v63  ;;  %v370_v58 = vadd.f32 %v367_v51, %v334_v13  ;;  %v498_v4 = vmul.f32 %v3059_v60, %v3714_v12  ;;  %v359_v51 = vmul.f32 %v3060_v53, %v357_v2 }
 0x1c6   :  { %v396_v32 = vadd.f32 %v3229_v31, %v363_v10  ;;  %v374_v20 = vmul.f32 %v3056_v36, %v371_v26  ;;  %v366_v13 = vmul.f32 %v3060_v53, %v364_v52  ;;  %v257_v39 = vadd.f32 %v3210_v18, %v224_v3 }
 0x1c7   :  { %v353_v30 = vadd.f32 %v3215_v23, %v296_v14  ;;  %v373_v44 = vmul.f32 %v3060_v53, %v371_v26  ;;  %v295_v45 = vadd.f32 %v3217_v24, %v238_v33  ;;  %v313_v23 = vadd.f32 %v3239_v35, %v256_v5 }
 0x1c8   :  { %v453_v59 = vadd.f32 %v3265_v54, %v396_v32  ;;  %v3061_v54 = vld [vmem:[%s4852_s1 + $0x1] sm:$0xff]  ;;  %v294_v32 = vadd.f32 %v3219_v25, %v237_v9  ;;  %v314_v11 = vadd.f32 %v3237_v34, %v257_v39  ;;  %v3754_v17 = vstv %s3716_s13  ;;  %s3871_s13 = sld [smem:[#allocation3 + $0x45]] }
 0x1c9   :  { %v3722_v16 = vpop.permute.xlu2 %1257  ;;  %v358_v43 = vmul.f32 %v3061_v54, %v357_v2  ;;  %v365_v10 = vmul.f32 %v3061_v54, %v364_v52  ;;  %v415_v2 = vadd.f32 %v3245_v40, %v370_v58  ;;  %v333_v18 = vadd.f32 %v3247_v41, %v276_v50 }
 0x1ca   :  { %v3730_v63 = vpop.permute.xlu1 %1174  ;;  %v3732_v31 = vpop.permute.xlu0 %1172  ;;  %v332_v24 = vadd.f32 %v3249_v42, %v275_v56  ;;  %v377_v25 = vadd.f32 %v374_v20, %v353_v30  ;;  %v352_v40 = vadd.f32 %v3257_v48, %v295_v45  ;;  %v351_v36 = vadd.f32 %v3259_v49, %v294_v32  ;;  %v4969_v45 = vld [vmem:[#allocation6_spill] sm:$0xff] }
 0x1cb   :  { %4968 = vst [vmem:[#allocation103_spill] sm:$0xff] %v3732_v31  ;;  %v501_v31 = vadd.f32 %v498_v4, %v453_v59  ;;  %v372_v14 = vmul.f32 %v3061_v54, %v371_v26  ;;  %v509_v34 = vstv %s3720_s14  ;;  %v472_v35 = vadd.f32 %v3275_v62, %v415_v2  ;;  %v4970_v2 = vld [vmem:[#allocation7_spill] sm:$0xff]  ;;  %s3877_s14 = sld [smem:[#allocation3 + $0x2d]] }
 0x1cc   :  { %v505_v3 = vmul.f32 %v3059_v60, %v502_v8  ;;  %v637_v41 = vmul.f32 %v3227_v29, %v3754_v17  ;;  %v361_v48 = vadd.f32 %v358_v43, %v313_v23  ;;  %v434_v49 = vadd.f32 %v3255_v47, %v377_v25  ;;  %v3062_v29 = vld [vmem:[%s4852_s1 + $0xa] sm:$0xff]  ;;  %v4971_v23 = vld [vmem:[#allocation8_spill] sm:$0xff] }
 0x1cd   :  { %v534_v52 = vadd.f32 %v3300_v21, %v501_v31  ;;  %v362_v21 = vadd.f32 %v359_v51, %v314_v11  ;;  %v369_v58 = vadd.f32 %v366_v13, %v333_v18  ;;  %v368_v26 = vadd.f32 %v365_v10, %v332_v24  ;;  %v3063_v31 = vld [vmem:[%s4852_s1 + $0x2] sm:$0xff] }
 0x1ce   :  { %v512_v62 = vmul.f32 %v3059_v60, %v509_v34  ;;  %v376_v59 = vadd.f32 %v373_v44, %v352_v40  ;;  %v497_v4 = vmul.f32 %v3062_v29, %v3714_v12  ;;  %v496_v50 = vmul.f32 %v3063_v31, %v3714_v12  ;;  %v3064_v10 = vld [vmem:[%s4852_s1 + $0x28] sm:$0x3] }
 0x1cf   :  { %v591_v33 = vadd.f32 %v3336_v61, %v534_v52  ;;  %v375_v61 = vadd.f32 %v372_v14, %v351_v36  ;;  %v395_v47 = vadd.f32 %v3267_v55, %v362_v21  ;;  %v508_v53 = vadd.f32 %v505_v3, %v472_v35  ;;  %v4973_v52 = vld [vmem:[#allocation11_spill] sm:$0xff]  ;;  %v4974_v21 = vld [vmem:[#allocation9_spill] sm:$0xff] }
 0x1d0   :  { %v3787_v54 = vstv %s3748_s21  ;;  %v394_v60 = vadd.f32 %v3269_v57, %v361_v48  ;;  %v504_v43 = vmul.f32 %v3062_v29, %v502_v8  ;;  %v503_v5 = vmul.f32 %v3063_v31, %v502_v8  ;;  %s2993_s21 = sld [smem:[#allocation3 + $0x8d]] }
 0x1d1   :  { %v3764_v22 = vpop.permute.xlu2 %1276  ;;  %v640_v51 = vadd.f32 %v637_v41, %v591_v33  ;;  %v3793_v30 = vstv %s3756_s22  ;;  %v414_v20 = vadd.f32 %v3277_v0, %v369_v58  ;;  %v491_v12 = vadd.f32 %v3285_v7, %v434_v49  ;;  %s3922_s22 = sld [smem:[#allocation3 + $0x48]] }
 0x1d2   :  { %v3770_v42 = vpop.permute.xlu1 %1217  ;;  %v3772_v9 = vpop.permute.xlu0 %1215  ;;  %v553_v55 = vadd.f32 %v3316_v37, %v508_v53  ;;  %v413_v56 = vadd.f32 %v3279_v1, %v368_v26  ;;  %v452_v39 = vadd.f32 %v3308_v27, %v395_v47  ;;  %v451_v57 = vadd.f32 %v3310_v28, %v394_v60  ;;  %v4975_v26 = vld [vmem:[#allocation22_spill] sm:$0xff]  ;;  %v4977_v47 = vld [vmem:[#allocation12_spill] sm:$0xff] }
 0x1d3   :  { %v673_v13 = vadd.f32 %v3371_v6, %v640_v51  ;;  %v644_v44 = vmul.f32 %v3064_v10, %v3787_v54  ;;  %v471_v7 = vadd.f32 %v3318_v38, %v414_v20  ;;  %v775_v1 = vmul.f32 %v3298_v19, %v3793_v30  ;;  %v4978_v51 = vld [vmem:[#allocation16_spill] sm:$0xff] }
 0x1d4   :  { %v610_v37 = vadd.f32 %v3346_v15, %v553_v55  ;;  %v433_v32 = vadd.f32 %v4969_v45, %v376_v59  ;;  %v432_v11 = vadd.f32 %v4970_v2, %v375_v61  ;;  %v470_v8 = vadd.f32 %v4971_v23, %v413_v56  ;;  %v3065_v59 = vld [vmem:[%s4852_s1 + $0x20] sm:$0xff]  ;;  %v4980_v56 = vld [vmem:[#allocation46_spill] sm:$0xff]  ;;  %v4984_v2 = vld [vmem:[#allocation15_spill] sm:$0xff] }
 0x1d5   :  { %v730_v6 = vadd.f32 %v3407_v46, %v673_v13  ;;  %v648_v18 = vstv %s3774_s23  ;;  %v515_v38 = vadd.f32 %v512_v62, %v491_v12  ;;  %v511_v15 = vmul.f32 %v3062_v29, %v509_v34  ;;  %v4972_v46 = vld [vmem:[#allocation10_spill] sm:$0xff]  ;;  %v3066_v29 = vld [vmem:[%s4852_s1 + $0x18] sm:$0xff]  ;;  %s3928_s23 = sld [smem:[#allocation3 + $0x30]] }
 0x1d6   :  { %v510_v24 = vmul.f32 %v3063_v31, %v509_v34  ;;  %v490_v25 = vadd.f32 %v4972_v46, %v433_v32  ;;  %v489_v40 = vadd.f32 %v4973_v52, %v432_v11  ;;  %v500_v36 = vadd.f32 %v497_v4, %v452_v39  ;;  %v4976_v31 = vld [vmem:[#allocation37_spill] sm:$0xff]  ;;  %v4979_v12 = vld [vmem:[#allocation30_spill] sm:$0xff]  ;;  %v4987_v46 = vld [vmem:[#allocation20_spill] sm:$0xff] }
 0x1d7   :  { %v499_v14 = vadd.f32 %v496_v50, %v451_v57  ;;  %v507_v35 = vadd.f32 %v504_v43, %v471_v7  ;;  %v647_v3 = vadd.f32 %v644_v44, %v610_v37  ;;  %v651_v33 = vmul.f32 %v3064_v10, %v648_v18  ;;  %v4981_v57 = vld [vmem:[#allocation19_spill] sm:$0xff]  ;;  %v4982_v7 = vld [vmem:[#allocation13_spill] sm:$0xff] }
 0x1d8   :  { %v778_v41 = vadd.f32 %v775_v1, %v730_v6  ;;  %v572_v48 = vadd.f32 %v4974_v21, %v515_v38  ;;  %v506_v49 = vadd.f32 %v503_v5, %v470_v8  ;;  %v3831_v58 = vstv %s3789_s29  ;;  %v4983_v6 = vld [vmem:[#allocation14_spill] sm:$0xff]  ;;  %v4985_v11 = vld [vmem:[#allocation17_spill] sm:$0xff]  ;;  %v4990_v21 = vld [vmem:[#allocation24_spill] sm:$0xff]  ;;  %s3981_s29 = sld [smem:[#allocation3 + $0x33]] }
 0x1d9   :  { %v3808_v0 = vpop.permute.xlu2 %1295  ;;  %v3834_v34 = vstv %s3795_s30  ;;  %v692_v62 = vadd.f32 %v4975_v26, %v647_v3  ;;  %v636_v61 = vmul.f32 %v3065_v59, %v3754_v17  ;;  %v635_v4 = vmul.f32 %v3066_v29, %v3754_v17  ;;  %v4988_v52 = vld [vmem:[#allocation21_spill] sm:$0xff]  ;;  %s2967_s30 = sld [smem:[#allocation3 + $0x73]] }
 0x1da   :  { %v3815_v27 = vpop.permute.xlu1 %1236  ;;  %v3817_v28 = vpop.permute.xlu0 %1234  ;;  %v811_v50 = vadd.f32 %v4976_v31, %v778_v41  ;;  %v533_v53 = vadd.f32 %v4977_v47, %v500_v36  ;;  %v629_v60 = vadd.f32 %v4978_v51, %v572_v48  ;;  %v514_v43 = vadd.f32 %v511_v15, %v490_v25  ;;  %v4986_v15 = vld [vmem:[#allocation18_spill] sm:$0xff] }
 0x1db   :  { %v513_v5 = vadd.f32 %v510_v24, %v489_v40  ;;  %v749_v55 = vadd.f32 %v4979_v12, %v692_v62  ;;  %v782_v13 = vmul.f32 %v3298_v19, %v3831_v58  ;;  %v913_v17 = vmul.f32 %v4981_v57, %v3834_v34  ;;  %v3067_v12 = vld [vmem:[%s4852_s1 + $0x29] sm:$0x3] }
 0x1dc   :  { %v868_v39 = vadd.f32 %v4980_v56, %v811_v50  ;;  %v532_v37 = vadd.f32 %v4982_v7, %v499_v14  ;;  %v552_v1 = vadd.f32 %v4983_v6, %v507_v35  ;;  %v643_v45 = vmul.f32 %v3065_v59, %v3787_v54  ;;  %v4989_v14 = vld [vmem:[#allocation23_spill] sm:$0xff]  ;;  %v4994_v50 = vld [vmem:[#allocation40_spill] sm:$0xff]  ;;  %v4997_v56 = vld [vmem:[#allocation49_spill] sm:$0xff] }
 0x1dd   :  { %v642_v32 = vmul.f32 %v3066_v29, %v3787_v54  ;;  %v551_v19 = vadd.f32 %v4984_v2, %v506_v49  ;;  %v571_v23 = vadd.f32 %v4985_v11, %v514_v43  ;;  %v650_v8 = vmul.f32 %v3065_v59, %v648_v18  ;;  %v4996_v43 = vld [vmem:[#allocation33_spill] sm:$0xff]  ;;  %v4998_v7 = vld [vmem:[#allocation67_spill] sm:$0xff]  ;;  %v4999_v6 = vld [vmem:[#allocation36_spill] sm:$0xff] }
 0x1de   :  { %v649_v38 = vmul.f32 %v3066_v29, %v648_v18  ;;  %v570_v24 = vadd.f32 %v4986_v15, %v513_v5  ;;  %v590_v25 = vadd.f32 %v4987_v46, %v533_v53  ;;  %v589_v40 = vadd.f32 %v4988_v52, %v532_v37  ;;  %v4991_v18 = vld [vmem:[#allocation25_spill] sm:$0xff]  ;;  %v4993_v29 = vld [vmem:[#allocation27_spill] sm:$0xff]  ;;  %v4995_v53 = vld [vmem:[#allocation56_spill] sm:$0xff] }
 0x1df   :  { %v654_v36 = vadd.f32 %v651_v33, %v629_v60  ;;  %v609_v35 = vadd.f32 %v4989_v14, %v552_v1  ;;  %v785_v54 = vadd.f32 %v782_v13, %v749_v55  ;;  %v3875_v3 = vstv %s3825_s6  ;;  %v4992_v33 = vld [vmem:[#allocation26_spill] sm:$0xff]  ;;  %s2968_s6 = sld [smem:[#allocation3 + $0x74]] }
 0x1e0   :  { %v916_v41 = vadd.f32 %v913_v17, %v868_v39  ;;  %v608_v48 = vadd.f32 %v4990_v21, %v551_v19  ;;  %v3882_v26 = vstv %s3827_s7  ;;  %v3885_v62 = vstv %s3836_s8  ;;  %v3068_v15 = vld [vmem:[%s4852_s1 + $0x21] sm:$0xff]  ;;  %s4026_s7 = sld [smem:[#allocation3 + $0x4e]] }
 0x1e1   :  { %v3850_v20 = vpop.permute.xlu2 %1314  ;;  %v711_v49 = vadd.f32 %v4991_v18, %v654_v36  ;;  %v628_v59 = vadd.f32 %v4992_v33, %v571_v23  ;;  %v627_v31 = vadd.f32 %v4993_v29, %v570_v24  ;;  %v830_v47 = vadd.f32 %v4994_v50, %v785_v54  ;;  %v3069_v36 = vld [vmem:[%s4852_s1 + $0x19] sm:$0xff]  ;;  %v5002_v54 = vld [vmem:[#allocation31_spill] sm:$0xff]  ;;  %s2943_s8 = sld [smem:[#allocation3 + $0x5b]] }
 0x1e2   :  { %v3858_v10 = vpop.permute.xlu1 %1255  ;;  %v3860_v44 = vpop.permute.xlu0 %1253  ;;  %v949_v51 = vadd.f32 %v4995_v53, %v916_v41  ;;  %v639_v60 = vadd.f32 %v636_v61, %v590_v25  ;;  %v789_v55 = vmul.f32 %v3067_v12, %v3875_v3  ;;  %v920_v17 = vmul.f32 %v4981_v57, %v3882_v26  ;;  %v5000_v57 = vld [vmem:[#allocation28_spill] sm:$0xff]  ;;  %v5010_v12 = vld [vmem:[#allocation42_spill] sm:$0xff] }
 0x1e3   :  { %v768_v5 = vadd.f32 %v4996_v43, %v711_v49  ;;  %v887_v39 = vadd.f32 %v4997_v56, %v830_v47  ;;  %v1052_v61 = vmul.f32 %v4999_v6, %v3885_v62  ;;  %v638_v19 = vadd.f32 %v635_v4, %v589_v40  ;;  %v5007_v47 = vld [vmem:[#allocation61_spill] sm:$0xff]  ;;  %v5011_v56 = vld [vmem:[#allocation52_spill] sm:$0xff] }
 0x1e4   :  { %v1006_v37 = vadd.f32 %v4998_v7, %v949_v51  ;;  %v646_v11 = vadd.f32 %v643_v45, %v609_v35  ;;  %v645_v23 = vadd.f32 %v642_v32, %v608_v48  ;;  %v774_v24 = vmul.f32 %v3068_v15, %v3793_v30  ;;  %v5001_v45 = vld [vmem:[#allocation29_spill] sm:$0xff]  ;;  %v5003_v48 = vld [vmem:[#allocation32_spill] sm:$0xff] }
 0x1e5   :  { %v672_v46 = vadd.f32 %v5000_v57, %v639_v60  ;;  %v653_v25 = vadd.f32 %v650_v8, %v628_v59  ;;  %v652_v52 = vadd.f32 %v649_v38, %v627_v31  ;;  %v773_v4 = vmul.f32 %v3069_v36, %v3793_v30  ;;  %v5004_v30 = vld [vmem:[#allocation43_spill] sm:$0xff]  ;;  %v5008_v51 = vld [vmem:[#allocation77_spill] sm:$0xff] }
 0x1e6   :  { %v671_v32 = vadd.f32 %v5001_v45, %v638_v19  ;;  %v792_v40 = vadd.f32 %v789_v55, %v768_v5  ;;  %v781_v14 = vmul.f32 %v3068_v15, %v3831_v58  ;;  %v780_v35 = vmul.f32 %v3069_v36, %v3831_v58  ;;  %v5005_v58 = vld [vmem:[#allocation38_spill] sm:$0xff]  ;;  %v5006_v31 = vld [vmem:[#allocation39_spill] sm:$0xff]  ;;  %v5009_v43 = vld [vmem:[#allocation41_spill] sm:$0xff] }
 0x1e7   :  { %v691_v8 = vadd.f32 %v5002_v54, %v646_v11  ;;  %v923_v41 = vadd.f32 %v920_v17, %v887_v39  ;;  %v3926_v38 = vstv %s3871_s13  ;;  %v1055_v21 = vadd.f32 %v1052_v61, %v1006_v37  ;;  %v3070_v17 = vld [vmem:[%s4852_s1 + $0x2a] sm:$0x3]  ;;  %s2939_s13 = sld [smem:[#allocation3 + $0x57]] }
 0x1e8   :  { %v690_v18 = vadd.f32 %v5003_v48, %v645_v23  ;;  %v849_v49 = vadd.f32 %v5004_v30, %v792_v40  ;;  %v3933_v33 = vstv %s3877_s14  ;;  %v3936_v59 = vstv %s3887_s15  ;;  %v5012_v61 = vld [vmem:[#allocation70_spill] sm:$0xff]  ;;  %v5013_v23 = vld [vmem:[#allocation88_spill] sm:$0xff]  ;;  %s3094_s14 = smov 1   ;;  %s2944_s15 = sld [smem:[#allocation3 + $0x5c]] }
 0x1e9   :  { %v3898_v13 = vpop.permute.xlu2 %1357  ;;  %v729_v29 = vadd.f32 %v5005_v58, %v672_v46  ;;  %v728_v50 = vadd.f32 %v5006_v31, %v671_v32  ;;  %v968_v53 = vadd.f32 %v5007_v47, %v923_v41  ;;  %v1088_v60 = vadd.f32 %v5008_v51, %v1055_v21  ;;  %v5014_v46 = vld [vmem:[#allocation55_spill] sm:$0xff] }
 0x1ea   :  { %v3906_v1 = vpop.permute.xlu1 %1274  ;;  %v3908_v2 = vpop.permute.xlu0 %1272  ;;  %v748_v5 = vadd.f32 %v5009_v43, %v691_v8  ;;  %v747_v55 = vadd.f32 %v5010_v12, %v690_v18  ;;  %v906_v39 = vadd.f32 %v5011_v56, %v849_v49  ;;  %v927_v7 = vmul.f32 %v3070_v17, %v3926_v38  ;;  %v5015_v8 = vld [vmem:[#allocation34_spill] sm:$0xff]  ;;  %v5016_v21 = vld [vmem:[#allocation35_spill] sm:$0xff]  ;;  %v5019_v56 = vld [vmem:[#allocation64_spill] sm:$0xff] }
 0x1eb   :  { %v1025_v19 = vadd.f32 %v5012_v61, %v968_v53  ;;  %v1059_v11 = vmul.f32 %v4999_v6, %v3933_v33  ;;  %v1145_v57 = vadd.f32 %v5013_v23, %v1088_v60  ;;  %v1190_v45 = vmul.f32 %v5014_v46, %v3936_v59  ;;  %v5017_v53 = vld [vmem:[#allocation44_spill] sm:$0xff] }
 0x1ec   :  { %v788_v54 = vmul.f32 %v3068_v15, %v3875_v3  ;;  %v710_v41 = vadd.f32 %v5015_v8, %v653_v25  ;;  %v709_v48 = vadd.f32 %v5016_v21, %v652_v52  ;;  %v777_v18 = vadd.f32 %v774_v24, %v729_v29  ;;  %v5018_v15 = vld [vmem:[#allocation45_spill] sm:$0xff]  ;;  %v5026_v21 = vld [vmem:[#allocation76_spill] sm:$0xff] }
 0x1ed   :  { %v787_v30 = vmul.f32 %v3069_v36, %v3875_v3  ;;  %v776_v49 = vadd.f32 %v773_v4, %v728_v50  ;;  %v784_v58 = vadd.f32 %v781_v14, %v748_v5  ;;  %v783_v31 = vadd.f32 %v780_v35, %v747_v55  ;;  %v3071_v3 = vld [vmem:[%s4852_s1 + $0x22] sm:$0xff]  ;;  %v3072_v4 = vld [vmem:[%s4852_s1 + $0x1a] sm:$0xff]  ;;  %v5022_v55 = vld [vmem:[#allocation47_spill] sm:$0xff] }
 0x1ee   :  { %v930_v47 = vadd.f32 %v927_v7, %v906_v39  ;;  %v767_v51 = vadd.f32 %v5017_v53, %v710_v41  ;;  %v1062_v60 = vadd.f32 %v1059_v11, %v1025_v19  ;;  %v3969_v43 = vstv %s3922_s22  ;;  %v5020_v35 = vld [vmem:[#allocation82_spill] sm:$0xff]  ;;  %v5021_v50 = vld [vmem:[#allocation97_spill] sm:$0xff]  ;;  %v5023_v7 = vld [vmem:[#allocation48_spill] sm:$0xff]  ;;  %s2998_s22 = sld [smem:[#allocation3 + $0x92]] }
 0x1ef   :  { %v1193_v12 = vadd.f32 %v1190_v45, %v1145_v57  ;;  %v766_v25 = vadd.f32 %v5018_v15, %v709_v48  ;;  %v3976_v52 = vstv %s3928_s23  ;;  %v3979_v24 = vstv %s3938_s24  ;;  %v5024_v19 = vld [vmem:[#allocation73_spill] sm:$0xff]  ;;  %v5025_v45 = vld [vmem:[#allocation91_spill] sm:$0xff]  ;;  %s2964_s23 = sld [smem:[#allocation3 + $0x70]] }
 0x1f0   :  { %v987_v17 = vadd.f32 %v5019_v56, %v930_v47  ;;  %v912_v36 = vmul.f32 %v3071_v3, %v3834_v34  ;;  %v911_v14 = vmul.f32 %v3072_v4, %v3834_v34  ;;  %v1107_v29 = vadd.f32 %v5020_v35, %v1062_v60  ;;  %v5030_v56 = vld [vmem:[#allocation50_spill] sm:$0xff]  ;;  %s2991_s24 = sld [smem:[#allocation3 + $0x8b]] }
 0x1f1   :  { %v3951_v37 = vpop.permute.xlu2 %1376  ;;  %v1226_v5 = vadd.f32 %v5021_v50, %v1193_v12  ;;  %v810_v39 = vadd.f32 %v5022_v55, %v777_v18  ;;  %v809_v61 = vadd.f32 %v5023_v7, %v776_v49  ;;  %v1066_v23 = vmul.f32 %v4999_v6, %v3969_v43  ;;  %v5028_v6 = vld [vmem:[#allocation59_spill] sm:$0xff]  ;;  %v5029_v12 = vld [vmem:[#allocation60_spill] sm:$0xff]  ;;  %v5033_v7 = vld [vmem:[#allocation54_spill] sm:$0xff] }
 0x1f2   :  { %v3959_v32 = vpop.permute.xlu1 %1293  ;;  %v3961_v40 = vpop.permute.xlu0 %1291  ;;  %v1044_v11 = vadd.f32 %v5024_v19, %v987_v17  ;;  %v1164_v8 = vadd.f32 %v5025_v45, %v1107_v29  ;;  %v1197_v34 = vmul.f32 %v5014_v46, %v3976_v52  ;;  %v1328_v48 = vmul.f32 %v5026_v21, %v3979_v24  ;;  %v5031_v29 = vld [vmem:[#allocation51_spill] sm:$0xff] }
 0x1f3   :  { %v1283_v41 = vadd.f32 %v3764_v22, %v1226_v5  ;;  %v791_v47 = vadd.f32 %v788_v54, %v767_v51  ;;  %v790_v53 = vadd.f32 %v787_v30, %v766_v25  ;;  %v867_v60 = vadd.f32 %v5028_v6, %v810_v39  ;;  %v5032_v5 = vld [vmem:[#allocation53_spill] sm:$0xff] }
 0x1f4   :  { %v866_v15 = vadd.f32 %v5029_v12, %v809_v61  ;;  %v829_v17 = vadd.f32 %v5030_v56, %v784_v58  ;;  %v919_v35 = vmul.f32 %v3071_v3, %v3882_v26  ;;  %v918_v22 = vmul.f32 %v3072_v4, %v3882_v26  ;;  %v5034_v61 = vld [vmem:[#allocation62_spill] sm:$0xff]  ;;  %v5035_v26 = vld [vmem:[#allocation63_spill] sm:$0xff] }
 0x1f5   :  { %v828_v50 = vadd.f32 %v5031_v29, %v783_v31  ;;  %v848_v55 = vadd.f32 %v5032_v5, %v791_v47  ;;  %v847_v19 = vadd.f32 %v5033_v7, %v790_v53  ;;  %v926_v54 = vmul.f32 %v3071_v3, %v3926_v38  ;;  %v5036_v47 = vld [vmem:[#allocation85_spill] sm:$0xff]  ;;  %v5037_v53 = vld [vmem:[#allocation100_spill] sm:$0xff] }
 0x1f6   :  { %v1069_v30 = vadd.f32 %v1066_v23, %v1044_v11  ;;  %v1200_v51 = vadd.f32 %v1197_v34, %v1164_v8  ;;  %v4020_v25 = vstv %s3971_s28  ;;  %v1331_v39 = vadd.f32 %v1328_v48, %v1283_v41  ;;  %v5038_v11 = vld [vmem:[#allocation65_spill] sm:$0xff]  ;;  %v5039_v8 = vld [vmem:[#allocation68_spill] sm:$0xff]  ;;  %s2992_s28 = sld [smem:[#allocation3 + $0x8c]] }
 0x1f7   :  { %v886_v45 = vadd.f32 %v5034_v61, %v829_v17  ;;  %v915_v58 = vadd.f32 %v912_v36, %v867_v60  ;;  %v914_v6 = vadd.f32 %v911_v14, %v866_v15  ;;  %v4024_v12 = vstv %s3981_s29  ;;  %v5040_v41 = vld [vmem:[#allocation69_spill] sm:$0xff]  ;;  %v5041_v60 = vld [vmem:[#allocation94_spill] sm:$0xff]  ;;  %s2940_s29 = sld [smem:[#allocation3 + $0x58]] }
 0x1f8   :  { %v885_v31 = vadd.f32 %v5035_v26, %v828_v50  ;;  %v1126_v56 = vadd.f32 %v5036_v47, %v1069_v30  ;;  %v1245_v29 = vadd.f32 %v5037_v53, %v1200_v51  ;;  %v1364_v3 = vadd.f32 %v3898_v13, %v1331_v39  ;;  %v5043_v51 = vld [vmem:[#allocation81_spill] sm:$0xff]  ;;  %v5044_v47 = vld [vmem:[#allocation66_spill] sm:$0xff] }
 0x1f9   :  { %v3998_v57 = vpop.permute.xlu2 %1395  ;;  %v905_v23 = vadd.f32 %v5038_v11, %v848_v55  ;;  %v948_v34 = vadd.f32 %v5039_v8, %v915_v58  ;;  %v947_v48 = vadd.f32 %v5040_v41, %v914_v6  ;;  %v1204_v36 = vmul.f32 %v5014_v46, %v4020_v25  ;;  %v5042_v55 = vld [vmem:[#allocation80_spill] sm:$0xff]  ;;  %v4058_v6 = vld [vmem:[%s4853_s2 + $0x10] sm:$0x3] }
 0x1fa   :  { %v4006_v18 = vpop.permute.xlu1 %1312  ;;  %v4008_v49 = vpop.permute.xlu0 %1310  ;;  %v1183_v15 = vadd.f32 %v5041_v60, %v1126_v56  ;;  %v1302_v17 = vadd.f32 %v3808_v0, %v1245_v29  ;;  %v1335_v50 = vmul.f32 %v5026_v21, %v4024_v12  ;;  %v3073_v46 = vld [vmem:[%s4852_s1 + $0x38] sm:$0xff]  ;;  %v3074_v0 = vld [vmem:[%s4852_s1 + $0x30] sm:$0xff]  ;;  %v904_v56 = vadd.f32 %v5044_v47, %v847_v19  ;;  %v5048_v19 = vld [vmem:[#allocation89_spill] sm:$0xff] }
 0x1fb   :  { %5027 = vst [vmem:[#allocation6_spill] sm:$0xff] %v4008_v49  ;;  %v1005_v30 = vadd.f32 %v5042_v55, %v948_v34  ;;  %v1004_v39 = vadd.f32 %v5043_v51, %v947_v48  ;;  %v1051_v61 = vmul.f32 %v3073_v46, %v3885_v62  ;;  %v1050_v58 = vmul.f32 %v3074_v0, %v3885_v62  ;;  %v5045_v48 = vld [vmem:[#allocation71_spill] sm:$0xff]  ;;  %v5046_v51 = vld [vmem:[#allocation72_spill] sm:$0xff] }
 0x1fc   :  { %v922_v53 = vadd.f32 %v919_v35, %v886_v45  ;;  %v921_v29 = vadd.f32 %v918_v22, %v885_v31  ;;  %v929_v11 = vadd.f32 %v926_v54, %v905_v23  ;;  %v1207_v8 = vadd.f32 %v1204_v36, %v1183_v15  ;;  %v5049_v45 = vld [vmem:[#allocation90_spill] sm:$0xff]  ;;  %v5050_v15 = vld [vmem:[#allocation84_spill] sm:$0xff] }
 0x1fd   :  { %v1338_v34 = vadd.f32 %v1335_v50, %v1302_v17  ;;  %v1054_v62 = vadd.f32 %v1051_v61, %v1005_v30  ;;  %v1053_v60 = vadd.f32 %v1050_v58, %v1004_v39  ;;  %v4065_v55 = vstv %s4026_s7  ;;  %v5051_v61 = vld [vmem:[#allocation98_spill] sm:$0xff]  ;;  %s2995_s7 = sld [smem:[#allocation3 + $0x8f]] }
 0x1fe   :  { %v966_v49 = vadd.f32 %v5046_v51, %v921_v29  ;;  %v1264_v35 = vadd.f32 %v3722_v16, %v1207_v8  ;;  %v1057_v23 = vmul.f32 %v3074_v0, %v3933_v33  ;;  %v1342_v16 = vmul.f32 %v5026_v21, %v4065_v55  ;;  %v5054_v29 = vld [vmem:[#allocation58_spill] sm:$0xff]  ;;  %v5056_v51 = vld [vmem:[#allocation75_spill] sm:$0xff] }
 0x1ff   :  { %v1383_v22 = vadd.f32 %v3951_v37, %v1338_v34  ;;  %v1087_v54 = vadd.f32 %v5048_v19, %v1054_v62  ;;  %v1086_v31 = vadd.f32 %v5049_v45, %v1053_v60  ;;  %v1065_v21 = vmul.f32 %v3073_v46, %v3969_v43 }
 0x200   :  { %v1023_v17 = vadd.f32 %v5050_v15, %v966_v49  ;;  %v1321_v50 = vadd.f32 %v3850_v20, %v1264_v35  ;;  %v1188_v49 = vmul.f32 %v5054_v29, %v3936_v59  ;;  %v5055_v20 = vld [vmem:[#allocation74_spill] sm:$0xff] }
 0x201   :  { %v1415_v14 = vpop.permute.xlu2 %1414  ;;  %v1144_v58 = vadd.f32 %v5051_v61, %v1087_v54  ;;  %v986_v34 = vadd.f32 %v5055_v20, %v929_v11  ;;  %v5057_v54 = vld [vmem:[#allocation86_spill] sm:$0xff] }
 0x202   :  { %v1421_v5 = vadd.f32 %v1415_v14, %v1364_v3  ;;  %v4041_v7 = vpop.permute.xlu1 %1355  ;;  %v4043_v13 = vpop.permute.xlu0 %1353  ;;  %v925_v3 = vmul.f32 %v3072_v4, %v3926_v38  ;;  %v967_v14 = vadd.f32 %v5045_v48, %v922_v53  ;;  %v5047_v38 = vld [vmem:[#allocation83_spill] sm:$0xff]  ;;  %v5053_v53 = vld [vmem:[#allocation57_spill] sm:$0xff]  ;;  %v1345_v62 = vadd.f32 %v1342_v16, %v1321_v50 }
 0x203   :  { %v1043_v45 = vadd.f32 %v5057_v54, %v986_v34  ;;  %v1195_v16 = vmul.f32 %v5054_v29, %v3976_v52 }
 0x204   :  { %v1462_v26 = vmax.f32 %v1421_v5, 0.0  ;;  %v1058_v5 = vmul.f32 %v3073_v46, %v3933_v33  ;;  %v1024_v4 = vadd.f32 %v5047_v38, %v967_v14  ;;  %v1189_v33 = vmul.f32 %v5053_v53, %v3936_v59  ;;  %v5058_v59 = vld [vmem:[#allocation92_spill] sm:$0xff]  ;;  %v5060_v46 = vld [vmem:[#allocation87_spill] sm:$0xff] }
 0x205   :  { %v1060_v14 = vadd.f32 %v1057_v23, %v1023_v17  ;;  %v5061_v23 = vld [vmem:[#allocation101_spill] sm:$0xff]  ;;  %v5062_v17 = vld [vmem:[#allocation102_spill] sm:$0xff] }
 0x206   :  { %v1465_v41 = vmul.f32 %v1462_v26, %v4058_v6  ;;  %v5052_v26 = vld [vmem:[#allocation99_spill] sm:$0xff]  ;;  %v1061_v48 = vadd.f32 %v1058_v5, %v1024_v4  ;;  %v1192_v38 = vadd.f32 %v1189_v33, %v1144_v58  ;;  %v5063_v58 = vld [vmem:[#allocation78_spill] sm:$0xff] }
 0x207   :  { %v1143_v47 = vadd.f32 %v5052_v26, %v1086_v31  ;;  %v1327_v26 = vmul.f32 %v5063_v58, %v3979_v24 }
 0x208   :  { %1473 = vrot.lane.b32.xlu2 %v1465_v41, %s3094_s14  ;;  %v928_v41 = vadd.f32 %v925_v3, %v904_v56  ;;  %v1106_v31 = vadd.f32 %v5058_v59, %v1061_v48  ;;  %v1402_v56 = vadd.f32 %v3998_v57, %v1345_v62  ;;  %v1225_v5 = vadd.f32 %v3770_v42, %v1192_v38  ;;  %v5065_v48 = vld [vmem:[#allocation95_spill] sm:$0xff] }
 0x209   :  { %v1434_v36 = vpop.permute.xlu2 %1433  ;;  %v1191_v19 = vadd.f32 %v1188_v49, %v1143_v47  ;;  %v5064_v47 = vld [vmem:[#allocation79_spill] sm:$0xff]  ;;  %v1068_v49 = vadd.f32 %v1065_v21, %v1043_v45  ;;  %v1334_v45 = vmul.f32 %v5063_v58, %v4024_v12 }
 0x20a   :  { %v1440_v37 = vadd.f32 %v1434_v36, %v1383_v22  ;;  %v4080_v30 = vpop.permute.xlu1 %1374  ;;  %v4082_v39 = vpop.permute.xlu0 %1372  ;;  %v985_v35 = vadd.f32 %v5056_v51, %v928_v41  ;;  %v1064_v22 = vmul.f32 %v3074_v0, %v3969_v43  ;;  %v5059_v36 = vld [vmem:[#allocation93_spill] sm:$0xff]  ;;  %v1196_v43 = vmul.f32 %v5053_v53, %v3976_v52 }
 0x20b   :  { %v1105_v11 = vadd.f32 %v5059_v36, %v1060_v14  ;;  %v1224_v4 = vadd.f32 %v3772_v9, %v1191_v19  ;;  %v1163_v15 = vadd.f32 %v5061_v23, %v1106_v31  ;;  %v1282_v42 = vadd.f32 %v3906_v1, %v1225_v5  ;;  %v5066_v1 = vld [vmem:[#allocation96_spill] sm:$0xff]  ;;  %v5067_v19 = vld [vmem:[#allocation103_spill] sm:$0xff] }
 0x20c   :  { %v1485_v8 = vmax.f32 %v1440_v37, 0.0  ;;  %v1042_v3 = vadd.f32 %v5060_v46, %v985_v35  ;;  %v1326_v53 = vmul.f32 %v5064_v47, %v3979_v24  ;;  %v1125_v14 = vadd.f32 %v5065_v48, %v1068_v49  ;;  %v3076_v24 = vld [vmem:[%s4852_s1 + $0x31] sm:$0xff] }
 0x20d   :  { %v1162_v50 = vadd.f32 %v5062_v17, %v1105_v11  ;;  %v1281_v9 = vadd.f32 %v3908_v2, %v1224_v4  ;;  %v1199_v29 = vadd.f32 %v1196_v43, %v1163_v15  ;;  %v1330_v34 = vadd.f32 %v1327_v26, %v1282_v42  ;;  %v3075_v2 = vld [vmem:[%s4852_s1 + $0x39] sm:$0xff] }
 0x20e   :  { %v1488_v60 = vmul.f32 %v1485_v8, %v4058_v6  ;;  %v1067_v8 = vadd.f32 %v1064_v22, %v1042_v3  ;;  %v1182_v38 = vadd.f32 %v3730_v63, %v1125_v14  ;;  %v211_v63 = vld [vmem:[%s4853_s2 + $0x8] sm:$0xff]  ;;  %v1341_v15 = vmul.f32 %v5063_v58, %v4065_v55 }
 0x20f   :  { %v1198_v20 = vadd.f32 %v1195_v16, %v1162_v50  ;;  %v1329_v41 = vadd.f32 %v1326_v53, %v1281_v9  ;;  %v1244_v21 = vadd.f32 %v3815_v27, %v1199_v29  ;;  %v1363_v35 = vadd.f32 %v4041_v7, %v1330_v34 }
 0x210   :  { %1496 = vrot.lane.b32.xlu2 %v1488_v60, %s3094_s14  ;;  %v1124_v62 = vadd.f32 %v5066_v1, %v1067_v8  ;;  %v1203_v60 = vmul.f32 %v3075_v2, %v4020_v25  ;;  %v1340_v17 = vmul.f32 %v5064_v47, %v4065_v55 }
 0x211   :  { %v1453_v0 = vpop.permute.xlu2 %1452  ;;  %v1243_v51 = vadd.f32 %v3817_v28, %v1198_v20  ;;  %v1362_v22 = vadd.f32 %v4043_v13, %v1329_v41  ;;  %v1301_v27 = vadd.f32 %v3959_v32, %v1244_v21  ;;  %v210_v13 = vld [vmem:[%s4853_s2] sm:$0xff]  ;;  %s2937_s2 = sld [smem:[#allocation3 + $0x55]] }
 0x212   :  { %v1459_v57 = vadd.f32 %v1453_v0, %v1402_v56  ;;  %v4109_v37 = vpop.permute.xlu1 %1393  ;;  %v4111_v61 = vpop.permute.xlu0 %1391  ;;  %v1181_v54 = vadd.f32 %v5067_v19, %v1124_v62  ;;  %v1206_v46 = vadd.f32 %v1203_v60, %v1182_v38  ;;  %v1573_v19 = vstv %s2964_s23  ;;  %s2973_s23 = sld [smem:[#allocation3 + $0x79]] }
 0x213   :  { %v1300_v28 = vadd.f32 %v3961_v40, %v1243_v51  ;;  %v1337_v3 = vadd.f32 %v1334_v45, %v1301_v27  ;;  %v1592_v27 = vstv %s2991_s24  ;;  %s3000_s24 = sld [smem:[#allocation3 + $0x94]] }
 0x214   :  { %v1507_v33 = vmax.f32 %v1459_v57, 0.0  ;;  %v1263_v40 = vadd.f32 %v3858_v10, %v1206_v46  ;;  %v5068_v57 = vld [vmem:[#allocation6_spill] sm:$0xff]  ;;  %v1630_v46 = vstv %s2965_s26  ;;  %s2947_s26 = sld [smem:[#allocation3 + $0x5f]] }
 0x215   :  { %v1382_v0 = vadd.f32 %v4080_v30, %v1337_v3 }
 0x216   :  { %v1510_v52 = vmul.f32 %v1507_v33, %v4058_v6  ;;  %v1202_v6 = vmul.f32 %v3076_v24, %v4020_v25  ;;  %v1333_v25 = vmul.f32 %v5064_v47, %v4024_v12  ;;  %v1320_v10 = vadd.f32 %v4006_v18, %v1263_v40 }
 0x217   :  { %v1554_v2 = vstv %s2937_s2  ;;  %s2946_s2 = sld [smem:[#allocation3 + $0x5e]] }
 0x218   :  { %1518 = vrot.lane.b32.xlu2 %v1510_v52, %s3094_s14  ;;  %v1205_v12 = vadd.f32 %v1202_v6, %v1181_v54  ;;  %v1336_v5 = vadd.f32 %v1333_v25, %v1300_v28  ;;  %v1344_v26 = vadd.f32 %v1341_v15, %v1320_v10 }
 0x21a   :  { %v1413_v59 = vpop.permute.xlu1 %1412  ;;  %v1411_v31 = vpop.permute.xlu0 %1410  ;;  %v1262_v43 = vadd.f32 %v3860_v44, %v1205_v12  ;;  %v1381_v23 = vadd.f32 %v4082_v39, %v1336_v5  ;;  %v1401_v8 = vadd.f32 %v4109_v37, %v1344_v26  ;;  %v3095_v37 = vmov 0.0  }
 0x21b   :  { %v1420_v36 = vadd.f32 %v1413_v59, %v1363_v35  ;;  %v1419_v7 = vadd.f32 %v1411_v31, %v1362_v22  ;;  %35 = vst.msk [vmem:[#allocation2 + $0x10] sm:$0xf] %vm34_vm0, %v3095_v37 }
 0x21c   :  { %v1319_v44 = vadd.f32 %v5068_v57, %v1262_v43  ;;  %38 = vst.msk [vmem:[#allocation2 + $0x28] sm:$0xf] %vm34_vm0, %v3095_v37  ;;  %v1711_v57 = vstv %s2967_s30  ;;  %s2996_s30 = sld [smem:[#allocation3 + $0x90]] }
 0x21d   :  { %v1461_v11 = vmax.f32 %v1420_v36, 0.0  ;;  %v1460_v56 = vmax.f32 %v1419_v7, 0.0  ;;  %41 = vst.msk [vmem:[#allocation2 + $0x40] sm:$0xf] %vm34_vm0, %v3095_v37 }
 0x21e   :  { %v1343_v53 = vadd.f32 %v1340_v17, %v1319_v44  ;;  %33 = vst.msk [vmem:[#allocation2 + $0x8] sm:$0xff] %vm31_vm2, %v3095_v37 }
 0x21f   :  { %v1464_v4 = vmul.f32 %v1461_v11, %v211_v63  ;;  %v1463_v32 = vmul.f32 %v1460_v56, %v210_v13  ;;  %32 = vst.msk [vmem:[#allocation2] sm:$0xff] %vm31_vm2, %v3095_v37 }
 0x220   :  { %v1400_v58 = vadd.f32 %v4111_v61, %v1343_v53  ;;  %36 = vst.msk [vmem:[#allocation2 + $0x18] sm:$0xff] %vm31_vm2, %v3095_v37 }
 0x221   :  { %1471 = vrot.lane.b32.xlu1 %v1464_v4, %s3094_s14  ;;  %1469 = vrot.lane.b32.xlu0 %v1463_v32, %s3094_s14  ;;  %37 = vst.msk [vmem:[#allocation2 + $0x20] sm:$0xff] %vm31_vm2, %v3095_v37  ;;  %v1649_v4 = vstv %s2992_s28  ;;  %s2969_s28 = sld [smem:[#allocation3 + $0x75]] }
 0x222   :  { %v1432_v50 = vpop.permute.xlu1 %1431  ;;  %v1430_v16 = vpop.permute.xlu0 %1429  ;;  %39 = vst.msk [vmem:[#allocation2 + $0x30] sm:$0xff] %vm31_vm2, %v3095_v37 }
 0x223   :  { %v1439_v42 = vadd.f32 %v1432_v50, %v1382_v0  ;;  %v1438_v30 = vadd.f32 %v1430_v16, %v1381_v23  ;;  %40 = vst.msk [vmem:[#allocation2 + $0x38] sm:$0xff] %vm31_vm2, %v3095_v37  ;;  %v1692_v23 = vstv %s2940_s29  ;;  %s2974_s29 = sld [smem:[#allocation3 + $0x7a]] }
 0x225   :  { %v1484_v9 = vmax.f32 %v1439_v42, 0.0  ;;  %v1483_v39 = vmax.f32 %v1438_v30, 0.0 }
 0x227   :  { %v1487_v33 = vmul.f32 %v1484_v9, %v211_v63  ;;  %v1486_v49 = vmul.f32 %v1483_v39, %v210_v13  ;;  %v1730_v9 = vstv %s2994_s4  ;;  %s3001_s4 = sld [smem:[#allocation3 + $0x95]] }
 0x229   :  { %1494 = vrot.lane.b32.xlu1 %v1487_v33, %s3094_s14  ;;  %1492 = vrot.lane.b32.xlu0 %v1486_v49, %s3094_s14  ;;  %v1749_v33 = vstv %s2941_s5  ;;  %s2949_s5 = sld [smem:[#allocation3 + $0x61]] }
 0x22a   :  { %v1451_v55 = vpop.permute.xlu1 %1450  ;;  %v1449_v18 = vpop.permute.xlu0 %1448 }
 0x22b   :  { %v1458_v47 = vadd.f32 %v1451_v55, %v1401_v8  ;;  %v1457_v52 = vadd.f32 %v1449_v18, %v1400_v58  ;;  %v1768_v55 = vstv %s2968_s6  ;;  %s2976_s6 = sld [smem:[#allocation3 + $0x7c]] }
 0x22d   :  { %v1506_v29 = vmax.f32 %v1458_v47, 0.0  ;;  %v1505_v20 = vmax.f32 %v1457_v52, 0.0 }
 0x22f   :  { %v1509_v34 = vmul.f32 %v1506_v29, %v211_v63  ;;  %v1508_v41 = vmul.f32 %v1505_v20, %v210_v13  ;;  %v1611_v63 = vstv %s2938_s25  ;;  %v1787_v29 = vstv %s2995_s7  ;;  %s2942_s25 = sld [smem:[#allocation3 + $0x5a]] }
 0x230   :  { %s3003_s7 = sld [smem:[#allocation3 + $0x97]] }
 0x231   :  { %1516 = vrot.lane.b32.xlu1 %v1509_v34, %s3094_s14  ;;  %1514 = vrot.lane.b32.xlu0 %v1508_v41, %s3094_s14  ;;  %s2963_s14 = sld [smem:[#allocation3 + $0x6f]] }
 0x262   :  { %v1474_v61 = vpop.permute.xlu2 %1473 }
 0x263   :  { %1482 = vst.msk [vmem:[#allocation2 + $0x11] sm:$0x3] %vm1481_vm1, %v1474_v61 }
 0x26a   :  { %v1497_v48 = vpop.permute.xlu2 %1496  ;;  %v4215_v0 = vld [vmem:[#allocation2 + $0x11] sm:$0x3] }
 0x26b   :  { %1504 = vst.msk [vmem:[#allocation2 + $0x29] sm:$0x3] %vm1481_vm1, %v1497_v48  ;;  %v1695_v50 = vmul.f32 %v1692_v23, %v4215_v0  ;;  %v1714_v44 = vmul.f32 %v1711_v57, %v4215_v0  ;;  %v1733_v39 = vmul.f32 %v1730_v9, %v4215_v0  ;;  %v1752_v49 = vmul.f32 %v1749_v33, %v4215_v0  ;;  %v4257_v61 = vld [vmem:[#allocation2 + $0x12] sm:$0x3] }
 0x26c   :  { %v1771_v18 = vmul.f32 %v1768_v55, %v4215_v0  ;;  %v1790_v20 = vmul.f32 %v1787_v29, %v4215_v0  ;;  %v1830_v48 = vstv %s2943_s8  ;;  %s2945_s8 = sld [smem:[#allocation3 + $0x5d]] }
 0x272   :  { %v1519_v14 = vpop.permute.xlu2 %1518 }
 0x273   :  { %1526 = vst.msk [vmem:[#allocation2 + $0x41] sm:$0x3] %vm1481_vm1, %v1519_v14 }
 0x293   :  { %v1472_v1 = vpop.permute.xlu1 %1471  ;;  %v1470_v62 = vpop.permute.xlu0 %1469 }
 0x294   :  { %1480 = vst.msk [vmem:[#allocation2 + $0x9] sm:$0xff] %vm1478_vm3, %v1472_v1 }
 0x295   :  { %1479 = vst.msk [vmem:[#allocation2 + $0x1] sm:$0xff] %vm1478_vm3, %v1470_v62  ;;  %v1833_v62 = vmul.f32 %v1830_v48, %v4257_v61 }
 0x29b   :  { %v1495_v60 = vpop.permute.xlu1 %1494  ;;  %v1493_v24 = vpop.permute.xlu0 %1492  ;;  %v4169_v6 = vld [vmem:[#allocation2 + $0x10] sm:$0x3] }
 0x29c   :  { %1503 = vst.msk [vmem:[#allocation2 + $0x21] sm:$0xff] %vm1478_vm3, %v1495_v60  ;;  %v1557_v21 = vmul.f32 %v1554_v2, %v4169_v6  ;;  %v4173_v51 = vld [vmem:[#allocation2 + $0x8] sm:$0xff]  ;;  %v4175_v35 = vld [vmem:[#allocation2] sm:$0xff]  ;;  %v1576_v25 = vmul.f32 %v1573_v19, %v4169_v6  ;;  %v1595_v28 = vmul.f32 %v1592_v27, %v4169_v6  ;;  %v1614_v13 = vmul.f32 %v1611_v63, %v4169_v6 }
 0x29d   :  { %1502 = vst.msk [vmem:[#allocation2 + $0x19] sm:$0xff] %vm1478_vm3, %v1493_v24  ;;  %v1556_v22 = vmul.f32 %v1554_v2, %v4173_v51  ;;  %v1555_v38 = vmul.f32 %v1554_v2, %v4175_v35  ;;  %v1575_v59 = vmul.f32 %v1573_v19, %v4173_v51  ;;  %v1574_v31 = vmul.f32 %v1573_v19, %v4175_v35  ;;  %v4217_v15 = vld [vmem:[#allocation2 + $0x9] sm:$0xff]  ;;  %v4219_v17 = vld [vmem:[#allocation2 + $0x1] sm:$0xff] }
 0x29e   :  { %1565 = vrot.lane.b32.xlu2 %v1557_v21, %s3092_s0  ;;  %v1594_v36 = vmul.f32 %v1592_v27, %v4173_v51  ;;  %v1593_v7 = vmul.f32 %v1592_v27, %v4175_v35  ;;  %v1613_v11 = vmul.f32 %v1611_v63, %v4173_v51  ;;  %v1612_v56 = vmul.f32 %v1611_v63, %v4175_v35  ;;  %v4259_v14 = vld [vmem:[#allocation2 + $0xa] sm:$0xff]  ;;  %v4261_v1 = vld [vmem:[#allocation2 + $0x2] sm:$0xff] }
 0x29f   :  { %1563 = vrot.lane.b32.xlu1 %v1556_v22, %s3092_s0  ;;  %1561 = vrot.lane.b32.xlu0 %v1555_v38, %s3092_s0  ;;  %v1633_v12 = vmul.f32 %v1630_v46, %v4169_v6  ;;  %v1632_v3 = vmul.f32 %v1630_v46, %v4173_v51  ;;  %v1631_v5 = vmul.f32 %v1630_v46, %v4175_v35  ;;  %v1849_v21 = vstv %s2970_s9  ;;  %s2950_s9 = sld [smem:[#allocation3 + $0x62]] }
 0x2a0   :  { %v1652_v32 = vmul.f32 %v1649_v4, %v4169_v6  ;;  %v1651_v40 = vmul.f32 %v1649_v4, %v4173_v51  ;;  %v1650_v43 = vmul.f32 %v1649_v4, %v4175_v35  ;;  %v1694_v16 = vmul.f32 %v1692_v23, %v4217_v15 }
 0x2a1   :  { %v1693_v10 = vmul.f32 %v1692_v23, %v4219_v17  ;;  %v1713_v42 = vmul.f32 %v1711_v57, %v4217_v15  ;;  %v1712_v30 = vmul.f32 %v1711_v57, %v4219_v17  ;;  %v1732_v26 = vmul.f32 %v1730_v9, %v4217_v15 }
 0x2a2   :  { %v1731_v53 = vmul.f32 %v1730_v9, %v4219_v17  ;;  %v1751_v8 = vmul.f32 %v1749_v33, %v4217_v15  ;;  %v1750_v58 = vmul.f32 %v1749_v33, %v4219_v17  ;;  %v1770_v47 = vmul.f32 %v1768_v55, %v4217_v15 }
 0x2a3   :  { %v1517_v54 = vpop.permute.xlu1 %1516  ;;  %v1515_v45 = vpop.permute.xlu0 %1514  ;;  %v1769_v52 = vmul.f32 %v1768_v55, %v4219_v17  ;;  %v1789_v34 = vmul.f32 %v1787_v29, %v4217_v15  ;;  %v1788_v41 = vmul.f32 %v1787_v29, %v4219_v17  ;;  %v1832_v2 = vmul.f32 %v1830_v48, %v4259_v14 }
 0x2a4   :  { %1525 = vst.msk [vmem:[#allocation2 + $0x39] sm:$0xff] %vm1478_vm3, %v1517_v54  ;;  %v1831_v60 = vmul.f32 %v1830_v48, %v4261_v1  ;;  %v1852_v22 = vmul.f32 %v1849_v21, %v4257_v61  ;;  %v1851_v38 = vmul.f32 %v1849_v21, %v4259_v14  ;;  %v1850_v19 = vmul.f32 %v1849_v21, %v4261_v1 }
 0x2a5   :  { %1524 = vst.msk [vmem:[#allocation2 + $0x31] sm:$0xff] %vm1478_vm3, %v1515_v45  ;;  %v4272_v54 = vstv %s2936_s10  ;;  %v4285_v63 = vstv %s2963_s14  ;;  %v1887_v4 = vstv %s2944_s15  ;;  %v4304_v57 = vstv %s2990_s18  ;;  %s2972_s10 = sld [smem:[#allocation3 + $0x78]] }
 0x2a6   :  { %1584 = vrot.lane.b32.xlu2 %v1576_v25, %s3092_s0  ;;  %v1536_v25 = vmul.f32 %v4272_v54, %v4169_v6  ;;  %v1543_v46 = vmul.f32 %v4285_v63, %v4169_v6  ;;  %v1890_v23 = vmul.f32 %v1887_v4, %v4257_v61  ;;  %v1550_v9 = vmul.f32 %v4304_v57, %v4169_v6  ;;  %s2952_s14 = sld [smem:[#allocation3 + $0x64]] }
 0x2a7   :  { %1582 = vrot.lane.b32.xlu1 %v1575_v59, %s3092_s0  ;;  %1580 = vrot.lane.b32.xlu0 %v1574_v31, %s3092_s0  ;;  %v1868_v59 = vstv %s2997_s11  ;;  %v4279_v31 = vstv %s3017_s12  ;;  %s2977_s11 = sld [smem:[#allocation3 + $0x7d]] }
 0x2a8   :  { %v1871_v27 = vmul.f32 %v1868_v59, %v4257_v61  ;;  %v1906_v33 = vstv %s2971_s19  ;;  %v1925_v48 = vstv %s2998_s22  ;;  %s2999_s12 = sld [smem:[#allocation3 + $0x93]] }
 0x2a9   :  { %v1909_v55 = vmul.f32 %v1906_v33, %v4257_v61  ;;  %v1907_v6 = vmul.f32 %v1906_v33, %v4261_v1  ;;  %v1928_v21 = vmul.f32 %v1925_v48, %v4257_v61  ;;  %s2979_s15 = sld [smem:[#allocation3 + $0x7f]] }
 0x2aa   :  { %s2953_s18 = sld [smem:[#allocation3 + $0x65]] }
 0x2ab   :  { %s2975_s19 = sld [smem:[#allocation3 + $0x7b]] }
 0x2ac   :  { %s3007_s22 = sld [smem:[#allocation3 + $0x9b]] }
 0x2ae   :  { %1603 = vrot.lane.b32.xlu2 %v1595_v28, %s3092_s0  ;;  %v1539_v28 = vadd.f32 %v1536_v25, %v4279_v31 }
 0x2af   :  { %1601 = vrot.lane.b32.xlu1 %v1594_v36, %s3092_s0  ;;  %1599 = vrot.lane.b32.xlu0 %v1593_v7, %s3092_s0  ;;  %v1870_v36 = vmul.f32 %v1868_v59, %v4259_v14  ;;  %v1869_v7 = vmul.f32 %v1868_v59, %v4261_v1  ;;  %v1542_v59 = vmul.f32 %v4285_v63, %v4173_v51 }
 0x2b6   :  { %1622 = vrot.lane.b32.xlu2 %v1614_v13, %s3093_s27  ;;  %v4288_v13 = vstv %s2939_s13  ;;  %s3004_s13 = sld [smem:[#allocation3 + $0x98]] }
 0x2b7   :  { %1620 = vrot.lane.b32.xlu1 %v1613_v11, %s3093_s27  ;;  %1618 = vrot.lane.b32.xlu0 %v1612_v56, %s3093_s27 }
 0x2be   :  { %1641 = vrot.lane.b32.xlu2 %v1633_v12, %s3093_s27 }
 0x2bf   :  { %1639 = vrot.lane.b32.xlu1 %v1632_v3, %s3093_s27  ;;  %1637 = vrot.lane.b32.xlu0 %v1631_v5, %s3093_s27 }
 0x2c6   :  { %1660 = vrot.lane.b32.xlu2 %v1652_v32, %s3093_s27  ;;  %v1674_v32 = vmul.f32 %v4288_v13, %v4215_v0 }
 0x2c7   :  { %1658 = vrot.lane.b32.xlu1 %v1651_v40, %s3093_s27  ;;  %1656 = vrot.lane.b32.xlu0 %v1650_v43, %s3093_s27  ;;  %v4296_v40 = vstv %s3018_s16  ;;  %s3006_s16 = sld [smem:[#allocation3 + $0x9a]] }
 0x2ce   :  { %1703 = vrot.lane.b32.xlu2 %v1695_v50, %s3092_s0  ;;  %v1546_v50 = vadd.f32 %v1543_v46, %v4296_v40  ;;  %v4354_v46 = vld [vmem:[#allocation2 + $0x20] sm:$0xff] }
 0x2cf   :  { %1701 = vrot.lane.b32.xlu1 %v1694_v16, %s3092_s0  ;;  %1699 = vrot.lane.b32.xlu0 %v1693_v10, %s3092_s0  ;;  %v1889_v16 = vmul.f32 %v1887_v4, %v4259_v14  ;;  %v1888_v10 = vmul.f32 %v1887_v4, %v4261_v1 }
 0x2d6   :  { %1722 = vrot.lane.b32.xlu2 %v1714_v44, %s3092_s0  ;;  %v4307_v44 = vstv %s2966_s17  ;;  %s2948_s17 = sld [smem:[#allocation3 + $0x60]] }
 0x2d7   :  { %1720 = vrot.lane.b32.xlu1 %v1713_v42, %s3092_s0  ;;  %1718 = vrot.lane.b32.xlu0 %v1712_v30, %s3092_s0 }
 0x2de   :  { %1741 = vrot.lane.b32.xlu2 %v1733_v39, %s3092_s0 }
 0x2df   :  { %1739 = vrot.lane.b32.xlu1 %v1732_v26, %s3092_s0  ;;  %1737 = vrot.lane.b32.xlu0 %v1731_v53, %s3092_s0 }
 0x2e6   :  { %1760 = vrot.lane.b32.xlu2 %v1752_v49, %s3093_s27  ;;  %v1681_v49 = vmul.f32 %v4307_v44, %v4215_v0 }
 0x2e7   :  { %1758 = vrot.lane.b32.xlu1 %v1751_v8, %s3093_s27  ;;  %1756 = vrot.lane.b32.xlu0 %v1750_v58, %s3093_s27  ;;  %v4315_v8 = vstv %s3019_s20  ;;  %s2980_s20 = sld [smem:[#allocation3 + $0x80]] }
 0x2ee   :  { %1779 = vrot.lane.b32.xlu2 %v1771_v18, %s3093_s27  ;;  %v1553_v18 = vadd.f32 %v1550_v9, %v4315_v8  ;;  %v1549_v9 = vmul.f32 %v4304_v57, %v4173_v51 }
 0x2ef   :  { %1777 = vrot.lane.b32.xlu1 %v1770_v47, %s3093_s27  ;;  %1775 = vrot.lane.b32.xlu0 %v1769_v52, %s3093_s27  ;;  %v1908_v47 = vmul.f32 %v1906_v33, %v4259_v14  ;;  %v4324_v52 = vstv %s2993_s21  ;;  %s3002_s21 = sld [smem:[#allocation3 + $0x96]] }
 0x2f6   :  { %1798 = vrot.lane.b32.xlu2 %v1790_v20, %s3093_s27 }
 0x2f7   :  { %1796 = vrot.lane.b32.xlu1 %v1789_v34, %s3093_s27  ;;  %1794 = vrot.lane.b32.xlu0 %v1788_v41, %s3093_s27 }
 0x2f8   :  { %v1566_v37 = vpop.permute.xlu2 %1565 }
 0x2f9   :  { %v1572_v11 = vadd.f32 %v1566_v37, %v1539_v28 }
 0x2fe   :  { %1841 = vrot.lane.b32.xlu2 %v1833_v62, %s3092_s0  ;;  %v1688_v62 = vmul.f32 %v4324_v52, %v4215_v0 }
 0x2ff   :  { %1839 = vrot.lane.b32.xlu1 %v1832_v2, %s3092_s0  ;;  %1837 = vrot.lane.b32.xlu0 %v1831_v60, %s3092_s0  ;;  %v1535_v2 = vmul.f32 %v4272_v54, %v4173_v51  ;;  %v1534_v60 = vmul.f32 %v4272_v54, %v4175_v35 }
 0x300   :  { %v1585_v24 = vpop.permute.xlu2 %1584 }
 0x301   :  { %v1591_v42 = vadd.f32 %v1585_v24, %v1546_v50 }
 0x306   :  { %1860 = vrot.lane.b32.xlu2 %v1852_v22, %s3092_s0  ;;  %v1927_v22 = vmul.f32 %v1925_v48, %v4259_v14 }
 0x307   :  { %1858 = vrot.lane.b32.xlu1 %v1851_v38, %s3092_s0  ;;  %1856 = vrot.lane.b32.xlu0 %v1850_v19, %s3092_s0  ;;  %v1926_v38 = vmul.f32 %v1925_v48, %v4261_v1  ;;  %v1538_v19 = vadd.f32 %v1535_v2, %v4279_v31 }
 0x308   :  { %v1604_v45 = vpop.permute.xlu2 %1603 }
 0x309   :  { %v1610_v29 = vadd.f32 %v1604_v45, %v1553_v18  ;;  %v1537_v45 = vadd.f32 %v1534_v60, %v4279_v31  ;;  %v1968_v31 = vstv %s2946_s2  ;;  %s2955_s2 = sld [smem:[#allocation3 + $0x67]] }
 0x30e   :  { %1879 = vrot.lane.b32.xlu2 %v1871_v27, %s3092_s0  ;;  %v1541_v27 = vmul.f32 %v4285_v63, %v4175_v35 }
 0x30f   :  { %1877 = vrot.lane.b32.xlu1 %v1870_v36, %s3092_s0  ;;  %1875 = vrot.lane.b32.xlu0 %v1869_v7, %s3092_s0  ;;  %v4352_v7 = vld [vmem:[#allocation2 + $0x28] sm:$0x3] }
 0x310   :  { %v1623_v56 = vpop.permute.xlu2 %1622  ;;  %v1971_v63 = vmul.f32 %v1968_v31, %v4352_v7 }
 0x311   :  { %v1629_v12 = vadd.f32 %v1623_v56, %v1572_v11  ;;  %v1564_v3 = vpop.permute.xlu1 %1563  ;;  %v1562_v5 = vpop.permute.xlu0 %1561 }
 0x312   :  { %v1571_v0 = vadd.f32 %v1564_v3, %v1538_v19  ;;  %v1570_v25 = vadd.f32 %v1562_v5, %v1537_v45  ;;  %v1673_v3 = vmul.f32 %v4288_v13, %v4217_v15  ;;  %v1672_v5 = vmul.f32 %v4288_v13, %v4219_v17 }
 0x313   :  { %v4298_v43 = vadd.f32 %v1674_v32, %v1629_v12  ;;  %v4356_v12 = vld [vmem:[#allocation2 + $0x18] sm:$0xff]  ;;  %v1686_v19 = vmul.f32 %v4324_v52, %v4219_v17 }
 0x314   :  { %v1969_v50 = vmul.f32 %v1968_v31, %v4356_v12 }
 0x316   :  { %1898 = vrot.lane.b32.xlu2 %v1890_v23, %s3093_s27  ;;  %v1970_v23 = vmul.f32 %v1968_v31, %v4354_v46 }
 0x317   :  { %1896 = vrot.lane.b32.xlu1 %v1889_v16, %s3093_s27  ;;  %1894 = vrot.lane.b32.xlu0 %v1888_v10, %s3093_s27  ;;  %v1545_v16 = vadd.f32 %v1542_v59, %v4296_v40  ;;  %v1544_v10 = vadd.f32 %v1541_v27, %v4296_v40 }
 0x318   :  { %v1642_v30 = vpop.permute.xlu2 %1641 }
 0x319   :  { %v1648_v39 = vadd.f32 %v1642_v30, %v1591_v42  ;;  %v1583_v26 = vpop.permute.xlu1 %1582  ;;  %v1581_v53 = vpop.permute.xlu0 %1580 }
 0x31a   :  { %v1590_v13 = vadd.f32 %v1583_v26, %v1545_v16  ;;  %v1589_v42 = vadd.f32 %v1581_v53, %v1544_v10  ;;  %v1679_v26 = vmul.f32 %v4307_v44, %v4219_v17  ;;  %v2044_v16 = vstv %s2974_s29  ;;  %s2983_s29 = sld [smem:[#allocation3 + $0x83]] }
 0x31b   :  { %v4317_v58 = vadd.f32 %v1681_v49, %v1648_v39  ;;  %v1548_v39 = vmul.f32 %v4304_v57, %v4175_v35 }
 0x31e   :  { %1917 = vrot.lane.b32.xlu2 %v1909_v55, %s3093_s27  ;;  %v1987_v55 = vstv %s2973_s23  ;;  %s2982_s23 = sld [smem:[#allocation3 + $0x82]] }
 0x31f   :  { %1915 = vrot.lane.b32.xlu1 %v1908_v47, %s3093_s27  ;;  %1913 = vrot.lane.b32.xlu0 %v1907_v6, %s3093_s27  ;;  %v1680_v47 = vmul.f32 %v4307_v44, %v4217_v15  ;;  %v1990_v53 = vmul.f32 %v1987_v55, %v4352_v7  ;;  %v1989_v35 = vmul.f32 %v1987_v55, %v4354_v46 }
 0x320   :  { %v1661_v20 = vpop.permute.xlu2 %1660  ;;  %v1988_v57 = vmul.f32 %v1987_v55, %v4356_v12 }
 0x321   :  { %v1667_v34 = vadd.f32 %v1661_v20, %v1610_v29  ;;  %v4328_v41 = vpop.permute.xlu1 %1601  ;;  %v4330_v37 = vpop.permute.xlu0 %1599  ;;  %v1552_v29 = vadd.f32 %v1549_v9, %v4315_v8  ;;  %v1551_v20 = vadd.f32 %v1548_v39, %v4315_v8  ;;  %v1687_v8 = vmul.f32 %v4324_v52, %v4217_v15 }
 0x322   :  { %v2046_v9 = vmul.f32 %v2044_v16, %v4354_v46 }
 0x323   :  { %v1691_v24 = vadd.f32 %v1688_v62, %v1667_v34  ;;  %v1609_v44 = vadd.f32 %v4328_v41, %v1552_v29  ;;  %v1608_v34 = vadd.f32 %v4330_v37, %v1551_v20 }
 0x326   :  { %1936 = vrot.lane.b32.xlu2 %v1928_v21, %s3093_s27  ;;  %v2006_v21 = vstv %s3000_s24  ;;  %s3009_s24 = sld [smem:[#allocation3 + $0x9d]] }
 0x327   :  { %1934 = vrot.lane.b32.xlu1 %v1927_v22, %s3093_s27  ;;  %1932 = vrot.lane.b32.xlu0 %v1926_v38, %s3093_s27  ;;  %v2009_v45 = vmul.f32 %v2006_v21, %v4352_v7  ;;  %v2008_v37 = vmul.f32 %v2006_v21, %v4354_v46 }
 0x328   :  { %v4346_v54 = vpop.permute.xlu2 %1703 }
 0x329   :  { %v1621_v28 = vpop.permute.xlu1 %1620  ;;  %v1619_v36 = vpop.permute.xlu0 %1618  ;;  %v1710_v59 = vadd.f32 %v4346_v54, %v4298_v43  ;;  %v4416_v54 = vstv %s2969_s28  ;;  %s2978_s28 = sld [smem:[#allocation3 + $0x7e]] }
 0x32a   :  { %v1628_v11 = vadd.f32 %v1621_v28, %v1571_v0  ;;  %v1627_v56 = vadd.f32 %v1619_v36, %v1570_v25  ;;  %v4404_v25 = vstv %s2942_s25  ;;  %v2025_v28 = vstv %s2947_s26  ;;  %s2951_s25 = sld [smem:[#allocation3 + $0x63]] }
 0x32b   :  { %v1812_v36 = vmul.f32 %v4404_v25, %v4257_v61  ;;  %v2026_v43 = vmul.f32 %v2025_v28, %v4356_v12  ;;  %v1819_v10 = vmul.f32 %v4416_v54, %v4257_v61  ;;  %s2956_s26 = sld [smem:[#allocation3 + $0x68]] }
 0x32c   :  { %v4363_v4 = vadd.f32 %v1673_v3, %v1628_v11  ;;  %v4365_v32 = vadd.f32 %v1672_v5, %v1627_v56  ;;  %v2028_v11 = vmul.f32 %v2025_v28, %v4352_v7  ;;  %v2027_v56 = vmul.f32 %v2025_v28, %v4354_v46 }
 0x32e   :  { %1979 = vrot.lane.b32.xlu2 %v1971_v63, %s3092_s0 }
 0x32f   :  { %1977 = vrot.lane.b32.xlu1 %v1970_v23, %s3092_s0  ;;  %1975 = vrot.lane.b32.xlu0 %v1969_v50, %s3092_s0 }
 0x330   :  { %v1723_v30 = vpop.permute.xlu2 %1722 }
 0x331   :  { %v1640_v33 = vpop.permute.xlu1 %1639  ;;  %v1638_v49 = vpop.permute.xlu0 %1637  ;;  %v1729_v3 = vadd.f32 %v1723_v30, %v4317_v58  ;;  %v2045_v58 = vmul.f32 %v2044_v16, %v4356_v12  ;;  %v4427_v30 = vstv %s2996_s30  ;;  %s3005_s30 = sld [smem:[#allocation3 + $0x99]] }
 0x332   :  { %v1647_v40 = vadd.f32 %v1640_v33, %v1590_v13  ;;  %v1646_v18 = vadd.f32 %v1638_v49, %v1589_v42  ;;  %v2047_v42 = vmul.f32 %v2044_v16, %v4352_v7 }
 0x334   :  { %v4383_v6 = vadd.f32 %v1680_v47, %v1647_v40  ;;  %v4385_v51 = vadd.f32 %v1679_v26, %v1646_v18  ;;  %v2063_v40 = vstv %s3001_s4  ;;  %v1826_v18 = vmul.f32 %v4427_v30, %v4257_v61  ;;  %s3010_s4 = sld [smem:[#allocation3 + $0x9e]] }
 0x335   :  { %v2064_v29 = vmul.f32 %v2063_v40, %v4356_v12 }
 0x336   :  { %1998 = vrot.lane.b32.xlu2 %v1990_v53, %s3092_s0 }
 0x337   :  { %1996 = vrot.lane.b32.xlu1 %v1989_v35, %s3092_s0  ;;  %1994 = vrot.lane.b32.xlu0 %v1988_v57, %s3092_s0  ;;  %v2066_v35 = vmul.f32 %v2063_v40, %v4352_v7  ;;  %v2065_v57 = vmul.f32 %v2063_v40, %v4354_v46 }
 0x338   :  { %v1742_v48 = vpop.permute.xlu2 %1741 }
 0x339   :  { %v1748_v62 = vadd.f32 %v1742_v48, %v1691_v24  ;;  %v1659_v2 = vpop.permute.xlu1 %1658  ;;  %v1657_v60 = vpop.permute.xlu0 %1656  ;;  %v2007_v24 = vmul.f32 %v2006_v21, %v4356_v12 }
 0x33a   :  { %v1666_v22 = vadd.f32 %v1659_v2, %v1609_v44  ;;  %v1665_v38 = vadd.f32 %v1657_v60, %v1608_v34  ;;  %v4441_v2 = vld [vmem:[#allocation2 + $0x29] sm:$0x3]  ;;  %v2106_v60 = vstv %s2949_s5  ;;  %s2958_s5 = sld [smem:[#allocation3 + $0x6a]] }
 0x33c   :  { %v1690_v0 = vadd.f32 %v1687_v8, %v1666_v22  ;;  %v1689_v41 = vadd.f32 %v1686_v19, %v1665_v38  ;;  %v4443_v38 = vld [vmem:[#allocation2 + $0x21] sm:$0xff]  ;;  %v4445_v8 = vld [vmem:[#allocation2 + $0x19] sm:$0xff]  ;;  %v1811_v19 = vmul.f32 %v4404_v25, %v4259_v14 }
 0x33e   :  { %2017 = vrot.lane.b32.xlu2 %v2009_v45, %s3092_s0 }
 0x33f   :  { %2015 = vrot.lane.b32.xlu1 %v2008_v37, %s3092_s0  ;;  %2013 = vrot.lane.b32.xlu0 %v2007_v24, %s3092_s0  ;;  %v2107_v37 = vmul.f32 %v2106_v60, %v4445_v8 }
 0x340   :  { %v1761_v15 = vpop.permute.xlu2 %1760 }
 0x341   :  { %v1767_v17 = vadd.f32 %v1761_v15, %v1710_v59  ;;  %v1702_v52 = vpop.permute.xlu1 %1701  ;;  %v1700_v27 = vpop.permute.xlu0 %1699 }
 0x342   :  { %v1709_v20 = vadd.f32 %v1702_v52, %v4363_v4  ;;  %v1708_v44 = vadd.f32 %v1700_v27, %v4365_v32  ;;  %v1810_v4 = vmul.f32 %v4404_v25, %v4261_v1  ;;  %v2109_v32 = vmul.f32 %v2106_v60, %v4441_v2 }
 0x343   :  { %v1815_v31 = vadd.f32 %v1812_v36, %v1767_v17  ;;  %v2125_v27 = vstv %s2976_s6  ;;  %s2985_s6 = sld [smem:[#allocation3 + $0x85]] }
 0x346   :  { %2036 = vrot.lane.b32.xlu2 %v2028_v11, %s3093_s27  ;;  %v1817_v11 = vmul.f32 %v4416_v54, %v4261_v1 }
 0x347   :  { %2034 = vrot.lane.b32.xlu1 %v2027_v56, %s3093_s27  ;;  %2032 = vrot.lane.b32.xlu0 %v2026_v43, %s3093_s27  ;;  %v2128_v56 = vmul.f32 %v2125_v27, %v4441_v2 }
 0x348   :  { %v1780_v5 = vpop.permute.xlu2 %1779 }
 0x349   :  { %v1786_v63 = vadd.f32 %v1780_v5, %v1729_v3  ;;  %v1721_v23 = vpop.permute.xlu1 %1720  ;;  %v1719_v50 = vpop.permute.xlu0 %1718  ;;  %v2126_v3 = vmul.f32 %v2125_v27, %v4445_v8 }
 0x34a   :  { %v1728_v24 = vadd.f32 %v1721_v23, %v4383_v6  ;;  %v1727_v59 = vadd.f32 %v1719_v50, %v4385_v51  ;;  %v2127_v51 = vmul.f32 %v2125_v27, %v4443_v38 }
 0x34b   :  { %v1822_v13 = vadd.f32 %v1819_v10, %v1786_v63 }
 0x34e   :  { %2055 = vrot.lane.b32.xlu2 %v2047_v42, %s3093_s27  ;;  %v1824_v42 = vmul.f32 %v4427_v30, %v4261_v1 }
 0x34f   :  { %2053 = vrot.lane.b32.xlu1 %v2046_v9, %s3093_s27  ;;  %2051 = vrot.lane.b32.xlu0 %v2045_v58, %s3093_s27 }
 0x350   :  { %v1799_v39 = vpop.permute.xlu2 %1798 }
 0x351   :  { %v1805_v33 = vadd.f32 %v1799_v39, %v1748_v62  ;;  %v1740_v49 = vpop.permute.xlu1 %1739  ;;  %v1738_v55 = vpop.permute.xlu0 %1737 }
 0x352   :  { %v1747_v47 = vadd.f32 %v1740_v49, %v1690_v0  ;;  %v1746_v26 = vadd.f32 %v1738_v55, %v1689_v41  ;;  %v2108_v41 = vmul.f32 %v2106_v60, %v4443_v38  ;;  %v4477_v55 = vstv %s2945_s8  ;;  %s2954_s8 = sld [smem:[#allocation3 + $0x66]] }
 0x353   :  { %v1829_v53 = vadd.f32 %v1826_v18, %v1805_v33  ;;  %v2163_v18 = vstv %s2950_s9  ;;  %v2182_v60 = vstv %s2977_s11  ;;  %s2959_s9 = sld [smem:[#allocation3 + $0x6b]] }
 0x354   :  { %s2986_s11 = sld [smem:[#allocation3 + $0x86]] }
 0x356   :  { %2074 = vrot.lane.b32.xlu2 %v2066_v35, %s3093_s27 }
 0x357   :  { %2072 = vrot.lane.b32.xlu1 %v2065_v57, %s3093_s27  ;;  %2070 = vrot.lane.b32.xlu0 %v2064_v29, %s3093_s27  ;;  %v2166_v57 = vmul.f32 %v2163_v18, %v4441_v2  ;;  %v2165_v29 = vmul.f32 %v2163_v18, %v4443_v38 }
 0x358   :  { %v1842_v61 = vpop.permute.xlu2 %1841 }
 0x359   :  { %v1848_v34 = vadd.f32 %v1842_v61, %v1815_v31  ;;  %v1759_v48 = vpop.permute.xlu1 %1758  ;;  %v1757_v62 = vpop.permute.xlu0 %1756  ;;  %v1818_v31 = vmul.f32 %v4416_v54, %v4259_v14  ;;  %v2144_v54 = vstv %s3003_s7  ;;  %s3012_s7 = sld [smem:[#allocation3 + $0xa0]] }
 0x35a   :  { %v1766_v21 = vadd.f32 %v1759_v48, %v1709_v20  ;;  %v1765_v22 = vadd.f32 %v1757_v62, %v1708_v44  ;;  %v2147_v9 = vmul.f32 %v2144_v54, %v4441_v2  ;;  %v2146_v33 = vmul.f32 %v2144_v54, %v4443_v38 }
 0x35b   :  { %v2145_v49 = vmul.f32 %v2144_v54, %v4445_v8  ;;  %v2164_v20 = vmul.f32 %v2163_v18, %v4445_v8  ;;  %v4487_v44 = vstv %s2972_s10  ;;  %v1949_v54 = vmul.f32 %v4477_v55, %v4354_v46  ;;  %s2981_s10 = sld [smem:[#allocation3 + $0x81]] }
 0x35c   :  { %v1814_v45 = vadd.f32 %v1811_v19, %v1766_v21  ;;  %v1813_v0 = vadd.f32 %v1810_v4, %v1765_v22  ;;  %v1957_v21 = vmul.f32 %v4487_v44, %v4352_v7  ;;  %v1955_v18 = vmul.f32 %v4487_v44, %v4356_v12 }
 0x35e   :  { %2117 = vrot.lane.b32.xlu2 %v2109_v32, %s3092_s0  ;;  %v2185_v32 = vmul.f32 %v2182_v60, %v4441_v2 }
 0x35f   :  { %2115 = vrot.lane.b32.xlu1 %v2108_v41, %s3092_s0  ;;  %2113 = vrot.lane.b32.xlu0 %v2107_v37, %s3092_s0  ;;  %v4497_v41 = vstv %s2999_s12  ;;  %s3008_s12 = sld [smem:[#allocation3 + $0x9c]] }
 0x360   :  { %v1861_v15 = vpop.permute.xlu2 %1860 }
 0x361   :  { %v1867_v25 = vadd.f32 %v1861_v15, %v1822_v13  ;;  %v1778_v17 = vpop.permute.xlu1 %1777  ;;  %v1776_v52 = vpop.permute.xlu0 %1775  ;;  %v1825_v13 = vmul.f32 %v4427_v30, %v4259_v14 }
 0x362   :  { %v1785_v28 = vadd.f32 %v1778_v17, %v1728_v24  ;;  %v1784_v36 = vadd.f32 %v1776_v52, %v1727_v59  ;;  %v1964_v17 = vmul.f32 %v4497_v41, %v4352_v7 }
 0x364   :  { %v1821_v43 = vadd.f32 %v1818_v31, %v1785_v28  ;;  %v1820_v6 = vadd.f32 %v1817_v11, %v1784_v36 }
 0x366   :  { %2136 = vrot.lane.b32.xlu2 %v2128_v56, %s3092_s0 }
 0x367   :  { %2134 = vrot.lane.b32.xlu1 %v2127_v51, %s3092_s0  ;;  %2132 = vrot.lane.b32.xlu0 %v2126_v3, %s3092_s0  ;;  %v2244_v3 = vstv %s2952_s14  ;;  %s2961_s14 = sld [smem:[#allocation3 + $0x6d]] }
 0x368   :  { %v1880_v5 = vpop.permute.xlu2 %1879 }
 0x369   :  { %v1886_v63 = vadd.f32 %v1880_v5, %v1829_v53  ;;  %v1797_v23 = vpop.permute.xlu1 %1796  ;;  %v1795_v50 = vpop.permute.xlu0 %1794 }
 0x36a   :  { %v1804_v16 = vadd.f32 %v1797_v23, %v1747_v47  ;;  %v1803_v10 = vadd.f32 %v1795_v50, %v1746_v26  ;;  %v1950_v47 = vmul.f32 %v4477_v55, %v4352_v7  ;;  %v4509_v7 = vld [vmem:[#allocation2 + $0x2a] sm:$0x3]  ;;  %v4511_v23 = vld [vmem:[#allocation2 + $0x22] sm:$0xff]  ;;  %v4513_v50 = vld [vmem:[#allocation2 + $0x1a] sm:$0xff] }
 0x36c   :  { %v1828_v58 = vadd.f32 %v1825_v13, %v1804_v16  ;;  %v1827_v39 = vadd.f32 %v1824_v42, %v1803_v10  ;;  %v1948_v16 = vmul.f32 %v4477_v55, %v4356_v12  ;;  %v2247_v10 = vmul.f32 %v2244_v3, %v4509_v7 }
 0x36e   :  { %2155 = vrot.lane.b32.xlu2 %v2147_v9, %s3092_s0  ;;  %v2246_v9 = vmul.f32 %v2244_v3, %v4511_v23 }
 0x36f   :  { %2153 = vrot.lane.b32.xlu1 %v2146_v33, %s3092_s0  ;;  %2151 = vrot.lane.b32.xlu0 %v2145_v49, %s3092_s0 }
 0x370   :  { %v1899_v14 = vpop.permute.xlu2 %1898 }
 0x371   :  { %v1905_v40 = vadd.f32 %v1899_v14, %v1848_v34  ;;  %v1840_v1 = vpop.permute.xlu1 %1839  ;;  %v1838_v30 = vpop.permute.xlu0 %1837 }
 0x372   :  { %v1847_v26 = vadd.f32 %v1840_v1, %v1814_v45  ;;  %v1846_v53 = vadd.f32 %v1838_v30, %v1813_v0  ;;  %v2184_v45 = vmul.f32 %v2182_v60, %v4443_v38  ;;  %v2183_v0 = vmul.f32 %v2182_v60, %v4445_v8 }
 0x373   :  { %v1953_v35 = vadd.f32 %v1950_v47, %v1905_v40  ;;  %v2263_v40 = vstv %s2979_s15  ;;  %v1956_v30 = vmul.f32 %v4487_v44, %v4354_v46  ;;  %v2282_v44 = vstv %s3006_s16  ;;  %s2988_s15 = sld [smem:[#allocation3 + $0x88]] }
 0x374   :  { %v2266_v47 = vmul.f32 %v2263_v40, %v4509_v7  ;;  %v1963_v60 = vmul.f32 %v4497_v41, %v4354_v46  ;;  %s3015_s16 = sld [smem:[#allocation3 + $0xa3]] }
 0x376   :  { %2174 = vrot.lane.b32.xlu2 %v2166_v57, %s3093_s27  ;;  %v2264_v57 = vmul.f32 %v2263_v40, %v4513_v50 }
 0x377   :  { %2172 = vrot.lane.b32.xlu1 %v2165_v29, %s3093_s27  ;;  %2170 = vrot.lane.b32.xlu0 %v2164_v20, %s3093_s27 }
 0x378   :  { %v1918_v61 = vpop.permute.xlu2 %1917 }
 0x379   :  { %v1924_v34 = vadd.f32 %v1918_v61, %v1867_v25  ;;  %v1859_v48 = vpop.permute.xlu1 %1858  ;;  %v1857_v62 = vpop.permute.xlu0 %1856  ;;  %v2201_v25 = vstv %s3004_s13  ;;  %s3013_s13 = sld [smem:[#allocation3 + $0xa1]] }
 0x37a   :  { %v1866_v22 = vadd.f32 %v1859_v48, %v1821_v43  ;;  %v1865_v19 = vadd.f32 %v1857_v62, %v1820_v6  ;;  %v2204_v36 = vmul.f32 %v2201_v25, %v4441_v2  ;;  %v2203_v31 = vmul.f32 %v2201_v25, %v4443_v38 }
 0x37b   :  { %v1960_v4 = vadd.f32 %v1957_v21, %v1924_v34  ;;  %v2202_v11 = vmul.f32 %v2201_v25, %v4445_v8  ;;  %v1962_v21 = vmul.f32 %v4497_v41, %v4356_v12 }
 0x37e   :  { %2193 = vrot.lane.b32.xlu2 %v2185_v32, %s3093_s27  ;;  %v2284_v32 = vmul.f32 %v2282_v44, %v4511_v23 }
 0x37f   :  { %2191 = vrot.lane.b32.xlu1 %v2184_v45, %s3093_s27  ;;  %2189 = vrot.lane.b32.xlu0 %v2183_v0, %s3093_s27  ;;  %v2283_v45 = vmul.f32 %v2282_v44, %v4513_v50  ;;  %v4543_v0 = vstv %s2948_s17  ;;  %s2957_s17 = sld [smem:[#allocation3 + $0x69]] }
 0x380   :  { %v1937_v37 = vpop.permute.xlu2 %1936 }
 0x381   :  { %v1943_v24 = vadd.f32 %v1937_v37, %v1886_v63  ;;  %v1878_v59 = vpop.permute.xlu1 %1877  ;;  %v1876_v15 = vpop.permute.xlu0 %1875 }
 0x382   :  { %v1885_v52 = vadd.f32 %v1878_v59, %v1828_v58  ;;  %v1884_v27 = vadd.f32 %v1876_v15, %v1827_v39  ;;  %v2245_v58 = vmul.f32 %v2244_v3, %v4513_v50  ;;  %v2088_v59 = vmul.f32 %v4543_v0, %v4441_v2 }
 0x383   :  { %v1967_v28 = vadd.f32 %v1964_v17, %v1943_v24  ;;  %v2301_v24 = vstv %s2953_s18  ;;  %s2962_s18 = sld [smem:[#allocation3 + $0x6e]] }
 0x386   :  { %2212 = vrot.lane.b32.xlu2 %v2204_v36, %s3093_s27  ;;  %v4553_v36 = vstv %s2975_s19  ;;  %s2984_s19 = sld [smem:[#allocation3 + $0x84]] }
 0x387   :  { %2210 = vrot.lane.b32.xlu1 %v2203_v31, %s3093_s27  ;;  %2208 = vrot.lane.b32.xlu0 %v2202_v11, %s3093_s27 }
 0x388   :  { %v1980_v56 = vpop.permute.xlu2 %1979 }
 0x389   :  { %v1986_v43 = vadd.f32 %v1980_v56, %v1953_v35  ;;  %v1897_v6 = vpop.permute.xlu1 %1896  ;;  %v1895_v51 = vpop.permute.xlu0 %1894  ;;  %v2265_v35 = vmul.f32 %v2263_v40, %v4511_v23 }
 0x38a   :  { %v1904_v5 = vadd.f32 %v1897_v6, %v1847_v26  ;;  %v1903_v63 = vadd.f32 %v1895_v51, %v1846_v53  ;;  %v2320_v6 = vstv %s2980_s20  ;;  %v2095_v51 = vmul.f32 %v4553_v36, %v4441_v2  ;;  %s2989_s20 = sld [smem:[#allocation3 + $0x89]] }
 0x38c   :  { %v1952_v13 = vadd.f32 %v1949_v54, %v1904_v5  ;;  %v1951_v42 = vadd.f32 %v1948_v16, %v1903_v63  ;;  %v2323_v54 = vmul.f32 %v2320_v6, %v4509_v7  ;;  %v2322_v16 = vmul.f32 %v2320_v6, %v4511_v23 }
 0x38e   :  { %2255 = vrot.lane.b32.xlu2 %v2247_v10, %s3092_s0  ;;  %v2321_v10 = vmul.f32 %v2320_v6, %v4513_v50 }
 0x38f   :  { %2253 = vrot.lane.b32.xlu1 %v2246_v9, %s3092_s0  ;;  %2251 = vrot.lane.b32.xlu0 %v2245_v58, %s3092_s0 }
 0x390   :  { %v1999_v39 = vpop.permute.xlu2 %1998 }
 0x391   :  { %v2005_v33 = vadd.f32 %v1999_v39, %v1960_v4  ;;  %v1916_v49 = vpop.permute.xlu1 %1915  ;;  %v1914_v14 = vpop.permute.xlu0 %1913 }
 0x392   :  { %v1923_v55 = vadd.f32 %v1916_v49, %v1866_v22  ;;  %v1922_v1 = vadd.f32 %v1914_v14, %v1865_v19  ;;  %v2285_v22 = vmul.f32 %v2282_v44, %v4509_v7  ;;  %v2087_v44 = vmul.f32 %v4543_v0, %v4443_v38 }
 0x394   :  { %v1959_v26 = vadd.f32 %v1956_v30, %v1923_v55  ;;  %v1958_v53 = vadd.f32 %v1955_v18, %v1922_v1 }
 0x396   :  { %2274 = vrot.lane.b32.xlu2 %v2266_v47, %s3092_s0 }
 0x397   :  { %2272 = vrot.lane.b32.xlu1 %v2265_v35, %s3092_s0  ;;  %2270 = vrot.lane.b32.xlu0 %v2264_v57, %s3092_s0  ;;  %v2382_v57 = vstv %s2955_s2 }
 0x398   :  { %v2018_v29 = vpop.permute.xlu2 %2017 }
 0x399   :  { %v2024_v20 = vadd.f32 %v2018_v29, %v1967_v28  ;;  %v1935_v61 = vpop.permute.xlu1 %1934  ;;  %v1933_v34 = vpop.permute.xlu0 %1932  ;;  %v2302_v28 = vmul.f32 %v2301_v24, %v4513_v50 }
 0x39a   :  { %v1942_v48 = vadd.f32 %v1935_v61, %v1885_v52  ;;  %v1941_v62 = vadd.f32 %v1933_v34, %v1884_v27  ;;  %v2304_v52 = vmul.f32 %v2301_v24, %v4509_v7  ;;  %v2303_v27 = vmul.f32 %v2301_v24, %v4511_v23  ;;  %v4577_v61 = vld [vmem:[#allocation2 + $0x38] sm:$0xff]  ;;  %v4579_v34 = vld [vmem:[#allocation2 + $0x30] sm:$0xff] }
 0x39b   :  { %v2093_v24 = vmul.f32 %v4553_v36, %v4445_v8 }
 0x39c   :  { %v1966_v19 = vadd.f32 %v1963_v60, %v1942_v48  ;;  %v1965_v4 = vadd.f32 %v1962_v21, %v1941_v62  ;;  %v2086_v48 = vmul.f32 %v4543_v0, %v4445_v8 }
 0x39e   :  { %2293 = vrot.lane.b32.xlu2 %v2285_v22, %s3092_s0  ;;  %v2384_v22 = vmul.f32 %v2382_v57, %v4577_v61 }
 0x39f   :  { %2291 = vrot.lane.b32.xlu1 %v2284_v32, %s3092_s0  ;;  %2289 = vrot.lane.b32.xlu0 %v2283_v45, %s3092_s0 }
 0x3a0   :  { %v2037_v46 = vpop.permute.xlu2 %2036 }
 0x3a1   :  { %v2043_v37 = vadd.f32 %v2037_v46, %v1986_v43  ;;  %v1978_v12 = vpop.permute.xlu1 %1977  ;;  %v1976_v41 = vpop.permute.xlu0 %1975 }
 0x3a2   :  { %v1985_v15 = vadd.f32 %v1978_v12, %v1952_v13  ;;  %v1984_v25 = vadd.f32 %v1976_v41, %v1951_v42  ;;  %v4563_v13 = vstv %s3002_s21  ;;  %v2094_v41 = vmul.f32 %v4553_v36, %v4443_v38  ;;  %s3011_s21 = sld [smem:[#allocation3 + $0x9f]] }
 0x3a3   :  { %v2091_v17 = vadd.f32 %v2088_v59, %v2043_v37  ;;  %v2102_v49 = vmul.f32 %v4563_v13, %v4441_v2  ;;  %v4575_v2 = vld [vmem:[#allocation2 + $0x40] sm:$0x3]  ;;  %v2401_v37 = vstv %s2982_s23  ;;  %v2420_v36 = vstv %s3009_s24 }
 0x3a4   :  { %v2385_v62 = vmul.f32 %v2382_v57, %v4575_v2  ;;  %v2404_v59 = vmul.f32 %v2401_v37, %v4575_v2  ;;  %v2101_v6 = vmul.f32 %v4563_v13, %v4443_v38 }
 0x3a6   :  { %2312 = vrot.lane.b32.xlu2 %v2304_v52, %s3093_s27  ;;  %v2402_v52 = vmul.f32 %v2401_v37, %v4579_v34 }
 0x3a7   :  { %2310 = vrot.lane.b32.xlu1 %v2303_v27, %s3093_s27  ;;  %2308 = vrot.lane.b32.xlu0 %v2302_v28, %s3093_s27 }
 0x3a8   :  { %v2056_v31 = vpop.permute.xlu2 %2055 }
 0x3a9   :  { %v2062_v11 = vadd.f32 %v2056_v31, %v2005_v33  ;;  %v1997_v56 = vpop.permute.xlu1 %1996  ;;  %v1995_v43 = vpop.permute.xlu0 %1994  ;;  %v2339_v33 = vstv %s3007_s22  ;;  %s3016_s22 = sld [smem:[#allocation3 + $0xa4]] }
 0x3aa   :  { %v2004_v3 = vadd.f32 %v1997_v56, %v1959_v26  ;;  %v2003_v5 = vadd.f32 %v1995_v43, %v1958_v53  ;;  %v2342_v1 = vmul.f32 %v2339_v33, %v4509_v7  ;;  %v2341_v30 = vmul.f32 %v2339_v33, %v4511_v23 }
 0x3ab   :  { %v2098_v63 = vadd.f32 %v2095_v51, %v2062_v11  ;;  %v2340_v18 = vmul.f32 %v2339_v33, %v4513_v50  ;;  %v2100_v51 = vmul.f32 %v4563_v13, %v4445_v8 }
 0x3ae   :  { %2331 = vrot.lane.b32.xlu2 %v2323_v54, %s3093_s27  ;;  %v2422_v54 = vmul.f32 %v2420_v36, %v4577_v61 }
 0x3af   :  { %2329 = vrot.lane.b32.xlu1 %v2322_v16, %s3093_s27  ;;  %2327 = vrot.lane.b32.xlu0 %v2321_v10, %s3093_s27  ;;  %v2421_v16 = vmul.f32 %v2420_v36, %v4579_v34  ;;  %v4609_v10 = vstv %s2951_s25 }
 0x3b0   :  { %v2075_v42 = vpop.permute.xlu2 %2074 }
 0x3b1   :  { %v2081_v9 = vadd.f32 %v2075_v42, %v2024_v20  ;;  %v2016_v58 = vpop.permute.xlu1 %2015  ;;  %v2014_v39 = vpop.permute.xlu0 %2013 }
 0x3b2   :  { %v2023_v14 = vadd.f32 %v2016_v58, %v1966_v19  ;;  %v2022_v40 = vadd.f32 %v2014_v39, %v1965_v4  ;;  %v2383_v19 = vmul.f32 %v2382_v57, %v4579_v34  ;;  %v2226_v58 = vmul.f32 %v4609_v10, %v4509_v7 }
 0x3b3   :  { %v2105_v55 = vadd.f32 %v2102_v49, %v2081_v9  ;;  %v2439_v9 = vstv %s2956_s26 }
 0x3b6   :  { %2350 = vrot.lane.b32.xlu2 %v2342_v1, %s3093_s27  ;;  %v4619_v1 = vstv %s2978_s28 }
 0x3b7   :  { %2348 = vrot.lane.b32.xlu1 %v2341_v30, %s3093_s27  ;;  %2346 = vrot.lane.b32.xlu0 %v2340_v18, %s3093_s27 }
 0x3b8   :  { %v2118_v47 = vpop.permute.xlu2 %2117 }
 0x3b9   :  { %v2124_v26 = vadd.f32 %v2118_v47, %v2091_v17  ;;  %v2035_v53 = vpop.permute.xlu1 %2034  ;;  %v2033_v35 = vpop.permute.xlu0 %2032  ;;  %v2403_v17 = vmul.f32 %v2401_v37, %v4577_v61 }
 0x3ba   :  { %v2042_v29 = vadd.f32 %v2035_v53, %v1985_v15  ;;  %v2041_v20 = vadd.f32 %v2033_v35, %v1984_v25  ;;  %v2458_v53 = vstv %s2983_s29  ;;  %v2233_v35 = vmul.f32 %v4619_v1, %v4509_v7 }
 0x3bc   :  { %v2090_v60 = vadd.f32 %v2087_v44, %v2042_v29  ;;  %v2089_v21 = vadd.f32 %v2086_v48, %v2041_v20  ;;  %v2461_v44 = vmul.f32 %v2458_v53, %v4575_v2  ;;  %v2460_v48 = vmul.f32 %v2458_v53, %v4577_v61 }
 0x3be   :  { %2393 = vrot.lane.b32.xlu2 %v2385_v62, %s3092_s0  ;;  %v2459_v62 = vmul.f32 %v2458_v53, %v4579_v34 }
 0x3bf   :  { %2391 = vrot.lane.b32.xlu1 %v2384_v22, %s3092_s0  ;;  %2389 = vrot.lane.b32.xlu0 %v2383_v19, %s3092_s0 }
 0x3c0   :  { %v2137_v4 = vpop.permute.xlu2 %2136 }
 0x3c1   :  { %v2143_v32 = vadd.f32 %v2137_v4, %v2098_v63  ;;  %v2054_v45 = vpop.permute.xlu1 %2053  ;;  %v2052_v46 = vpop.permute.xlu0 %2051 }
 0x3c2   :  { %v2061_v0 = vadd.f32 %v2054_v45, %v2004_v3  ;;  %v2060_v12 = vadd.f32 %v2052_v46, %v2003_v5  ;;  %v2423_v3 = vmul.f32 %v2420_v36, %v4575_v2  ;;  %v2225_v36 = vmul.f32 %v4609_v10, %v4511_v23 }
 0x3c4   :  { %v2097_v15 = vadd.f32 %v2094_v41, %v2061_v0  ;;  %v2096_v25 = vadd.f32 %v2093_v24, %v2060_v12 }
 0x3c6   :  { %2412 = vrot.lane.b32.xlu2 %v2404_v59, %s3092_s0 }
 0x3c7   :  { %2410 = vrot.lane.b32.xlu1 %v2403_v17, %s3092_s0  ;;  %2408 = vrot.lane.b32.xlu0 %v2402_v52, %s3092_s0  ;;  %v2520_v52 = vstv %s2958_s5 }
 0x3c8   :  { %v2156_v27 = vpop.permute.xlu2 %2155 }
 0x3c9   :  { %v2162_v28 = vadd.f32 %v2156_v27, %v2105_v55  ;;  %v2073_v31 = vpop.permute.xlu1 %2072  ;;  %v2071_v11 = vpop.permute.xlu0 %2070  ;;  %v2440_v55 = vmul.f32 %v2439_v9, %v4579_v34 }
 0x3ca   :  { %v2080_v56 = vadd.f32 %v2073_v31, %v2023_v14  ;;  %v2079_v43 = vadd.f32 %v2071_v11, %v2022_v40  ;;  %v2442_v14 = vmul.f32 %v2439_v9, %v4575_v2  ;;  %v2441_v40 = vmul.f32 %v2439_v9, %v4577_v61  ;;  %v4643_v31 = vld [vmem:[#allocation2 + $0x39] sm:$0xff]  ;;  %v4645_v11 = vld [vmem:[#allocation2 + $0x31] sm:$0xff] }
 0x3cb   :  { %v2231_v9 = vmul.f32 %v4619_v1, %v4513_v50 }
 0x3cc   :  { %v2104_v5 = vadd.f32 %v2101_v6, %v2080_v56  ;;  %v2103_v63 = vadd.f32 %v2100_v51, %v2079_v43  ;;  %v2224_v56 = vmul.f32 %v4609_v10, %v4513_v50 }
 0x3ce   :  { %2431 = vrot.lane.b32.xlu2 %v2423_v3, %s3092_s0  ;;  %v2522_v3 = vmul.f32 %v2520_v52, %v4643_v31 }
 0x3cf   :  { %2429 = vrot.lane.b32.xlu1 %v2422_v54, %s3092_s0  ;;  %2427 = vrot.lane.b32.xlu0 %v2421_v16, %s3092_s0 }
 0x3d0   :  { %v2175_v38 = vpop.permute.xlu2 %2174 }
 0x3d1   :  { %v2181_v42 = vadd.f32 %v2175_v38, %v2124_v26  ;;  %v2116_v8 = vpop.permute.xlu1 %2115  ;;  %v2114_v13 = vpop.permute.xlu0 %2113 }
 0x3d2   :  { %v2123_v39 = vadd.f32 %v2116_v8, %v2090_v60  ;;  %v2122_v33 = vadd.f32 %v2114_v13, %v2089_v21  ;;  %v4629_v60 = vstv %s3005_s30  ;;  %v2232_v13 = vmul.f32 %v4619_v1, %v4511_v23 }
 0x3d3   :  { %v2229_v49 = vadd.f32 %v2226_v58, %v2181_v42  ;;  %v2240_v45 = vmul.f32 %v4629_v60, %v4509_v7  ;;  %v4641_v7 = vld [vmem:[#allocation2 + $0x41] sm:$0x3]  ;;  %v2539_v42 = vstv %s2985_s6  ;;  %v2558_v1 = vstv %s3012_s7  ;;  %s2960_s7 = sld [smem:[#allocation3 + $0x6c]] }
 0x3d4   :  { %v2523_v43 = vmul.f32 %v2520_v52, %v4641_v7  ;;  %v2542_v58 = vmul.f32 %v2539_v42, %v4641_v7  ;;  %v2239_v53 = vmul.f32 %v4629_v60, %v4511_v23 }
 0x3d6   :  { %2450 = vrot.lane.b32.xlu2 %v2442_v14, %s3093_s27  ;;  %v2540_v14 = vmul.f32 %v2539_v42, %v4645_v11 }
 0x3d7   :  { %2448 = vrot.lane.b32.xlu1 %v2441_v40, %s3093_s27  ;;  %2446 = vrot.lane.b32.xlu0 %v2440_v55, %s3093_s27 }
 0x3d8   :  { %v2194_v30 = vpop.permute.xlu2 %2193 }
 0x3d9   :  { %v2200_v18 = vadd.f32 %v2194_v30, %v2143_v32  ;;  %v2135_v47 = vpop.permute.xlu1 %2134  ;;  %v2133_v26 = vpop.permute.xlu0 %2132  ;;  %v2477_v32 = vstv %s3010_s4 }
 0x3da   :  { %v2142_v57 = vadd.f32 %v2135_v47, %v2097_v15  ;;  %v2141_v29 = vadd.f32 %v2133_v26, %v2096_v25  ;;  %v2480_v12 = vmul.f32 %v2477_v32, %v4575_v2  ;;  %v2479_v41 = vmul.f32 %v2477_v32, %v4577_v61 }
 0x3db   :  { %v2236_v20 = vadd.f32 %v2233_v35, %v2200_v18  ;;  %v2478_v24 = vmul.f32 %v2477_v32, %v4579_v34  ;;  %v2238_v35 = vmul.f32 %v4629_v60, %v4513_v50 }
 0x3de   :  { %2469 = vrot.lane.b32.xlu2 %v2461_v44, %s3093_s27  ;;  %v2560_v44 = vmul.f32 %v2558_v1, %v4643_v31 }
 0x3df   :  { %2467 = vrot.lane.b32.xlu1 %v2460_v48, %s3093_s27  ;;  %2465 = vrot.lane.b32.xlu0 %v2459_v62, %s3093_s27  ;;  %v2559_v48 = vmul.f32 %v2558_v1, %v4645_v11  ;;  %v4675_v62 = vstv %s2954_s8 }
 0x3e0   :  { %v2213_v21 = vpop.permute.xlu2 %2212 }
 0x3e1   :  { %v2219_v22 = vadd.f32 %v2213_v21, %v2162_v28  ;;  %v2154_v19 = vpop.permute.xlu1 %2153  ;;  %v2152_v4 = vpop.permute.xlu0 %2151 }
 0x3e2   :  { %v2161_v46 = vadd.f32 %v2154_v19, %v2104_v5  ;;  %v2160_v37 = vadd.f32 %v2152_v4, %v2103_v63  ;;  %v2521_v5 = vmul.f32 %v2520_v52, %v4645_v11  ;;  %v2364_v19 = vmul.f32 %v4675_v62, %v4575_v2 }
 0x3e3   :  { %v2243_v0 = vadd.f32 %v2240_v45, %v2219_v22  ;;  %v2577_v22 = vstv %s2959_s9 }
 0x3e6   :  { %2488 = vrot.lane.b32.xlu2 %v2480_v12, %s3093_s27  ;;  %v4685_v12 = vstv %s2981_s10 }
 0x3e7   :  { %2486 = vrot.lane.b32.xlu1 %v2479_v41, %s3093_s27  ;;  %2484 = vrot.lane.b32.xlu0 %v2478_v24, %s3093_s27 }
 0x3e8   :  { %v2256_v59 = vpop.permute.xlu2 %2255 }
 0x3e9   :  { %v2262_v15 = vadd.f32 %v2256_v59, %v2229_v49  ;;  %v2173_v25 = vpop.permute.xlu1 %2172  ;;  %v2171_v17 = vpop.permute.xlu0 %2170  ;;  %v2541_v49 = vmul.f32 %v2539_v42, %v4643_v31 }
 0x3ea   :  { %v2180_v27 = vadd.f32 %v2173_v25, %v2123_v39  ;;  %v2179_v28 = vadd.f32 %v2171_v17, %v2122_v33  ;;  %v2596_v25 = vstv %s2986_s11  ;;  %v2371_v17 = vmul.f32 %v4685_v12, %v4575_v2 }
 0x3ec   :  { %v2228_v6 = vadd.f32 %v2225_v36, %v2180_v27  ;;  %v2227_v51 = vadd.f32 %v2224_v56, %v2179_v28  ;;  %v2599_v36 = vmul.f32 %v2596_v25, %v4641_v7  ;;  %v2598_v56 = vmul.f32 %v2596_v25, %v4643_v31 }
 0x3ee   :  { %2531 = vrot.lane.b32.xlu2 %v2523_v43, %s3092_s0  ;;  %v2597_v43 = vmul.f32 %v2596_v25, %v4645_v11 }
 0x3ef   :  { %2529 = vrot.lane.b32.xlu1 %v2522_v3, %s3092_s0  ;;  %2527 = vrot.lane.b32.xlu0 %v2521_v5, %s3092_s0 }
 0x3f0   :  { %v2275_v63 = vpop.permute.xlu2 %2274 }
 0x3f1   :  { %v2281_v54 = vadd.f32 %v2275_v63, %v2236_v20  ;;  %v2192_v16 = vpop.permute.xlu1 %2191  ;;  %v2190_v38 = vpop.permute.xlu0 %2189 }
 0x3f2   :  { %v2199_v10 = vadd.f32 %v2192_v16, %v2142_v57  ;;  %v2198_v8 = vadd.f32 %v2190_v38, %v2141_v29  ;;  %v2561_v57 = vmul.f32 %v2558_v1, %v4641_v7  ;;  %v2363_v1 = vmul.f32 %v4675_v62, %v4577_v61 }
 0x3f4   :  { %v2235_v39 = vadd.f32 %v2232_v13, %v2199_v10  ;;  %v2234_v33 = vadd.f32 %v2231_v9, %v2198_v8 }
 0x3f6   :  { %2550 = vrot.lane.b32.xlu2 %v2542_v58, %s3092_s0 }
 0x3f7   :  { %2548 = vrot.lane.b32.xlu1 %v2541_v49, %s3092_s0  ;;  %2546 = vrot.lane.b32.xlu0 %v2540_v14, %s3092_s0  ;;  %v2658_v14 = vstv %s2961_s14  ;;  %s2987_s14 = sld [smem:[#allocation3 + $0x87]] }
 0x3f8   :  { %v2294_v40 = vpop.permute.xlu2 %2293 }
 0x3f9   :  { %v2300_v55 = vadd.f32 %v2294_v40, %v2243_v0  ;;  %v2211_v30 = vpop.permute.xlu1 %2210  ;;  %v2209_v18 = vpop.permute.xlu0 %2208  ;;  %v2578_v0 = vmul.f32 %v2577_v22, %v4645_v11 }
 0x3fa   :  { %v2218_v47 = vadd.f32 %v2211_v30, %v2161_v46  ;;  %v2217_v26 = vadd.f32 %v2209_v18, %v2160_v37  ;;  %v2580_v46 = vmul.f32 %v2577_v22, %v4641_v7  ;;  %v2579_v37 = vmul.f32 %v2577_v22, %v4643_v31  ;;  %v4709_v30 = vld [vmem:[#allocation2 + $0x3a] sm:$0xff]  ;;  %v4711_v18 = vld [vmem:[#allocation2 + $0x32] sm:$0xff] }
 0x3fb   :  { %v2369_v22 = vmul.f32 %v4685_v12, %v4579_v34 }
 0x3fc   :  { %v2242_v29 = vadd.f32 %v2239_v53, %v2218_v47  ;;  %v2241_v20 = vadd.f32 %v2238_v35, %v2217_v26  ;;  %v2362_v47 = vmul.f32 %v4675_v62, %v4579_v34 }
 0x3fe   :  { %2569 = vrot.lane.b32.xlu2 %v2561_v57, %s3092_s0  ;;  %v2660_v57 = vmul.f32 %v2658_v14, %v4709_v30 }
 0x3ff   :  { %2567 = vrot.lane.b32.xlu1 %v2560_v44, %s3092_s0  ;;  %2565 = vrot.lane.b32.xlu0 %v2559_v48, %s3092_s0 }
 0x400   :  { %v2313_v23 = vpop.permute.xlu2 %2312 }
 0x401   :  { %v2319_v21 = vadd.f32 %v2313_v23, %v2262_v15  ;;  %v2254_v50 = vpop.permute.xlu1 %2253  ;;  %v2252_v60 = vpop.permute.xlu0 %2251 }
 0x402   :  { %v2261_v4 = vadd.f32 %v2254_v50, %v2228_v6  ;;  %v2260_v32 = vadd.f32 %v2252_v60, %v2227_v51  ;;  %v4695_v6 = vstv %s3008_s12  ;;  %v2370_v60 = vmul.f32 %v4685_v12, %v4577_v61 }
 0x403   :  { %v2367_v45 = vadd.f32 %v2364_v19, %v2319_v21  ;;  %v2378_v16 = vmul.f32 %v4695_v6, %v4575_v2  ;;  %v4707_v2 = vld [vmem:[#allocation2 + $0x42] sm:$0x3]  ;;  %v2677_v21 = vstv %s2988_s15  ;;  %v2696_v12 = vstv %s3015_s16 }
 0x404   :  { %v2661_v26 = vmul.f32 %v2658_v14, %v4707_v2  ;;  %v2680_v19 = vmul.f32 %v2677_v21, %v4707_v2  ;;  %v2377_v25 = vmul.f32 %v4695_v6, %v4577_v61 }
 0x406   :  { %2588 = vrot.lane.b32.xlu2 %v2580_v46, %s3093_s27  ;;  %v2678_v46 = vmul.f32 %v2677_v21, %v4711_v18 }
 0x407   :  { %2586 = vrot.lane.b32.xlu1 %v2579_v37, %s3093_s27  ;;  %2584 = vrot.lane.b32.xlu0 %v2578_v0, %s3093_s27 }
 0x408   :  { %v2332_v41 = vpop.permute.xlu2 %2331 }
 0x409   :  { %v2338_v24 = vadd.f32 %v2332_v41, %v2281_v54  ;;  %v2273_v59 = vpop.permute.xlu1 %2272  ;;  %v2271_v15 = vpop.permute.xlu0 %2270  ;;  %v2615_v54 = vstv %s3013_s13 }
 0x40a   :  { %v2280_v52 = vadd.f32 %v2273_v59, %v2235_v39  ;;  %v2279_v27 = vadd.f32 %v2271_v15, %v2234_v33  ;;  %v2618_v8 = vmul.f32 %v2615_v54, %v4641_v7  ;;  %v2617_v13 = vmul.f32 %v2615_v54, %v4643_v31 }
 0x40b   :  { %v2374_v28 = vadd.f32 %v2371_v17, %v2338_v24  ;;  %v2616_v9 = vmul.f32 %v2615_v54, %v4645_v11  ;;  %v2376_v17 = vmul.f32 %v4695_v6, %v4579_v34  ;;  %v2715_v6 = vstv %s2962_s18 }
 0x40e   :  { %2607 = vrot.lane.b32.xlu2 %v2599_v36, %s3093_s27  ;;  %v2698_v36 = vmul.f32 %v2696_v12, %v4709_v30 }
 0x40f   :  { %2605 = vrot.lane.b32.xlu1 %v2598_v56, %s3093_s27  ;;  %2603 = vrot.lane.b32.xlu0 %v2597_v43, %s3093_s27  ;;  %v2697_v56 = vmul.f32 %v2696_v12, %v4711_v18  ;;  %v2499_v43 = vstv %s2957_s17 }
 0x410   :  { %v2351_v51 = vpop.permute.xlu2 %2350 }
 0x411   :  { %v2357_v3 = vadd.f32 %v2351_v51, %v2300_v55  ;;  %v2292_v5 = vpop.permute.xlu1 %2291  ;;  %v2290_v63 = vpop.permute.xlu0 %2289 }
 0x412   :  { %v2299_v38 = vadd.f32 %v2292_v5, %v2242_v29  ;;  %v2298_v42 = vadd.f32 %v2290_v63, %v2241_v20  ;;  %v2659_v29 = vmul.f32 %v2658_v14, %v4711_v18  ;;  %v2502_v5 = vmul.f32 %v2499_v43, %v4641_v7 }
 0x413   :  { %v2381_v10 = vadd.f32 %v2378_v16, %v2357_v3 }
 0x416   :  { %2626 = vrot.lane.b32.xlu2 %v2618_v8, %s3093_s27  ;;  %v2506_v8 = vstv %s2984_s19 }
 0x417   :  { %2624 = vrot.lane.b32.xlu1 %v2617_v13, %s3093_s27  ;;  %2622 = vrot.lane.b32.xlu0 %v2616_v9, %s3093_s27 }
 0x418   :  { %v2394_v58 = vpop.permute.xlu2 %2393 }
 0x419   :  { %v2400_v39 = vadd.f32 %v2394_v58, %v2367_v45  ;;  %v2311_v33 = vpop.permute.xlu1 %2310  ;;  %v2309_v49 = vpop.permute.xlu0 %2308  ;;  %v2679_v45 = vmul.f32 %v2677_v21, %v4709_v30 }
 0x41a   :  { %v2318_v40 = vadd.f32 %v2311_v33, %v2261_v4  ;;  %v2317_v55 = vadd.f32 %v2309_v49, %v2260_v32  ;;  %v2734_v33 = vstv %s2989_s20  ;;  %v2509_v49 = vmul.f32 %v2506_v8, %v4641_v7 }
 0x41c   :  { %v2366_v53 = vadd.f32 %v2363_v1, %v2318_v40  ;;  %v2365_v35 = vadd.f32 %v2362_v47, %v2317_v55  ;;  %v2737_v1 = vmul.f32 %v2734_v33, %v4707_v2  ;;  %v2736_v47 = vmul.f32 %v2734_v33, %v4709_v30 }
 0x41e   :  { %2669 = vrot.lane.b32.xlu2 %v2661_v26, %s3092_s0  ;;  %v2735_v26 = vmul.f32 %v2734_v33, %v4711_v18 }
 0x41f   :  { %2667 = vrot.lane.b32.xlu1 %v2660_v57, %s3092_s0  ;;  %2665 = vrot.lane.b32.xlu0 %v2659_v29, %s3092_s0 }
 0x420   :  { %v2413_v20 = vpop.permute.xlu2 %2412 }
 0x421   :  { %v2419_v44 = vadd.f32 %v2413_v20, %v2374_v28  ;;  %v2330_v48 = vpop.permute.xlu1 %2329  ;;  %v2328_v23 = vpop.permute.xlu0 %2327 }
 0x422   :  { %v2337_v62 = vadd.f32 %v2330_v48, %v2280_v52  ;;  %v2336_v50 = vadd.f32 %v2328_v23, %v2279_v27  ;;  %v2699_v52 = vmul.f32 %v2696_v12, %v4707_v2  ;;  %v2775_v12 = vld [vmem:[%s4852_s1 + $0x1] sm:$0xff] }
 0x424   :  { %v2373_v4 = vadd.f32 %v2370_v60, %v2337_v62  ;;  %v2372_v32 = vadd.f32 %v2369_v22, %v2336_v50 }
 0x426   :  { %2688 = vrot.lane.b32.xlu2 %v2680_v19, %s3092_s0 }
 0x427   :  { %2686 = vrot.lane.b32.xlu1 %v2679_v45, %s3092_s0  ;;  %2684 = vrot.lane.b32.xlu0 %v2678_v46, %s3092_s0 }
 0x428   :  { %v2432_v37 = vpop.permute.xlu2 %2431 }
 0x429   :  { %v2438_v0 = vadd.f32 %v2432_v37, %v2381_v10  ;;  %v2349_v41 = vpop.permute.xlu1 %2348  ;;  %v2347_v24 = vpop.permute.xlu0 %2346  ;;  %v2716_v10 = vmul.f32 %v2715_v6, %v4711_v18  ;;  %v2501_v37 = vmul.f32 %v2499_v43, %v4643_v31 }
 0x42a   :  { %v2356_v59 = vadd.f32 %v2349_v41, %v2299_v38  ;;  %v2355_v15 = vadd.f32 %v2347_v24, %v2298_v42  ;;  %v2718_v38 = vmul.f32 %v2715_v6, %v4707_v2  ;;  %v2717_v42 = vmul.f32 %v2715_v6, %v4709_v30  ;;  %v2777_v41 = vld [vmem:[%s4852_s1 + $0x11] sm:$0x3]  ;;  %v2776_v24 = vld [vmem:[%s4852_s1 + $0x9] sm:$0xff] }
 0x42c   :  { %v2380_v27 = vadd.f32 %v2377_v25, %v2356_v59  ;;  %v2379_v28 = vadd.f32 %v2376_v17, %v2355_v15 }
 0x42e   :  { %2707 = vrot.lane.b32.xlu2 %v2699_v52, %s3092_s0 }
 0x42f   :  { %2705 = vrot.lane.b32.xlu1 %v2698_v36, %s3092_s0  ;;  %2703 = vrot.lane.b32.xlu0 %v2697_v56, %s3092_s0  ;;  %v2508_v56 = vmul.f32 %v2506_v8, %v4643_v31 }
 0x430   :  { %v2451_v61 = vpop.permute.xlu2 %2450 }
 0x431   :  { %v2457_v51 = vadd.f32 %v2451_v61, %v2400_v39  ;;  %v2392_v3 = vpop.permute.xlu1 %2391  ;;  %v2390_v34 = vpop.permute.xlu0 %2389  ;;  %v3040_v61 = vld [vmem:[%s4852_s1 + $0x29] sm:$0x3] }
 0x432   :  { %v2399_v63 = vadd.f32 %v2392_v3, %v2366_v53  ;;  %v2398_v54 = vadd.f32 %v2390_v34, %v2365_v35  ;;  %v2513_v53 = vstv %s3011_s21  ;;  %v3038_v3 = vld [vmem:[%s4852_s1 + $0x19] sm:$0xff] }
 0x433   :  { %v2505_v16 = vadd.f32 %v2502_v5, %v2457_v51  ;;  %v2516_v48 = vmul.f32 %v2513_v53, %v4641_v7  ;;  %v3039_v51 = vld [vmem:[%s4852_s1 + $0x21] sm:$0xff] }
 0x436   :  { %2726 = vrot.lane.b32.xlu2 %v2718_v38, %s3093_s27 }
 0x437   :  { %2724 = vrot.lane.b32.xlu1 %v2717_v42, %s3093_s27  ;;  %2722 = vrot.lane.b32.xlu0 %v2716_v10, %s3093_s27  ;;  %v2515_v10 = vmul.f32 %v2513_v53, %v4643_v31 }
 0x438   :  { %v2470_v13 = vpop.permute.xlu2 %2469 }
 0x439   :  { %v2476_v9 = vadd.f32 %v2470_v13, %v2419_v44  ;;  %v2411_v58 = vpop.permute.xlu1 %2410  ;;  %v2409_v39 = vpop.permute.xlu0 %2408  ;;  %v2753_v44 = vstv %s3016_s22  ;;  %v3046_v13 = vld [vmem:[%s4852_s1 + $0x41] sm:$0x3] }
 0x43a   :  { %v2418_v14 = vadd.f32 %v2411_v58, %v2373_v4  ;;  %v2417_v40 = vadd.f32 %v2409_v39, %v2372_v32  ;;  %v2756_v50 = vmul.f32 %v2753_v44, %v4707_v2  ;;  %v2755_v60 = vmul.f32 %v2753_v44, %v4709_v30  ;;  %v3044_v58 = vld [vmem:[%s4852_s1 + $0x31] sm:$0xff] }
 0x43b   :  { %v2512_v55 = vadd.f32 %v2509_v49, %v2476_v9  ;;  %v2754_v22 = vmul.f32 %v2753_v44, %v4711_v18  ;;  %v3045_v9 = vld [vmem:[%s4852_s1 + $0x39] sm:$0xff]  ;;  %v2637_v49 = vstv %s2960_s7  ;;  %s3014_s1 = sld [smem:[#allocation3 + $0xa2]] }
 0x43e   :  { %2745 = vrot.lane.b32.xlu2 %v2737_v1, %s3093_s27 }
 0x43f   :  { %2743 = vrot.lane.b32.xlu1 %v2736_v47, %s3093_s27  ;;  %2741 = vrot.lane.b32.xlu0 %v2735_v26, %s3093_s27 }
 0x440   :  { %v2489_v35 = vpop.permute.xlu2 %2488 }
 0x441   :  { %v2495_v57 = vadd.f32 %v2489_v35, %v2438_v0  ;;  %v2430_v29 = vpop.permute.xlu1 %2429  ;;  %v2428_v20 = vpop.permute.xlu0 %2427  ;;  %v2500_v0 = vmul.f32 %v2499_v43, %v4645_v11  ;;  %v2507_v43 = vmul.f32 %v2506_v8, %v4645_v11  ;;  %v2514_v8 = vmul.f32 %v2513_v53, %v4645_v11 }
 0x442   :  { %v2437_v23 = vadd.f32 %v2430_v29, %v2380_v27  ;;  %v2436_v21 = vadd.f32 %v2428_v20, %v2379_v28  ;;  %v2644_v53 = vstv %s2987_s14 }
 0x443   :  { %v2519_v62 = vadd.f32 %v2516_v48, %v2495_v57  ;;  %v2647_v44 = vmul.f32 %v2644_v53, %v4707_v2 }
 0x446   :  { %2764 = vrot.lane.b32.xlu2 %v2756_v50, %s3093_s27 }
 0x447   :  { %2762 = vrot.lane.b32.xlu1 %v2755_v60, %s3093_s27  ;;  %2760 = vrot.lane.b32.xlu0 %v2754_v22, %s3093_s27 }
 0x448   :  { %v2532_v19 = vpop.permute.xlu2 %2531 }
 0x449   :  { %v2538_v4 = vadd.f32 %v2532_v19, %v2505_v16  ;;  %v2449_v32 = vpop.permute.xlu1 %2448  ;;  %v2447_v45 = vpop.permute.xlu0 %2446 }
 0x44a   :  { %v2456_v7 = vadd.f32 %v2449_v32, %v2399_v63  ;;  %v2455_v46 = vadd.f32 %v2447_v45, %v2398_v54 }
 0x44c   :  { %v2504_v59 = vadd.f32 %v2501_v37, %v2456_v7  ;;  %v2503_v15 = vadd.f32 %v2500_v0, %v2455_v46 }
 0x44e   :  { %2785 = vrot.lane.b32.xlu2 %v2777_v41, %s3092_s0 }
 0x44f   :  { %2783 = vrot.lane.b32.xlu1 %v2776_v24, %s3092_s0  ;;  %2781 = vrot.lane.b32.xlu0 %v2775_v12, %s3092_s0  ;;  %v2639_v12 = vmul.f32 %v2637_v49, %v4709_v30 }
 0x450   :  { %v2551_v25 = vpop.permute.xlu2 %2550 }
 0x451   :  { %v2557_v17 = vadd.f32 %v2551_v25, %v2512_v55  ;;  %v2468_v52 = vpop.permute.xlu1 %2467  ;;  %v2466_v27 = vpop.permute.xlu0 %2465  ;;  %v2640_v55 = vmul.f32 %v2637_v49, %v4707_v2 }
 0x452   :  { %v2475_v28 = vadd.f32 %v2468_v52, %v2418_v14  ;;  %v2474_v36 = vadd.f32 %v2466_v27, %v2417_v40 }
 0x454   :  { %v2511_v34 = vadd.f32 %v2508_v56, %v2475_v28  ;;  %v2510_v6 = vadd.f32 %v2507_v43, %v2474_v36  ;;  %v2645_v56 = vmul.f32 %v2644_v53, %v4711_v18 }
 0x456   :  { %2811 = vrot.lane.b32.xlu2 %v3040_v61, %s3092_s0 }
 0x457   :  { %2809 = vrot.lane.b32.xlu1 %v3039_v51, %s3092_s0  ;;  %2807 = vrot.lane.b32.xlu0 %v3038_v3, %s3092_s0 }
 0x458   :  { %v2570_v5 = vpop.permute.xlu2 %2569 }
 0x459   :  { %v2576_v63 = vadd.f32 %v2570_v5, %v2519_v62  ;;  %v2487_v54 = vpop.permute.xlu1 %2486  ;;  %v2485_v16 = vpop.permute.xlu0 %2484  ;;  %v2651_v62 = vstv %s3014_s1 }
 0x45a   :  { %v2494_v38 = vadd.f32 %v2487_v54, %v2437_v23  ;;  %v2493_v42 = vadd.f32 %v2485_v16, %v2436_v21  ;;  %v2652_v54 = vmul.f32 %v2651_v62, %v4711_v18 }
 0x45c   :  { %v2518_v39 = vadd.f32 %v2515_v10, %v2494_v38  ;;  %v2517_v33 = vadd.f32 %v2514_v8, %v2493_v42 }
 0x45e   :  { %2836 = vrot.lane.b32.xlu2 %v3046_v13, %s3092_s0 }
 0x45f   :  { %2834 = vrot.lane.b32.xlu1 %v3045_v9, %s3092_s0  ;;  %2832 = vrot.lane.b32.xlu0 %v3044_v58, %s3092_s0 }
 0x460   :  { %v2589_v31 = vpop.permute.xlu2 %2588 }
 0x461   :  { %v2595_v11 = vadd.f32 %v2589_v31, %v2538_v4  ;;  %v2530_v14 = vpop.permute.xlu1 %2529  ;;  %v2528_v40 = vpop.permute.xlu0 %2527  ;;  %v2654_v4 = vmul.f32 %v2651_v62, %v4707_v2  ;;  %v2646_v2 = vmul.f32 %v2644_v53, %v4709_v30 }
 0x462   :  { %v2537_v1 = vadd.f32 %v2530_v14, %v2504_v59  ;;  %v2536_v47 = vadd.f32 %v2528_v40, %v2503_v15  ;;  %v2638_v59 = vmul.f32 %v2637_v49, %v4711_v18 }
 0x463   :  { %v2643_v26 = vadd.f32 %v2640_v55, %v2595_v11 }
 0x468   :  { %v2608_v35 = vpop.permute.xlu2 %2607 }
 0x469   :  { %v2614_v57 = vadd.f32 %v2608_v35, %v2557_v17  ;;  %v2549_v29 = vpop.permute.xlu1 %2548  ;;  %v2547_v20 = vpop.permute.xlu0 %2546 }
 0x46a   :  { %v2556_v48 = vadd.f32 %v2549_v29, %v2511_v34  ;;  %v2555_v23 = vadd.f32 %v2547_v20, %v2510_v6 }
 0x46b   :  { %v2650_v21 = vadd.f32 %v2647_v44, %v2614_v57 }
 0x470   :  { %v2627_v50 = vpop.permute.xlu2 %2626 }
 0x471   :  { %v2633_v60 = vadd.f32 %v2627_v50, %v2576_v63  ;;  %v2568_v22 = vpop.permute.xlu1 %2567  ;;  %v2566_v19 = vpop.permute.xlu0 %2565  ;;  %v2653_v63 = vmul.f32 %v2651_v62, %v4709_v30 }
 0x472   :  { %v2575_v32 = vadd.f32 %v2568_v22, %v2518_v39  ;;  %v2574_v45 = vadd.f32 %v2566_v19, %v2517_v33 }
 0x473   :  { %v2657_v7 = vadd.f32 %v2654_v4, %v2633_v60 }
 0x478   :  { %v2670_v46 = vpop.permute.xlu2 %2669 }
 0x479   :  { %v2587_v37 = vpop.permute.xlu1 %2586  ;;  %v2585_v0 = vpop.permute.xlu0 %2584  ;;  %v2676_v33 = vadd.f32 %v2670_v46, %v2643_v26 }
 0x47a   :  { %v2594_v41 = vadd.f32 %v2587_v37, %v2537_v1  ;;  %v2593_v24 = vadd.f32 %v2585_v0, %v2536_v47 }
 0x47c   :  { %v2642_v15 = vadd.f32 %v2639_v12, %v2594_v41  ;;  %v2641_v25 = vadd.f32 %v2638_v59, %v2593_v24 }
 0x480   :  { %v2689_v17 = vpop.permute.xlu2 %2688 }
 0x481   :  { %v2606_v52 = vpop.permute.xlu1 %2605  ;;  %v2604_v27 = vpop.permute.xlu0 %2603  ;;  %v2695_v55 = vadd.f32 %v2689_v17, %v2650_v21 }
 0x482   :  { %v2613_v28 = vadd.f32 %v2606_v52, %v2556_v48  ;;  %v2612_v36 = vadd.f32 %v2604_v27, %v2555_v23 }
 0x484   :  { %v2649_v43 = vadd.f32 %v2646_v2, %v2613_v28  ;;  %v2648_v61 = vadd.f32 %v2645_v56, %v2612_v36 }
 0x488   :  { %v2708_v51 = vpop.permute.xlu2 %2707 }
 0x489   :  { %v2625_v3 = vpop.permute.xlu1 %2624  ;;  %v2623_v34 = vpop.permute.xlu0 %2622  ;;  %v2714_v57 = vadd.f32 %v2708_v51, %v2657_v7 }
 0x48a   :  { %v2632_v6 = vadd.f32 %v2625_v3, %v2575_v32  ;;  %v2631_v5 = vadd.f32 %v2623_v34, %v2574_v45 }
 0x48c   :  { %v2656_v16 = vadd.f32 %v2653_v63, %v2632_v6  ;;  %v2655_v38 = vadd.f32 %v2652_v54, %v2631_v5 }
 0x490   :  { %v2727_v42 = vpop.permute.xlu2 %2726 }
 0x491   :  { %v2668_v10 = vpop.permute.xlu1 %2667  ;;  %v2666_v8 = vpop.permute.xlu0 %2665  ;;  %v2733_v11 = vadd.f32 %v2727_v42, %v2676_v33 }
 0x492   :  { %v2675_v60 = vadd.f32 %v2668_v10, %v2642_v15  ;;  %v2674_v22 = vadd.f32 %v2666_v8, %v2641_v25 }
 0x493   :  { %v2774_v14 = vmax.f32 %v2733_v11, 0.0 }
 0x498   :  { %v2746_v13 = vpop.permute.xlu2 %2745 }
 0x499   :  { %v2687_v9 = vpop.permute.xlu1 %2686  ;;  %v2685_v58 = vpop.permute.xlu0 %2684  ;;  %v2752_v47 = vadd.f32 %v2746_v13, %v2695_v55 }
 0x49a   :  { %v2694_v37 = vadd.f32 %v2687_v9, %v2649_v43  ;;  %v2693_v0 = vadd.f32 %v2685_v58, %v2648_v61 }
 0x49b   :  { %v2800_v53 = vmax.f32 %v2752_v47, 0.0 }
 0x4a0   :  { %v2765_v39 = vpop.permute.xlu2 %2764 }
 0x4a1   :  { %v2706_v49 = vpop.permute.xlu1 %2705  ;;  %v2704_v31 = vpop.permute.xlu0 %2703  ;;  %v2771_v44 = vadd.f32 %v2765_v39, %v2714_v57 }
 0x4a2   :  { %v2713_v27 = vadd.f32 %v2706_v49, %v2656_v16  ;;  %v2712_v28 = vadd.f32 %v2704_v31, %v2655_v38 }
 0x4a3   :  { %v2825_v48 = vmax.f32 %v2771_v44, 0.0 }
 0x4a8   :  { %v2786_v40 = vpop.permute.xlu2 %2785 }
 0x4a9   :  { %v2792_v30 = vadd.f32 %v2786_v40, %v2774_v14  ;;  %v2725_v1 = vpop.permute.xlu1 %2724  ;;  %v2723_v18 = vpop.permute.xlu0 %2722 }
 0x4aa   :  { %v2732_v19 = vadd.f32 %v2725_v1, %v2675_v60  ;;  %v2731_v4 = vadd.f32 %v2723_v18, %v2674_v22 }
 0x4ab   :  { %2797 = vst.msk [vmem:[%s4854_s3 + $0x10] sm:$0x3] %vm2796_vm4, %v2792_v30 }
 0x4ac   :  { %v2773_v32 = vmax.f32 %v2732_v19, 0.0  ;;  %v2772_v45 = vmax.f32 %v2731_v4, 0.0 }
 0x4b0   :  { %v2812_v35 = vpop.permute.xlu2 %2811 }
 0x4b1   :  { %v2818_v26 = vadd.f32 %v2812_v35, %v2800_v53  ;;  %v2744_v29 = vpop.permute.xlu1 %2743  ;;  %v2742_v20 = vpop.permute.xlu0 %2741 }
 0x4b2   :  { %v2751_v12 = vadd.f32 %v2744_v29, %v2694_v37  ;;  %v2750_v59 = vadd.f32 %v2742_v20, %v2693_v0 }
 0x4b3   :  { %3043 = vst.msk [vmem:[%s4854_s3 + $0x28] sm:$0x3] %vm2796_vm4, %v2818_v26 }
 0x4b4   :  { %v2799_v15 = vmax.f32 %v2751_v12, 0.0  ;;  %v2798_v25 = vmax.f32 %v2750_v59, 0.0 }
 0x4b8   :  { %v2837_v23 = vpop.permute.xlu2 %2836 }
 0x4b9   :  { %v2843_v21 = vadd.f32 %v2837_v23, %v2825_v48  ;;  %v2763_v62 = vpop.permute.xlu1 %2762  ;;  %v2761_v50 = vpop.permute.xlu0 %2760 }
 0x4ba   :  { %v2770_v56 = vadd.f32 %v2763_v62, %v2713_v27  ;;  %v2769_v43 = vadd.f32 %v2761_v50, %v2712_v28 }
 0x4bb   :  { %3049 = vst.msk [vmem:[%s4854_s3 + $0x40] sm:$0x3] %vm2796_vm4, %v2843_v21 }
 0x4bc   :  { %v2824_v61 = vmax.f32 %v2770_v56, 0.0  ;;  %v2823_v51 = vmax.f32 %v2769_v43, 0.0 }
 0x4c1   :  { %v2784_v7 = vpop.permute.xlu1 %2783  ;;  %v2782_v46 = vpop.permute.xlu0 %2781 }
 0x4c2   :  { %v2791_v41 = vadd.f32 %v2784_v7, %v2773_v32  ;;  %v2790_v24 = vadd.f32 %v2782_v46, %v2772_v45 }
 0x4c4   :  { %2795 = vst.msk [vmem:[%s4854_s3 + $0x8] sm:$0xff] %vm2793_vm5, %v2791_v41 }
 0x4c5   :  { %2794 = vst.msk [vmem:[%s4854_s3] sm:$0xff] %vm2793_vm5, %v2790_v24 }
 0x4c9   :  { %v2810_v17 = vpop.permute.xlu1 %2809  ;;  %v2808_v52 = vpop.permute.xlu0 %2807 }
 0x4ca   :  { %v2817_v36 = vadd.f32 %v2810_v17, %v2799_v15  ;;  %v2816_v2 = vadd.f32 %v2808_v52, %v2798_v25 }
 0x4cc   :  { %3042 = vst.msk [vmem:[%s4854_s3 + $0x20] sm:$0xff] %vm2793_vm5, %v2817_v36 }
 0x4cd   :  { %3041 = vst.msk [vmem:[%s4854_s3 + $0x18] sm:$0xff] %vm2793_vm5, %v2816_v2 }
 0x4d1   :  { %v2835_v3 = vpop.permute.xlu1 %2834  ;;  %v2833_v34 = vpop.permute.xlu0 %2832 }
 0x4d2   :  { %v2842_v6 = vadd.f32 %v2835_v3, %v2824_v61  ;;  %v2841_v5 = vadd.f32 %v2833_v34, %v2823_v51 }
 0x4d4   :  { %3048 = vst.msk [vmem:[%s4854_s3 + $0x38] sm:$0xff] %vm2793_vm5, %v2842_v6 }
 0x4d5   :  { %3047 = vst.msk [vmem:[%s4854_s3 + $0x30] sm:$0xff] %vm2793_vm5, %v2841_v5 }
 0x4d6   :  { %2852 = vsyncpa [#allocation4], 1 }

</bundles_post_ra>
